<compile_context>
chip_gen: v5e
topology: v5e:2x2
jax: 0.10.0
libtpu: 0.0.40
codegen_flags: <defaults>
</compile_context>

<pallas_src>
import functools
import math

import jax
import jax.numpy as jnp
from jax import lax
from jax.experimental import pallas as pl
from jax.experimental.pallas import tpu as pltpu

LN_EPS = 1e-5


# ----------------------------- in-kernel math helpers -----------------------------
def _erf(x):
    # Abramowitz & Stegun 7.1.26 polynomial (max abs err ~1.5e-7).
    s = jnp.where(x >= 0, 1.0, -1.0).astype(x.dtype)
    a = jnp.abs(x)
    t = 1.0 / (1.0 + 0.3275911 * a)
    poly = t * (0.254829592 + t * (-0.284496736 + t * (1.421413741
              + t * (-1.453152027 + t * 1.061405429))))
    return s * (1.0 - poly * jnp.exp(-a * a))


def _gelu(x):
    # exact (erf-based) GELU, matching torch.nn.GELU() default
    return 0.5 * x * (1.0 + _erf(x * (1.0 / math.sqrt(2.0))))


def _ln_slab(x, g, b, eps=LN_EPS):
    # nn.LayerNorm([P, E]): normalize over the whole (P, E) slab of one sample.
    mean = jnp.mean(x)
    var = jnp.mean((x - mean) ** 2)
    return (x - mean) * lax.rsqrt(var + eps) * g + b


def _ln_rows(x, g, b, eps=LN_EPS):
    # nn.LayerNorm(D): per-row normalization over the last dim.
    mean = jnp.mean(x, axis=-1, keepdims=True)
    var = jnp.mean((x - mean) ** 2, axis=-1, keepdims=True)
    return (x - mean) * lax.rsqrt(var + eps) * g + b


# ----------------------------- fused whole-model kernel -----------------------------
def _make_fused_kernel(num_layers, num_heads, P, E, num_head_layers=5):
    hd = E // num_heads
    scale = 1.0 / math.sqrt(hd)

    def kernel(*refs):
        o_ref = refs[-1]
        it = iter(refs[:-1])
        x_ref = next(it)                                    # (1, P, E) tokens of one sample
        dnn_w_r, dnn_b_r, pos_r = next(it), next(it), next(it)
        block_refs = [tuple(next(it) for _ in range(12)) for _ in range(num_layers)]
        head_refs = [tuple(next(it) for _ in range(4)) for _ in range(num_head_layers)]
        out_w_r, out_b_r = next(it), next(it)

        tokens = x_ref[0].astype(jnp.float32)               # (P, E)

        # Convlayer.dnn + PositionalEncoding (dropout = identity at eval)
        h = (jnp.dot(tokens, dnn_w_r[...], preferred_element_type=jnp.float32)
             + dnn_b_r[...] + pos_r[...])

        # VisionTransformer: num_layers x TransformerEncoder (fully unrolled)
        for (ln1_g_r, ln1_b_r, w_in_r, b_in_r, w_out_r, b_out_r,
             ln2_g_r, ln2_b_r, w1_r, b1_r, w2_r, b2_r) in block_refs:
            x_ln = _ln_slab(h, ln1_g_r[...], ln1_b_r[...])

            # packed QKV projection: (P, E) @ (E, 3E) -> (P, 3E)
            qkv = (jnp.dot(x_ln, w_in_r[...], preferred_element_type=jnp.float32)
                   + b_in_r[...])

            # per-head attention; output projection folded per head (no concat needed;
            # static slices of the weight Ref are free views)
            acc = jnp.zeros((P, E), jnp.float32)
            for hh in range(num_heads):
                q = qkv[:, hh * hd:(hh + 1) * hd]
                k = qkv[:, E + hh * hd:E + (hh + 1) * hd]
                v = qkv[:, 2 * E + hh * hd:2 * E + (hh + 1) * hd]
                s = lax.dot_general(q, k, (((1,), (1,)), ((), ())),
                                    preferred_element_type=jnp.float32) * scale
                s = s - jnp.max(s, axis=-1, keepdims=True)
                p = jnp.exp(s)
                # EUP approximate reciprocal: frees the VALU slot, ~2^-12 rel error
                p = p * pl.reciprocal(jnp.sum(p, axis=-1, keepdims=True), approx=True)
                o_h = jnp.dot(p, v, preferred_element_type=jnp.float32)   # (P, hd)
                acc = acc + jnp.dot(o_h, w_out_r[hh * hd:(hh + 1) * hd, :],
                                    preferred_element_type=jnp.float32)
            att_out = acc + b_out_r[...] + h                  # residual

            x_ln2 = _ln_slab(att_out, ln2_g_r[...], ln2_b_r[...])
            # MLP: GELU after BOTH linears, exactly as in the spec's MLP.forward
            m = _gelu(jnp.dot(x_ln2, w1_r[...], preferred_element_type=jnp.float32)
                      + b1_r[...])
            m = _gelu(jnp.dot(m, w2_r[...], preferred_element_type=jnp.float32)
                      + b2_r[...])
            h = m + att_out

        # torch.squeeze(x[:, -1, :]) -> last token of this sample, kept 2D: (1, E)
        z = h[P - 1:P, :]

        # ClassificationHead: 5 x (LayerNorm -> Linear) + final Linear (dropouts identity)
        for (ln_g_r, ln_b_r, w_r, b_r) in head_refs:
            z = _ln_rows(z, ln_g_r[...], ln_b_r[...])
            z = jnp.dot(z, w_r[...], preferred_element_type=jnp.float32) + b_r[...]
        z = jnp.dot(z, out_w_r[...], preferred_element_type=jnp.float32) + out_b_r[...]

        # final row softmax (exact divide -> sums to 1 within f32 precision)
        z = z - jnp.max(z, axis=-1, keepdims=True)
        ez = jnp.exp(z)
        z = ez / jnp.sum(ez, axis=-1, keepdims=True)

        o_ref[0] = z.astype(o_ref.dtype)                     # (1, num_output)

    return kernel


# ----------------------------- BlockSpec helpers -----------------------------
def _const_map(ndim):
    zeros = (0,) * ndim
    return lambda b: zeros


def _batch_map(ndim):
    zeros = (0,) * (ndim - 1)
    return lambda b: (b,) + zeros


# ----------------------------- parameters -----------------------------
def init_params(key, *, C, H, W, num_patch, num_layers, conv_output_dim,
                hiddens, num_output):
    ph, pw = H // num_patch, W // num_patch
    P = num_patch * num_patch
    E = C * ph * pw
    assert conv_output_dim == E, "positional-encoding add requires conv_output_dim == embed_dim"
    keys = iter(jax.random.split(key, 256))

    def lin(in_dim, out_dim):
        # stored pre-transposed to (K, O) -> lane-dense, non-transposed MXU RHS
        w = jax.random.normal(next(keys), (in_dim, out_dim), jnp.float32) * 0.02
        b = jax.random.normal(next(keys), (1, out_dim), jnp.float32) * 0.02
        return w, b

    params = {}
    # Convlayer.dnn (conv2d_1 / relu are unused by Convlayer.forward)
    params["dnn_w"], params["dnn_b"] = lin(E, conv_output_dim)
    # PositionalEncoding: learned embedding initialized to zeros, as in the PyTorch module
    params["pos"] = jnp.zeros((P, E), jnp.float32)

    blocks = []
    for _ in range(num_layers):
        blk = {
            "ln1_g": jnp.ones((P, E), jnp.float32), "ln1_b": jnp.zeros((P, E), jnp.float32),
            "ln2_g": jnp.ones((P, E), jnp.float32), "ln2_b": jnp.zeros((P, E), jnp.float32),
        }
        blk["attn_in_w"], blk["attn_in_b"] = lin(E, 3 * E)
        blk["attn_out_w"], blk["attn_out_b"] = lin(E, E)
        blk["mlp_w1"], blk["mlp_b1"] = lin(E, 2 * E)
        blk["mlp_w2"], blk["mlp_b2"] = lin(2 * E, E)
        blocks.append(blk)
    params["blocks"] = blocks

    dims = [E] + list(hiddens)
    head = []
    for i in range(5):
        ln_g = jnp.ones((1, dims[i]), jnp.float32)
        ln_b = jnp.zeros((1, dims[i]), jnp.float32)
        w, b = lin(dims[i], dims[i + 1])
        head.append((ln_g, ln_b, w, b))
    params["head"] = head
    params["head_out_w"], params["head_out_b"] = lin(dims[-1], num_output)
    return params


# ----------------------------- full forward (one pallas_call) -----------------------------
def forward(x_nchw, params, *, num_patch, num_heads):
    B, C, H, W = x_nchw.shape
    P = num_patch * num_patch
    E = C * (H // num_patch) * (W // num_patch)
    num_layers = len(params["blocks"])
    num_output = params["head_out_w"].shape[1]

    # Convlayer tokenization: unfold(full extents) + torch.reshape == NCHW row-major reshape.
    tokens = x_nchw.reshape(B, P, E)

    flat_inputs = [tokens, params["dnn_w"], params["dnn_b"], params["pos"]]
    for blk in params["blocks"]:
        flat_inputs += [blk["ln1_g"], blk["ln1_b"],
                        blk["attn_in_w"], blk["attn_in_b"],
                        blk["attn_out_w"], blk["attn_out_b"],
                        blk["ln2_g"], blk["ln2_b"],
                        blk["mlp_w1"], blk["mlp_b1"],
                        blk["mlp_w2"], blk["mlp_b2"]]
    for (ln_g, ln_b, w, b) in params["head"]:
        flat_inputs += [ln_g, ln_b, w, b]
    flat_inputs += [params["head_out_w"], params["head_out_b"]]

    in_specs = [pl.BlockSpec((1, P, E), _batch_map(3))]           # per-sample token block
    for a in flat_inputs[1:]:                                      # all weights: full, VMEM-resident
        in_specs.append(pl.BlockSpec(a.shape, _const_map(a.ndim)))

    out = pl.pallas_call(
        _make_fused_kernel(num_layers, num_heads, P, E, num_head_layers=len(params["head"])),
        out_shape=jax.ShapeDtypeStruct((B, 1, num_output), jnp.float32),
        grid=(B,),
        in_specs=in_specs,
        out_specs=pl.BlockSpec((1, 1, num_output), _batch_map(3)),
        compiler_params=pltpu.CompilerParams(
            dimension_semantics=("parallel",),        # v7x: shard samples across the 2 TCs
            vmem_limit_bytes=32 * 1024 * 1024),
    )(*flat_inputs)
    return out.reshape(B, num_output)


# ----------------------------- pure-JAX reference (correctness check) -----------------------------
def reference_forward(x_nchw, params, *, num_patch, num_heads):
    B, C, H, W = x_nchw.shape
    P = num_patch * num_patch
    E = C * (H // num_patch) * (W // num_patch)
    hd = E // num_heads
    tokens = x_nchw.reshape(B, P, E)
    h = tokens @ params["dnn_w"] + params["dnn_b"] + params["pos"]          # (B, P, E)
    for blk in params["blocks"]:
        mean = jnp.mean(h, axis=(1, 2), keepdims=True)
        var = jnp.mean((h - mean) ** 2, axis=(1, 2), keepdims=True)
        x_ln = (h - mean) / jnp.sqrt(var + LN_EPS) * blk["ln1_g"] + blk["ln1_b"]
        qkv = x_ln @ blk["attn_in_w"] + blk["attn_in_b"]                    # (B, P, 3E)
        q, k, v = qkv[..., :E], qkv[..., E:2 * E], qkv[..., 2 * E:]
        q = q.reshape(B, P, num_heads, hd).transpose(0, 2, 1, 3)
        k = k.reshape(B, P, num_heads, hd).transpose(0, 2, 1, 3)
        v = v.reshape(B, P, num_heads, hd).transpose(0, 2, 1, 3)
        s = jnp.einsum("bhqd,bhkd->bhqk", q, k) / math.sqrt(hd)
        p = jax.nn.softmax(s, axis=-1)
        o = jnp.einsum("bhqk,bhkd->bhqd", p, v)
        o = o.transpose(0, 2, 1, 3).reshape(B, P, E)
        att = o @ blk["attn_out_w"] + blk["attn_out_b"] + h
        mean2 = jnp.mean(att, axis=(1, 2), keepdims=True)
        var2 = jnp.mean((att - mean2) ** 2, axis=(1, 2), keepdims=True)
        x2 = (att - mean2) / jnp.sqrt(var2 + LN_EPS) * blk["ln2_g"] + blk["ln2_b"]
        m = jax.nn.gelu(x2 @ blk["mlp_w1"] + blk["mlp_b1"], approximate=False)
        m = jax.nn.gelu(m @ blk["mlp_w2"] + blk["mlp_b2"], approximate=False)
        h = m + att
    z = h[:, -1, :]
    for (ln_g, ln_b, w, b) in params["head"]:
        mean = jnp.mean(z, axis=-1, keepdims=True)
        var = jnp.mean((z - mean) ** 2, axis=-1, keepdims=True)
        z = (z - mean) / jnp.sqrt(var + LN_EPS) * ln_g + ln_b
        z = z @ w + b
    z = z @ params["head_out_w"] + params["head_out_b"]
    return jax.nn.softmax(z, axis=-1)


# ----------------------------- main -----------------------------
if __name__ == "__main__":
    B, C, H, W = 2, 4, 16, 16
    num_patch = 4                     # -> P = 16 patches, patch 4x4
    num_heads = 4                     # E = 64, head dim 16
    num_layers = 2
    hiddens = (32, 32, 32, 32, 32)
    num_output = 8
    E = C * (H // num_patch) * (W // num_patch)
    conv_output_dim = E               # required so the pos-encoding broadcast is valid

    key = jax.random.PRNGKey(0)
    kx, kp = jax.random.split(key)
    x = jax.random.normal(kx, (B, C, H, W), jnp.float32)

    params = init_params(kp, C=C, H=H, W=W, num_patch=num_patch,
                         num_layers=num_layers, conv_output_dim=conv_output_dim,
                         hiddens=hiddens, num_output=num_output)

    fwd = jax.jit(functools.partial(forward, num_patch=num_patch, num_heads=num_heads))
    out = fwd(x, params)
    out = jax.block_until_ready(out)

    assert out.shape == (B, num_output), out.shape
    assert bool(jnp.all(jnp.isfinite(out)))
    assert bool(jnp.allclose(jnp.sum(out, axis=1), 1.0, atol=1e-5))

    ref = reference_forward(x, params, num_patch=num_patch, num_heads=num_heads)
    ref = jax.block_until_ready(ref)
    assert bool(jnp.allclose(out, ref, atol=5e-3)), float(jnp.max(jnp.abs(out - ref)))

    print("KERNEL_OK")
</pallas_src>

<mosaic_0001>
module attributes {stable_mosaic.version = 11 : i64} {
  func.func @kernel(%arg0: i32, %arg1: memref<1x16x64xf32, #tpu.memory_space<vmem>>, %arg2: memref<64x64xf32, #tpu.memory_space<vmem>>, %arg3: memref<1x64xf32, #tpu.memory_space<vmem>>, %arg4: memref<16x64xf32, #tpu.memory_space<vmem>>, %arg5: memref<16x64xf32, #tpu.memory_space<vmem>>, %arg6: memref<16x64xf32, #tpu.memory_space<vmem>>, %arg7: memref<64x192xf32, #tpu.memory_space<vmem>>, %arg8: memref<1x192xf32, #tpu.memory_space<vmem>>, %arg9: memref<64x64xf32, #tpu.memory_space<vmem>>, %arg10: memref<1x64xf32, #tpu.memory_space<vmem>>, %arg11: memref<16x64xf32, #tpu.memory_space<vmem>>, %arg12: memref<16x64xf32, #tpu.memory_space<vmem>>, %arg13: memref<64x128xf32, #tpu.memory_space<vmem>>, %arg14: memref<1x128xf32, #tpu.memory_space<vmem>>, %arg15: memref<128x64xf32, #tpu.memory_space<vmem>>, %arg16: memref<1x64xf32, #tpu.memory_space<vmem>>, %arg17: memref<16x64xf32, #tpu.memory_space<vmem>>, %arg18: memref<16x64xf32, #tpu.memory_space<vmem>>, %arg19: memref<64x192xf32, #tpu.memory_space<vmem>>, %arg20: memref<1x192xf32, #tpu.memory_space<vmem>>, %arg21: memref<64x64xf32, #tpu.memory_space<vmem>>, %arg22: memref<1x64xf32, #tpu.memory_space<vmem>>, %arg23: memref<16x64xf32, #tpu.memory_space<vmem>>, %arg24: memref<16x64xf32, #tpu.memory_space<vmem>>, %arg25: memref<64x128xf32, #tpu.memory_space<vmem>>, %arg26: memref<1x128xf32, #tpu.memory_space<vmem>>, %arg27: memref<128x64xf32, #tpu.memory_space<vmem>>, %arg28: memref<1x64xf32, #tpu.memory_space<vmem>>, %arg29: memref<1x64xf32, #tpu.memory_space<vmem>>, %arg30: memref<1x64xf32, #tpu.memory_space<vmem>>, %arg31: memref<64x32xf32, #tpu.memory_space<vmem>>, %arg32: memref<1x32xf32, #tpu.memory_space<vmem>>, %arg33: memref<1x32xf32, #tpu.memory_space<vmem>>, %arg34: memref<1x32xf32, #tpu.memory_space<vmem>>, %arg35: memref<32x32xf32, #tpu.memory_space<vmem>>, %arg36: memref<1x32xf32, #tpu.memory_space<vmem>>, %arg37: memref<1x32xf32, #tpu.memory_space<vmem>>, %arg38: memref<1x32xf32, #tpu.memory_space<vmem>>, %arg39: memref<32x32xf32, #tpu.memory_space<vmem>>, %arg40: memref<1x32xf32, #tpu.memory_space<vmem>>, %arg41: memref<1x32xf32, #tpu.memory_space<vmem>>, %arg42: memref<1x32xf32, #tpu.memory_space<vmem>>, %arg43: memref<32x32xf32, #tpu.memory_space<vmem>>, %arg44: memref<1x32xf32, #tpu.memory_space<vmem>>, %arg45: memref<1x32xf32, #tpu.memory_space<vmem>>, %arg46: memref<1x32xf32, #tpu.memory_space<vmem>>, %arg47: memref<32x32xf32, #tpu.memory_space<vmem>>, %arg48: memref<1x32xf32, #tpu.memory_space<vmem>>, %arg49: memref<32x8xf32, #tpu.memory_space<vmem>>, %arg50: memref<1x8xf32, #tpu.memory_space<vmem>>, %arg51: memref<1x1x8xf32, #tpu.memory_space<vmem>>) attributes {dimension_semantics = [#tpu.dimension_semantics<parallel>], iteration_bounds = array<i64: 2>, scalar_prefetch = 0 : i64, scratch_operands = 0 : i64, tpu.core_type = #tpu.core_type<tc>, window_params = [{transform_indices = @transform_0, window_bounds = array<i64: 1, 16, 64>}, {pipeline_mode = #tpu.pipeline_mode<synchronous>, transform_indices = @transform_1, window_bounds = array<i64: 64, 64>}, {pipeline_mode = #tpu.pipeline_mode<synchronous>, transform_indices = @transform_2, window_bounds = array<i64: 1, 64>}, {pipeline_mode = #tpu.pipeline_mode<synchronous>, transform_indices = @transform_3, window_bounds = array<i64: 16, 64>}, {pipeline_mode = #tpu.pipeline_mode<synchronous>, transform_indices = @transform_4, window_bounds = array<i64: 16, 64>}, {pipeline_mode = #tpu.pipeline_mode<synchronous>, transform_indices = @transform_5, window_bounds = array<i64: 16, 64>}, {pipeline_mode = #tpu.pipeline_mode<synchronous>, transform_indices = @transform_6, window_bounds = array<i64: 64, 192>}, {pipeline_mode = #tpu.pipeline_mode<synchronous>, transform_indices = @transform_7, window_bounds = array<i64: 1, 192>}, {pipeline_mode = #tpu.pipeline_mode<synchronous>, transform_indices = @transform_8, window_bounds = array<i64: 64, 64>}, {pipeline_mode = #tpu.pipeline_mode<synchronous>, transform_indices = @transform_9, window_bounds = array<i64: 1, 64>}, {pipeline_mode = #tpu.pipeline_mode<synchronous>, transform_indices = @transform_10, window_bounds = array<i64: 16, 64>}, {pipeline_mode = #tpu.pipeline_mode<synchronous>, transform_indices = @transform_11, window_bounds = array<i64: 16, 64>}, {pipeline_mode = #tpu.pipeline_mode<synchronous>, transform_indices = @transform_12, window_bounds = array<i64: 64, 128>}, {pipeline_mode = #tpu.pipeline_mode<synchronous>, transform_indices = @transform_13, window_bounds = array<i64: 1, 128>}, {pipeline_mode = #tpu.pipeline_mode<synchronous>, transform_indices = @transform_14, window_bounds = array<i64: 128, 64>}, {pipeline_mode = #tpu.pipeline_mode<synchronous>, transform_indices = @transform_15, window_bounds = array<i64: 1, 64>}, {pipeline_mode = #tpu.pipeline_mode<synchronous>, transform_indices = @transform_16, window_bounds = array<i64: 16, 64>}, {pipeline_mode = #tpu.pipeline_mode<synchronous>, transform_indices = @transform_17, window_bounds = array<i64: 16, 64>}, {pipeline_mode = #tpu.pipeline_mode<synchronous>, transform_indices = @transform_18, window_bounds = array<i64: 64, 192>}, {pipeline_mode = #tpu.pipeline_mode<synchronous>, transform_indices = @transform_19, window_bounds = array<i64: 1, 192>}, {pipeline_mode = #tpu.pipeline_mode<synchronous>, transform_indices = @transform_20, window_bounds = array<i64: 64, 64>}, {pipeline_mode = #tpu.pipeline_mode<synchronous>, transform_indices = @transform_21, window_bounds = array<i64: 1, 64>}, {pipeline_mode = #tpu.pipeline_mode<synchronous>, transform_indices = @transform_22, window_bounds = array<i64: 16, 64>}, {pipeline_mode = #tpu.pipeline_mode<synchronous>, transform_indices = @transform_23, window_bounds = array<i64: 16, 64>}, {pipeline_mode = #tpu.pipeline_mode<synchronous>, transform_indices = @transform_24, window_bounds = array<i64: 64, 128>}, {pipeline_mode = #tpu.pipeline_mode<synchronous>, transform_indices = @transform_25, window_bounds = array<i64: 1, 128>}, {pipeline_mode = #tpu.pipeline_mode<synchronous>, transform_indices = @transform_26, window_bounds = array<i64: 128, 64>}, {pipeline_mode = #tpu.pipeline_mode<synchronous>, transform_indices = @transform_27, window_bounds = array<i64: 1, 64>}, {pipeline_mode = #tpu.pipeline_mode<synchronous>, transform_indices = @transform_28, window_bounds = array<i64: 1, 64>}, {pipeline_mode = #tpu.pipeline_mode<synchronous>, transform_indices = @transform_29, window_bounds = array<i64: 1, 64>}, {pipeline_mode = #tpu.pipeline_mode<synchronous>, transform_indices = @transform_30, window_bounds = array<i64: 64, 32>}, {pipeline_mode = #tpu.pipeline_mode<synchronous>, transform_indices = @transform_31, window_bounds = array<i64: 1, 32>}, {pipeline_mode = #tpu.pipeline_mode<synchronous>, transform_indices = @transform_32, window_bounds = array<i64: 1, 32>}, {pipeline_mode = #tpu.pipeline_mode<synchronous>, transform_indices = @transform_33, window_bounds = array<i64: 1, 32>}, {pipeline_mode = #tpu.pipeline_mode<synchronous>, transform_indices = @transform_34, window_bounds = array<i64: 32, 32>}, {pipeline_mode = #tpu.pipeline_mode<synchronous>, transform_indices = @transform_35, window_bounds = array<i64: 1, 32>}, {pipeline_mode = #tpu.pipeline_mode<synchronous>, transform_indices = @transform_36, window_bounds = array<i64: 1, 32>}, {pipeline_mode = #tpu.pipeline_mode<synchronous>, transform_indices = @transform_37, window_bounds = array<i64: 1, 32>}, {pipeline_mode = #tpu.pipeline_mode<synchronous>, transform_indices = @transform_38, window_bounds = array<i64: 32, 32>}, {pipeline_mode = #tpu.pipeline_mode<synchronous>, transform_indices = @transform_39, window_bounds = array<i64: 1, 32>}, {pipeline_mode = #tpu.pipeline_mode<synchronous>, transform_indices = @transform_40, window_bounds = array<i64: 1, 32>}, {pipeline_mode = #tpu.pipeline_mode<synchronous>, transform_indices = @transform_41, window_bounds = array<i64: 1, 32>}, {pipeline_mode = #tpu.pipeline_mode<synchronous>, transform_indices = @transform_42, window_bounds = array<i64: 32, 32>}, {pipeline_mode = #tpu.pipeline_mode<synchronous>, transform_indices = @transform_43, window_bounds = array<i64: 1, 32>}, {pipeline_mode = #tpu.pipeline_mode<synchronous>, transform_indices = @transform_44, window_bounds = array<i64: 1, 32>}, {pipeline_mode = #tpu.pipeline_mode<synchronous>, transform_indices = @transform_45, window_bounds = array<i64: 1, 32>}, {pipeline_mode = #tpu.pipeline_mode<synchronous>, transform_indices = @transform_46, window_bounds = array<i64: 32, 32>}, {pipeline_mode = #tpu.pipeline_mode<synchronous>, transform_indices = @transform_47, window_bounds = array<i64: 1, 32>}, {pipeline_mode = #tpu.pipeline_mode<synchronous>, transform_indices = @transform_48, window_bounds = array<i64: 32, 8>}, {pipeline_mode = #tpu.pipeline_mode<synchronous>, transform_indices = @transform_49, window_bounds = array<i64: 1, 8>}, {transform_indices = @transform_50, window_bounds = array<i64: 1, 1, 8>}]} {
    %c0 = arith.constant 0 : index
    %c0_0 = arith.constant 0 : index
    %c0_1 = arith.constant 0 : index
    %0 = vector.load %arg1[%c0, %c0_0, %c0_1] : memref<1x16x64xf32, #tpu.memory_space<vmem>>, vector<1x16x64xf32>
    %1 = vector.shape_cast %0 : vector<1x16x64xf32> to vector<16x64xf32>
    %c0_2 = arith.constant 0 : index
    %c0_3 = arith.constant 0 : index
    %2 = vector.load %arg2[%c0_2, %c0_3] : memref<64x64xf32, #tpu.memory_space<vmem>>, vector<64x64xf32>
    %cst = arith.constant dense<0.000000e+00> : vector<16x64xf32>
    %3 = tpu.matmul %1, %2, %cst {dimension_numbers = #tpu.dot_dimension_numbers<[1], [0], [0], [1], [0, 0, 1, 1], [], []>} : vector<16x64xf32>, vector<64x64xf32>, vector<16x64xf32> -> vector<16x64xf32>
    %c0_4 = arith.constant 0 : index
    %c0_5 = arith.constant 0 : index
    %4 = vector.load %arg3[%c0_4, %c0_5] : memref<1x64xf32, #tpu.memory_space<vmem>>, vector<1x64xf32>
    %5 = vector.broadcast %4 : vector<1x64xf32> to vector<16x64xf32>
    %6 = arith.addf %3, %5 : vector<16x64xf32>
    %c0_6 = arith.constant 0 : index
    %c0_7 = arith.constant 0 : index
    %7 = vector.load %arg4[%c0_6, %c0_7] : memref<16x64xf32, #tpu.memory_space<vmem>>, vector<16x64xf32>
    %8 = arith.addf %6, %7 : vector<16x64xf32>
    %c0_8 = arith.constant 0 : index
    %c0_9 = arith.constant 0 : index
    %9 = vector.load %arg5[%c0_8, %c0_9] : memref<16x64xf32, #tpu.memory_space<vmem>>, vector<16x64xf32>
    %c0_10 = arith.constant 0 : index
    %c0_11 = arith.constant 0 : index
    %10 = vector.load %arg6[%c0_10, %c0_11] : memref<16x64xf32, #tpu.memory_space<vmem>>, vector<16x64xf32>
    %11 = vector.shape_cast %8 : vector<16x64xf32> to vector<1x16x64xf32>
    %cst_12 = arith.constant dense<0.000000e+00> : vector<1xf32>
    %12 = vector.multi_reduction <add>, %11, %cst_12 [1, 2] : vector<1x16x64xf32> to vector<1xf32>
    %13 = vector.shape_cast %12 : vector<1xf32> to vector<1x1x1xf32>
    %14 = vector.extract %13[0, 0, 0] : f32 from vector<1x1x1xf32>
    %cst_13 = arith.constant 1.024000e+03 : f32
    %15 = arith.divf %14, %cst_13 : f32
    %16 = vector.broadcast %15 : f32 to vector<16x64xf32>
    %17 = arith.subf %8, %16 : vector<16x64xf32>
    %18 = arith.mulf %17, %17 : vector<16x64xf32>
    %19 = vector.shape_cast %18 : vector<16x64xf32> to vector<1x16x64xf32>
    %cst_14 = arith.constant dense<0.000000e+00> : vector<1xf32>
    %20 = vector.multi_reduction <add>, %19, %cst_14 [1, 2] : vector<1x16x64xf32> to vector<1xf32>
    %21 = vector.shape_cast %20 : vector<1xf32> to vector<1x1x1xf32>
    %22 = vector.extract %21[0, 0, 0] : f32 from vector<1x1x1xf32>
    %cst_15 = arith.constant 1.024000e+03 : f32
    %23 = arith.divf %22, %cst_15 : f32
    %24 = vector.broadcast %15 : f32 to vector<16x64xf32>
    %25 = arith.subf %8, %24 : vector<16x64xf32>
    %cst_16 = arith.constant 9.99999974E-6 : f32
    %26 = arith.addf %23, %cst_16 : f32
    %27 = math.rsqrt %26 : f32
    %28 = vector.broadcast %27 : f32 to vector<16x64xf32>
    %29 = arith.mulf %25, %28 : vector<16x64xf32>
    %30 = arith.mulf %29, %9 : vector<16x64xf32>
    %31 = arith.addf %30, %10 : vector<16x64xf32>
    %c0_17 = arith.constant 0 : index
    %c0_18 = arith.constant 0 : index
    %32 = vector.load %arg7[%c0_17, %c0_18] : memref<64x192xf32, #tpu.memory_space<vmem>>, vector<64x192xf32>
    %cst_19 = arith.constant dense<0.000000e+00> : vector<16x192xf32>
    %33 = tpu.matmul %31, %32, %cst_19 {dimension_numbers = #tpu.dot_dimension_numbers<[1], [0], [0], [1], [0, 0, 1, 1], [], []>} : vector<16x64xf32>, vector<64x192xf32>, vector<16x192xf32> -> vector<16x192xf32>
    %c0_20 = arith.constant 0 : index
    %c0_21 = arith.constant 0 : index
    %34 = vector.load %arg8[%c0_20, %c0_21] : memref<1x192xf32, #tpu.memory_space<vmem>>, vector<1x192xf32>
    %35 = vector.broadcast %34 : vector<1x192xf32> to vector<16x192xf32>
    %36 = arith.addf %33, %35 : vector<16x192xf32>
    %cst_22 = arith.constant 0.000000e+00 : f32
    %37 = vector.broadcast %cst_22 : f32 to vector<16x64xf32>
    %38 = vector.extract_strided_slice %36 {offsets = [0, 0], sizes = [16, 16], strides = [1, 1]} : vector<16x192xf32> to vector<16x16xf32>
    %39 = vector.extract_strided_slice %36 {offsets = [0, 64], sizes = [16, 16], strides = [1, 1]} : vector<16x192xf32> to vector<16x16xf32>
    %40 = vector.extract_strided_slice %36 {offsets = [0, 128], sizes = [16, 16], strides = [1, 1]} : vector<16x192xf32> to vector<16x16xf32>
    %cst_23 = arith.constant dense<0.000000e+00> : vector<16x16xf32>
    %41 = tpu.matmul %38, %39, %cst_23 {dimension_numbers = #tpu.dot_dimension_numbers<[1], [1], [0], [0], [0, 0, 1, 0], [], []>} : vector<16x16xf32>, vector<16x16xf32>, vector<16x16xf32> -> vector<16x16xf32>
    %cst_24 = arith.constant 2.500000e-01 : f32
    %42 = vector.broadcast %cst_24 : f32 to vector<16x16xf32>
    %43 = arith.mulf %41, %42 : vector<16x16xf32>
    %cst_25 = arith.constant dense<0xFF800000> : vector<16xf32>
    %44 = vector.multi_reduction <maximumf>, %43, %cst_25 [1] : vector<16x16xf32> to vector<16xf32>
    %45 = vector.shape_cast %44 : vector<16xf32> to vector<16x1xf32>
    %46 = vector.broadcast %45 : vector<16x1xf32> to vector<16x16xf32>
    %47 = arith.subf %43, %46 : vector<16x16xf32>
    %48 = math.exp %47 : vector<16x16xf32>
    %cst_26 = arith.constant dense<0.000000e+00> : vector<16xf32>
    %49 = vector.multi_reduction <add>, %48, %cst_26 [1] : vector<16x16xf32> to vector<16xf32>
    %50 = vector.shape_cast %49 : vector<16xf32> to vector<16x1xf32>
    %51 = tpu.reciprocal %50 {approx = true} : vector<16x1xf32> -> vector<16x1xf32>
    %52 = vector.broadcast %51 : vector<16x1xf32> to vector<16x16xf32>
    %53 = arith.mulf %48, %52 : vector<16x16xf32>
    %cst_27 = arith.constant dense<0.000000e+00> : vector<16x16xf32>
    %54 = tpu.matmul %53, %40, %cst_27 {dimension_numbers = #tpu.dot_dimension_numbers<[1], [0], [0], [1], [0, 0, 1, 1], [], []>} : vector<16x16xf32>, vector<16x16xf32>, vector<16x16xf32> -> vector<16x16xf32>
    %c0_28 = arith.constant 0 : index
    %c0_29 = arith.constant 0 : index
    %55 = vector.load %arg9[%c0_28, %c0_29] : memref<64x64xf32, #tpu.memory_space<vmem>>, vector<16x64xf32>
    %cst_30 = arith.constant dense<0.000000e+00> : vector<16x64xf32>
    %56 = tpu.matmul %54, %55, %cst_30 {dimension_numbers = #tpu.dot_dimension_numbers<[1], [0], [0], [1], [0, 0, 1, 1], [], []>} : vector<16x16xf32>, vector<16x64xf32>, vector<16x64xf32> -> vector<16x64xf32>
    %57 = arith.addf %37, %56 : vector<16x64xf32>
    %58 = vector.extract_strided_slice %36 {offsets = [0, 16], sizes = [16, 16], strides = [1, 1]} : vector<16x192xf32> to vector<16x16xf32>
    %59 = vector.extract_strided_slice %36 {offsets = [0, 80], sizes = [16, 16], strides = [1, 1]} : vector<16x192xf32> to vector<16x16xf32>
    %60 = vector.extract_strided_slice %36 {offsets = [0, 144], sizes = [16, 16], strides = [1, 1]} : vector<16x192xf32> to vector<16x16xf32>
    %cst_31 = arith.constant dense<0.000000e+00> : vector<16x16xf32>
    %61 = tpu.matmul %58, %59, %cst_31 {dimension_numbers = #tpu.dot_dimension_numbers<[1], [1], [0], [0], [0, 0, 1, 0], [], []>} : vector<16x16xf32>, vector<16x16xf32>, vector<16x16xf32> -> vector<16x16xf32>
    %cst_32 = arith.constant 2.500000e-01 : f32
    %62 = vector.broadcast %cst_32 : f32 to vector<16x16xf32>
    %63 = arith.mulf %61, %62 : vector<16x16xf32>
    %cst_33 = arith.constant dense<0xFF800000> : vector<16xf32>
    %64 = vector.multi_reduction <maximumf>, %63, %cst_33 [1] : vector<16x16xf32> to vector<16xf32>
    %65 = vector.shape_cast %64 : vector<16xf32> to vector<16x1xf32>
    %66 = vector.broadcast %65 : vector<16x1xf32> to vector<16x16xf32>
    %67 = arith.subf %63, %66 : vector<16x16xf32>
    %68 = math.exp %67 : vector<16x16xf32>
    %cst_34 = arith.constant dense<0.000000e+00> : vector<16xf32>
    %69 = vector.multi_reduction <add>, %68, %cst_34 [1] : vector<16x16xf32> to vector<16xf32>
    %70 = vector.shape_cast %69 : vector<16xf32> to vector<16x1xf32>
    %71 = tpu.reciprocal %70 {approx = true} : vector<16x1xf32> -> vector<16x1xf32>
    %72 = vector.broadcast %71 : vector<16x1xf32> to vector<16x16xf32>
    %73 = arith.mulf %68, %72 : vector<16x16xf32>
    %cst_35 = arith.constant dense<0.000000e+00> : vector<16x16xf32>
    %74 = tpu.matmul %73, %60, %cst_35 {dimension_numbers = #tpu.dot_dimension_numbers<[1], [0], [0], [1], [0, 0, 1, 1], [], []>} : vector<16x16xf32>, vector<16x16xf32>, vector<16x16xf32> -> vector<16x16xf32>
    %c16 = arith.constant 16 : index
    %c0_36 = arith.constant 0 : index
    %75 = vector.load %arg9[%c16, %c0_36] : memref<64x64xf32, #tpu.memory_space<vmem>>, vector<16x64xf32>
    %cst_37 = arith.constant dense<0.000000e+00> : vector<16x64xf32>
    %76 = tpu.matmul %74, %75, %cst_37 {dimension_numbers = #tpu.dot_dimension_numbers<[1], [0], [0], [1], [0, 0, 1, 1], [], []>} : vector<16x16xf32>, vector<16x64xf32>, vector<16x64xf32> -> vector<16x64xf32>
    %77 = arith.addf %57, %76 : vector<16x64xf32>
    %78 = vector.extract_strided_slice %36 {offsets = [0, 32], sizes = [16, 16], strides = [1, 1]} : vector<16x192xf32> to vector<16x16xf32>
    %79 = vector.extract_strided_slice %36 {offsets = [0, 96], sizes = [16, 16], strides = [1, 1]} : vector<16x192xf32> to vector<16x16xf32>
    %80 = vector.extract_strided_slice %36 {offsets = [0, 160], sizes = [16, 16], strides = [1, 1]} : vector<16x192xf32> to vector<16x16xf32>
    %cst_38 = arith.constant dense<0.000000e+00> : vector<16x16xf32>
    %81 = tpu.matmul %78, %79, %cst_38 {dimension_numbers = #tpu.dot_dimension_numbers<[1], [1], [0], [0], [0, 0, 1, 0], [], []>} : vector<16x16xf32>, vector<16x16xf32>, vector<16x16xf32> -> vector<16x16xf32>
    %cst_39 = arith.constant 2.500000e-01 : f32
    %82 = vector.broadcast %cst_39 : f32 to vector<16x16xf32>
    %83 = arith.mulf %81, %82 : vector<16x16xf32>
    %cst_40 = arith.constant dense<0xFF800000> : vector<16xf32>
    %84 = vector.multi_reduction <maximumf>, %83, %cst_40 [1] : vector<16x16xf32> to vector<16xf32>
    %85 = vector.shape_cast %84 : vector<16xf32> to vector<16x1xf32>
    %86 = vector.broadcast %85 : vector<16x1xf32> to vector<16x16xf32>
    %87 = arith.subf %83, %86 : vector<16x16xf32>
    %88 = math.exp %87 : vector<16x16xf32>
    %cst_41 = arith.constant dense<0.000000e+00> : vector<16xf32>
    %89 = vector.multi_reduction <add>, %88, %cst_41 [1] : vector<16x16xf32> to vector<16xf32>
    %90 = vector.shape_cast %89 : vector<16xf32> to vector<16x1xf32>
    %91 = tpu.reciprocal %90 {approx = true} : vector<16x1xf32> -> vector<16x1xf32>
    %92 = vector.broadcast %91 : vector<16x1xf32> to vector<16x16xf32>
    %93 = arith.mulf %88, %92 : vector<16x16xf32>
    %cst_42 = arith.constant dense<0.000000e+00> : vector<16x16xf32>
    %94 = tpu.matmul %93, %80, %cst_42 {dimension_numbers = #tpu.dot_dimension_numbers<[1], [0], [0], [1], [0, 0, 1, 1], [], []>} : vector<16x16xf32>, vector<16x16xf32>, vector<16x16xf32> -> vector<16x16xf32>
    %c32 = arith.constant 32 : index
    %c0_43 = arith.constant 0 : index
    %95 = vector.load %arg9[%c32, %c0_43] : memref<64x64xf32, #tpu.memory_space<vmem>>, vector<16x64xf32>
    %cst_44 = arith.constant dense<0.000000e+00> : vector<16x64xf32>
    %96 = tpu.matmul %94, %95, %cst_44 {dimension_numbers = #tpu.dot_dimension_numbers<[1], [0], [0], [1], [0, 0, 1, 1], [], []>} : vector<16x16xf32>, vector<16x64xf32>, vector<16x64xf32> -> vector<16x64xf32>
    %97 = arith.addf %77, %96 : vector<16x64xf32>
    %98 = vector.extract_strided_slice %36 {offsets = [0, 48], sizes = [16, 16], strides = [1, 1]} : vector<16x192xf32> to vector<16x16xf32>
    %99 = vector.extract_strided_slice %36 {offsets = [0, 112], sizes = [16, 16], strides = [1, 1]} : vector<16x192xf32> to vector<16x16xf32>
    %100 = vector.extract_strided_slice %36 {offsets = [0, 176], sizes = [16, 16], strides = [1, 1]} : vector<16x192xf32> to vector<16x16xf32>
    %cst_45 = arith.constant dense<0.000000e+00> : vector<16x16xf32>
    %101 = tpu.matmul %98, %99, %cst_45 {dimension_numbers = #tpu.dot_dimension_numbers<[1], [1], [0], [0], [0, 0, 1, 0], [], []>} : vector<16x16xf32>, vector<16x16xf32>, vector<16x16xf32> -> vector<16x16xf32>
    %cst_46 = arith.constant 2.500000e-01 : f32
    %102 = vector.broadcast %cst_46 : f32 to vector<16x16xf32>
    %103 = arith.mulf %101, %102 : vector<16x16xf32>
    %cst_47 = arith.constant dense<0xFF800000> : vector<16xf32>
    %104 = vector.multi_reduction <maximumf>, %103, %cst_47 [1] : vector<16x16xf32> to vector<16xf32>
    %105 = vector.shape_cast %104 : vector<16xf32> to vector<16x1xf32>
    %106 = vector.broadcast %105 : vector<16x1xf32> to vector<16x16xf32>
    %107 = arith.subf %103, %106 : vector<16x16xf32>
    %108 = math.exp %107 : vector<16x16xf32>
    %cst_48 = arith.constant dense<0.000000e+00> : vector<16xf32>
    %109 = vector.multi_reduction <add>, %108, %cst_48 [1] : vector<16x16xf32> to vector<16xf32>
    %110 = vector.shape_cast %109 : vector<16xf32> to vector<16x1xf32>
    %111 = tpu.reciprocal %110 {approx = true} : vector<16x1xf32> -> vector<16x1xf32>
    %112 = vector.broadcast %111 : vector<16x1xf32> to vector<16x16xf32>
    %113 = arith.mulf %108, %112 : vector<16x16xf32>
    %cst_49 = arith.constant dense<0.000000e+00> : vector<16x16xf32>
    %114 = tpu.matmul %113, %100, %cst_49 {dimension_numbers = #tpu.dot_dimension_numbers<[1], [0], [0], [1], [0, 0, 1, 1], [], []>} : vector<16x16xf32>, vector<16x16xf32>, vector<16x16xf32> -> vector<16x16xf32>
    %c48 = arith.constant 48 : index
    %c0_50 = arith.constant 0 : index
    %115 = vector.load %arg9[%c48, %c0_50] : memref<64x64xf32, #tpu.memory_space<vmem>>, vector<16x64xf32>
    %cst_51 = arith.constant dense<0.000000e+00> : vector<16x64xf32>
    %116 = tpu.matmul %114, %115, %cst_51 {dimension_numbers = #tpu.dot_dimension_numbers<[1], [0], [0], [1], [0, 0, 1, 1], [], []>} : vector<16x16xf32>, vector<16x64xf32>, vector<16x64xf32> -> vector<16x64xf32>
    %117 = arith.addf %97, %116 : vector<16x64xf32>
    %c0_52 = arith.constant 0 : index
    %c0_53 = arith.constant 0 : index
    %118 = vector.load %arg10[%c0_52, %c0_53] : memref<1x64xf32, #tpu.memory_space<vmem>>, vector<1x64xf32>
    %119 = vector.broadcast %118 : vector<1x64xf32> to vector<16x64xf32>
    %120 = arith.addf %117, %119 : vector<16x64xf32>
    %121 = arith.addf %120, %8 : vector<16x64xf32>
    %c0_54 = arith.constant 0 : index
    %c0_55 = arith.constant 0 : index
    %122 = vector.load %arg11[%c0_54, %c0_55] : memref<16x64xf32, #tpu.memory_space<vmem>>, vector<16x64xf32>
    %c0_56 = arith.constant 0 : index
    %c0_57 = arith.constant 0 : index
    %123 = vector.load %arg12[%c0_56, %c0_57] : memref<16x64xf32, #tpu.memory_space<vmem>>, vector<16x64xf32>
    %124 = vector.shape_cast %121 : vector<16x64xf32> to vector<1x16x64xf32>
    %cst_58 = arith.constant dense<0.000000e+00> : vector<1xf32>
    %125 = vector.multi_reduction <add>, %124, %cst_58 [1, 2] : vector<1x16x64xf32> to vector<1xf32>
    %126 = vector.shape_cast %125 : vector<1xf32> to vector<1x1x1xf32>
    %127 = vector.extract %126[0, 0, 0] : f32 from vector<1x1x1xf32>
    %cst_59 = arith.constant 1.024000e+03 : f32
    %128 = arith.divf %127, %cst_59 : f32
    %129 = vector.broadcast %128 : f32 to vector<16x64xf32>
    %130 = arith.subf %121, %129 : vector<16x64xf32>
    %131 = arith.mulf %130, %130 : vector<16x64xf32>
    %132 = vector.shape_cast %131 : vector<16x64xf32> to vector<1x16x64xf32>
    %cst_60 = arith.constant dense<0.000000e+00> : vector<1xf32>
    %133 = vector.multi_reduction <add>, %132, %cst_60 [1, 2] : vector<1x16x64xf32> to vector<1xf32>
    %134 = vector.shape_cast %133 : vector<1xf32> to vector<1x1x1xf32>
    %135 = vector.extract %134[0, 0, 0] : f32 from vector<1x1x1xf32>
    %cst_61 = arith.constant 1.024000e+03 : f32
    %136 = arith.divf %135, %cst_61 : f32
    %137 = vector.broadcast %128 : f32 to vector<16x64xf32>
    %138 = arith.subf %121, %137 : vector<16x64xf32>
    %cst_62 = arith.constant 9.99999974E-6 : f32
    %139 = arith.addf %136, %cst_62 : f32
    %140 = math.rsqrt %139 : f32
    %141 = vector.broadcast %140 : f32 to vector<16x64xf32>
    %142 = arith.mulf %138, %141 : vector<16x64xf32>
    %143 = arith.mulf %142, %122 : vector<16x64xf32>
    %144 = arith.addf %143, %123 : vector<16x64xf32>
    %c0_63 = arith.constant 0 : index
    %c0_64 = arith.constant 0 : index
    %145 = vector.load %arg13[%c0_63, %c0_64] : memref<64x128xf32, #tpu.memory_space<vmem>>, vector<64x128xf32>
    %cst_65 = arith.constant dense<0.000000e+00> : vector<16x128xf32>
    %146 = tpu.matmul %144, %145, %cst_65 {dimension_numbers = #tpu.dot_dimension_numbers<[1], [0], [0], [1], [0, 0, 1, 1], [], []>} : vector<16x64xf32>, vector<64x128xf32>, vector<16x128xf32> -> vector<16x128xf32>
    %c0_66 = arith.constant 0 : index
    %c0_67 = arith.constant 0 : index
    %147 = vector.load %arg14[%c0_66, %c0_67] : memref<1x128xf32, #tpu.memory_space<vmem>>, vector<1x128xf32>
    %148 = vector.broadcast %147 : vector<1x128xf32> to vector<16x128xf32>
    %149 = arith.addf %146, %148 : vector<16x128xf32>
    %cst_68 = arith.constant 5.000000e-01 : f32
    %150 = vector.broadcast %cst_68 : f32 to vector<16x128xf32>
    %151 = arith.mulf %150, %149 : vector<16x128xf32>
    %cst_69 = arith.constant 0.707106769 : f32
    %152 = vector.broadcast %cst_69 : f32 to vector<16x128xf32>
    %153 = arith.mulf %149, %152 : vector<16x128xf32>
    %cst_70 = arith.constant 0.000000e+00 : f32
    %154 = vector.broadcast %cst_70 : f32 to vector<16x128xf32>
    %155 = arith.cmpf oge, %153, %154 : vector<16x128xf32>
    %cst_71 = arith.constant 1.000000e+00 : f32
    %cst_72 = arith.constant -1.000000e+00 : f32
    %156 = vector.broadcast %cst_71 : f32 to vector<16x128xf32>
    %157 = vector.broadcast %cst_72 : f32 to vector<16x128xf32>
    %158 = arith.select %155, %156, %157 : vector<16x128xi1>, vector<16x128xf32>
    %159 = math.absf %153 : vector<16x128xf32>
    %cst_73 = arith.constant 0.327591091 : f32
    %160 = vector.broadcast %cst_73 : f32 to vector<16x128xf32>
    %161 = arith.mulf %160, %159 : vector<16x128xf32>
    %cst_74 = arith.constant 1.000000e+00 : f32
    %162 = vector.broadcast %cst_74 : f32 to vector<16x128xf32>
    %163 = arith.addf %162, %161 : vector<16x128xf32>
    %cst_75 = arith.constant 1.000000e+00 : f32
    %164 = vector.broadcast %cst_75 : f32 to vector<16x128xf32>
    %165 = arith.divf %164, %163 : vector<16x128xf32>
    %cst_76 = arith.constant 1.06140542 : f32
    %166 = vector.broadcast %cst_76 : f32 to vector<16x128xf32>
    %167 = arith.mulf %165, %166 : vector<16x128xf32>
    %cst_77 = arith.constant -1.45315206 : f32
    %168 = vector.broadcast %cst_77 : f32 to vector<16x128xf32>
    %169 = arith.addf %168, %167 : vector<16x128xf32>
    %170 = arith.mulf %165, %169 : vector<16x128xf32>
    %cst_78 = arith.constant 1.42141378 : f32
    %171 = vector.broadcast %cst_78 : f32 to vector<16x128xf32>
    %172 = arith.addf %171, %170 : vector<16x128xf32>
    %173 = arith.mulf %165, %172 : vector<16x128xf32>
    %cst_79 = arith.constant -0.284496725 : f32
    %174 = vector.broadcast %cst_79 : f32 to vector<16x128xf32>
    %175 = arith.addf %174, %173 : vector<16x128xf32>
    %176 = arith.mulf %165, %175 : vector<16x128xf32>
    %cst_80 = arith.constant 0.254829586 : f32
    %177 = vector.broadcast %cst_80 : f32 to vector<16x128xf32>
    %178 = arith.addf %177, %176 : vector<16x128xf32>
    %179 = arith.mulf %165, %178 : vector<16x128xf32>
    %cst_81 = arith.constant 0.000000e+00 : f32
    %180 = vector.broadcast %cst_81 : f32 to vector<16x128xf32>
    %181 = arith.subf %180, %159 : vector<16x128xf32>
    %182 = arith.mulf %181, %159 : vector<16x128xf32>
    %183 = math.exp %182 : vector<16x128xf32>
    %184 = arith.mulf %179, %183 : vector<16x128xf32>
    %cst_82 = arith.constant 1.000000e+00 : f32
    %185 = vector.broadcast %cst_82 : f32 to vector<16x128xf32>
    %186 = arith.subf %185, %184 : vector<16x128xf32>
    %187 = arith.mulf %158, %186 : vector<16x128xf32>
    %cst_83 = arith.constant 1.000000e+00 : f32
    %188 = vector.broadcast %cst_83 : f32 to vector<16x128xf32>
    %189 = arith.addf %188, %187 : vector<16x128xf32>
    %190 = arith.mulf %151, %189 : vector<16x128xf32>
    %c0_84 = arith.constant 0 : index
    %c0_85 = arith.constant 0 : index
    %191 = vector.load %arg15[%c0_84, %c0_85] : memref<128x64xf32, #tpu.memory_space<vmem>>, vector<128x64xf32>
    %cst_86 = arith.constant dense<0.000000e+00> : vector<16x64xf32>
    %192 = tpu.matmul %190, %191, %cst_86 {dimension_numbers = #tpu.dot_dimension_numbers<[1], [0], [0], [1], [0, 0, 1, 1], [], []>} : vector<16x128xf32>, vector<128x64xf32>, vector<16x64xf32> -> vector<16x64xf32>
    %c0_87 = arith.constant 0 : index
    %c0_88 = arith.constant 0 : index
    %193 = vector.load %arg16[%c0_87, %c0_88] : memref<1x64xf32, #tpu.memory_space<vmem>>, vector<1x64xf32>
    %194 = vector.broadcast %193 : vector<1x64xf32> to vector<16x64xf32>
    %195 = arith.addf %192, %194 : vector<16x64xf32>
    %cst_89 = arith.constant 5.000000e-01 : f32
    %196 = vector.broadcast %cst_89 : f32 to vector<16x64xf32>
    %197 = arith.mulf %196, %195 : vector<16x64xf32>
    %cst_90 = arith.constant 0.707106769 : f32
    %198 = vector.broadcast %cst_90 : f32 to vector<16x64xf32>
    %199 = arith.mulf %195, %198 : vector<16x64xf32>
    %cst_91 = arith.constant 0.000000e+00 : f32
    %200 = vector.broadcast %cst_91 : f32 to vector<16x64xf32>
    %201 = arith.cmpf oge, %199, %200 : vector<16x64xf32>
    %cst_92 = arith.constant 1.000000e+00 : f32
    %cst_93 = arith.constant -1.000000e+00 : f32
    %202 = vector.broadcast %cst_92 : f32 to vector<16x64xf32>
    %203 = vector.broadcast %cst_93 : f32 to vector<16x64xf32>
    %204 = arith.select %201, %202, %203 : vector<16x64xi1>, vector<16x64xf32>
    %205 = math.absf %199 : vector<16x64xf32>
    %cst_94 = arith.constant 0.327591091 : f32
    %206 = vector.broadcast %cst_94 : f32 to vector<16x64xf32>
    %207 = arith.mulf %206, %205 : vector<16x64xf32>
    %cst_95 = arith.constant 1.000000e+00 : f32
    %208 = vector.broadcast %cst_95 : f32 to vector<16x64xf32>
    %209 = arith.addf %208, %207 : vector<16x64xf32>
    %cst_96 = arith.constant 1.000000e+00 : f32
    %210 = vector.broadcast %cst_96 : f32 to vector<16x64xf32>
    %211 = arith.divf %210, %209 : vector<16x64xf32>
    %cst_97 = arith.constant 1.06140542 : f32
    %212 = vector.broadcast %cst_97 : f32 to vector<16x64xf32>
    %213 = arith.mulf %211, %212 : vector<16x64xf32>
    %cst_98 = arith.constant -1.45315206 : f32
    %214 = vector.broadcast %cst_98 : f32 to vector<16x64xf32>
    %215 = arith.addf %214, %213 : vector<16x64xf32>
    %216 = arith.mulf %211, %215 : vector<16x64xf32>
    %cst_99 = arith.constant 1.42141378 : f32
    %217 = vector.broadcast %cst_99 : f32 to vector<16x64xf32>
    %218 = arith.addf %217, %216 : vector<16x64xf32>
    %219 = arith.mulf %211, %218 : vector<16x64xf32>
    %cst_100 = arith.constant -0.284496725 : f32
    %220 = vector.broadcast %cst_100 : f32 to vector<16x64xf32>
    %221 = arith.addf %220, %219 : vector<16x64xf32>
    %222 = arith.mulf %211, %221 : vector<16x64xf32>
    %cst_101 = arith.constant 0.254829586 : f32
    %223 = vector.broadcast %cst_101 : f32 to vector<16x64xf32>
    %224 = arith.addf %223, %222 : vector<16x64xf32>
    %225 = arith.mulf %211, %224 : vector<16x64xf32>
    %cst_102 = arith.constant 0.000000e+00 : f32
    %226 = vector.broadcast %cst_102 : f32 to vector<16x64xf32>
    %227 = arith.subf %226, %205 : vector<16x64xf32>
    %228 = arith.mulf %227, %205 : vector<16x64xf32>
    %229 = math.exp %228 : vector<16x64xf32>
    %230 = arith.mulf %225, %229 : vector<16x64xf32>
    %cst_103 = arith.constant 1.000000e+00 : f32
    %231 = vector.broadcast %cst_103 : f32 to vector<16x64xf32>
    %232 = arith.subf %231, %230 : vector<16x64xf32>
    %233 = arith.mulf %204, %232 : vector<16x64xf32>
    %cst_104 = arith.constant 1.000000e+00 : f32
    %234 = vector.broadcast %cst_104 : f32 to vector<16x64xf32>
    %235 = arith.addf %234, %233 : vector<16x64xf32>
    %236 = arith.mulf %197, %235 : vector<16x64xf32>
    %237 = arith.addf %236, %121 : vector<16x64xf32>
    %c0_105 = arith.constant 0 : index
    %c0_106 = arith.constant 0 : index
    %238 = vector.load %arg17[%c0_105, %c0_106] : memref<16x64xf32, #tpu.memory_space<vmem>>, vector<16x64xf32>
    %c0_107 = arith.constant 0 : index
    %c0_108 = arith.constant 0 : index
    %239 = vector.load %arg18[%c0_107, %c0_108] : memref<16x64xf32, #tpu.memory_space<vmem>>, vector<16x64xf32>
    %240 = vector.shape_cast %237 : vector<16x64xf32> to vector<1x16x64xf32>
    %cst_109 = arith.constant dense<0.000000e+00> : vector<1xf32>
    %241 = vector.multi_reduction <add>, %240, %cst_109 [1, 2] : vector<1x16x64xf32> to vector<1xf32>
    %242 = vector.shape_cast %241 : vector<1xf32> to vector<1x1x1xf32>
    %243 = vector.extract %242[0, 0, 0] : f32 from vector<1x1x1xf32>
    %cst_110 = arith.constant 1.024000e+03 : f32
    %244 = arith.divf %243, %cst_110 : f32
    %245 = vector.broadcast %244 : f32 to vector<16x64xf32>
    %246 = arith.subf %237, %245 : vector<16x64xf32>
    %247 = arith.mulf %246, %246 : vector<16x64xf32>
    %248 = vector.shape_cast %247 : vector<16x64xf32> to vector<1x16x64xf32>
    %cst_111 = arith.constant dense<0.000000e+00> : vector<1xf32>
    %249 = vector.multi_reduction <add>, %248, %cst_111 [1, 2] : vector<1x16x64xf32> to vector<1xf32>
    %250 = vector.shape_cast %249 : vector<1xf32> to vector<1x1x1xf32>
    %251 = vector.extract %250[0, 0, 0] : f32 from vector<1x1x1xf32>
    %cst_112 = arith.constant 1.024000e+03 : f32
    %252 = arith.divf %251, %cst_112 : f32
    %253 = vector.broadcast %244 : f32 to vector<16x64xf32>
    %254 = arith.subf %237, %253 : vector<16x64xf32>
    %cst_113 = arith.constant 9.99999974E-6 : f32
    %255 = arith.addf %252, %cst_113 : f32
    %256 = math.rsqrt %255 : f32
    %257 = vector.broadcast %256 : f32 to vector<16x64xf32>
    %258 = arith.mulf %254, %257 : vector<16x64xf32>
    %259 = arith.mulf %258, %238 : vector<16x64xf32>
    %260 = arith.addf %259, %239 : vector<16x64xf32>
    %c0_114 = arith.constant 0 : index
    %c0_115 = arith.constant 0 : index
    %261 = vector.load %arg19[%c0_114, %c0_115] : memref<64x192xf32, #tpu.memory_space<vmem>>, vector<64x192xf32>
    %cst_116 = arith.constant dense<0.000000e+00> : vector<16x192xf32>
    %262 = tpu.matmul %260, %261, %cst_116 {dimension_numbers = #tpu.dot_dimension_numbers<[1], [0], [0], [1], [0, 0, 1, 1], [], []>} : vector<16x64xf32>, vector<64x192xf32>, vector<16x192xf32> -> vector<16x192xf32>
    %c0_117 = arith.constant 0 : index
    %c0_118 = arith.constant 0 : index
    %263 = vector.load %arg20[%c0_117, %c0_118] : memref<1x192xf32, #tpu.memory_space<vmem>>, vector<1x192xf32>
    %264 = vector.broadcast %263 : vector<1x192xf32> to vector<16x192xf32>
    %265 = arith.addf %262, %264 : vector<16x192xf32>
    %cst_119 = arith.constant 0.000000e+00 : f32
    %266 = vector.broadcast %cst_119 : f32 to vector<16x64xf32>
    %267 = vector.extract_strided_slice %265 {offsets = [0, 0], sizes = [16, 16], strides = [1, 1]} : vector<16x192xf32> to vector<16x16xf32>
    %268 = vector.extract_strided_slice %265 {offsets = [0, 64], sizes = [16, 16], strides = [1, 1]} : vector<16x192xf32> to vector<16x16xf32>
    %269 = vector.extract_strided_slice %265 {offsets = [0, 128], sizes = [16, 16], strides = [1, 1]} : vector<16x192xf32> to vector<16x16xf32>
    %cst_120 = arith.constant dense<0.000000e+00> : vector<16x16xf32>
    %270 = tpu.matmul %267, %268, %cst_120 {dimension_numbers = #tpu.dot_dimension_numbers<[1], [1], [0], [0], [0, 0, 1, 0], [], []>} : vector<16x16xf32>, vector<16x16xf32>, vector<16x16xf32> -> vector<16x16xf32>
    %cst_121 = arith.constant 2.500000e-01 : f32
    %271 = vector.broadcast %cst_121 : f32 to vector<16x16xf32>
    %272 = arith.mulf %270, %271 : vector<16x16xf32>
    %cst_122 = arith.constant dense<0xFF800000> : vector<16xf32>
    %273 = vector.multi_reduction <maximumf>, %272, %cst_122 [1] : vector<16x16xf32> to vector<16xf32>
    %274 = vector.shape_cast %273 : vector<16xf32> to vector<16x1xf32>
    %275 = vector.broadcast %274 : vector<16x1xf32> to vector<16x16xf32>
    %276 = arith.subf %272, %275 : vector<16x16xf32>
    %277 = math.exp %276 : vector<16x16xf32>
    %cst_123 = arith.constant dense<0.000000e+00> : vector<16xf32>
    %278 = vector.multi_reduction <add>, %277, %cst_123 [1] : vector<16x16xf32> to vector<16xf32>
    %279 = vector.shape_cast %278 : vector<16xf32> to vector<16x1xf32>
    %280 = tpu.reciprocal %279 {approx = true} : vector<16x1xf32> -> vector<16x1xf32>
    %281 = vector.broadcast %280 : vector<16x1xf32> to vector<16x16xf32>
    %282 = arith.mulf %277, %281 : vector<16x16xf32>
    %cst_124 = arith.constant dense<0.000000e+00> : vector<16x16xf32>
    %283 = tpu.matmul %282, %269, %cst_124 {dimension_numbers = #tpu.dot_dimension_numbers<[1], [0], [0], [1], [0, 0, 1, 1], [], []>} : vector<16x16xf32>, vector<16x16xf32>, vector<16x16xf32> -> vector<16x16xf32>
    %c0_125 = arith.constant 0 : index
    %c0_126 = arith.constant 0 : index
    %284 = vector.load %arg21[%c0_125, %c0_126] : memref<64x64xf32, #tpu.memory_space<vmem>>, vector<16x64xf32>
    %cst_127 = arith.constant dense<0.000000e+00> : vector<16x64xf32>
    %285 = tpu.matmul %283, %284, %cst_127 {dimension_numbers = #tpu.dot_dimension_numbers<[1], [0], [0], [1], [0, 0, 1, 1], [], []>} : vector<16x16xf32>, vector<16x64xf32>, vector<16x64xf32> -> vector<16x64xf32>
    %286 = arith.addf %266, %285 : vector<16x64xf32>
    %287 = vector.extract_strided_slice %265 {offsets = [0, 16], sizes = [16, 16], strides = [1, 1]} : vector<16x192xf32> to vector<16x16xf32>
    %288 = vector.extract_strided_slice %265 {offsets = [0, 80], sizes = [16, 16], strides = [1, 1]} : vector<16x192xf32> to vector<16x16xf32>
    %289 = vector.extract_strided_slice %265 {offsets = [0, 144], sizes = [16, 16], strides = [1, 1]} : vector<16x192xf32> to vector<16x16xf32>
    %cst_128 = arith.constant dense<0.000000e+00> : vector<16x16xf32>
    %290 = tpu.matmul %287, %288, %cst_128 {dimension_numbers = #tpu.dot_dimension_numbers<[1], [1], [0], [0], [0, 0, 1, 0], [], []>} : vector<16x16xf32>, vector<16x16xf32>, vector<16x16xf32> -> vector<16x16xf32>
    %cst_129 = arith.constant 2.500000e-01 : f32
    %291 = vector.broadcast %cst_129 : f32 to vector<16x16xf32>
    %292 = arith.mulf %290, %291 : vector<16x16xf32>
    %cst_130 = arith.constant dense<0xFF800000> : vector<16xf32>
    %293 = vector.multi_reduction <maximumf>, %292, %cst_130 [1] : vector<16x16xf32> to vector<16xf32>
    %294 = vector.shape_cast %293 : vector<16xf32> to vector<16x1xf32>
    %295 = vector.broadcast %294 : vector<16x1xf32> to vector<16x16xf32>
    %296 = arith.subf %292, %295 : vector<16x16xf32>
    %297 = math.exp %296 : vector<16x16xf32>
    %cst_131 = arith.constant dense<0.000000e+00> : vector<16xf32>
    %298 = vector.multi_reduction <add>, %297, %cst_131 [1] : vector<16x16xf32> to vector<16xf32>
    %299 = vector.shape_cast %298 : vector<16xf32> to vector<16x1xf32>
    %300 = tpu.reciprocal %299 {approx = true} : vector<16x1xf32> -> vector<16x1xf32>
    %301 = vector.broadcast %300 : vector<16x1xf32> to vector<16x16xf32>
    %302 = arith.mulf %297, %301 : vector<16x16xf32>
    %cst_132 = arith.constant dense<0.000000e+00> : vector<16x16xf32>
    %303 = tpu.matmul %302, %289, %cst_132 {dimension_numbers = #tpu.dot_dimension_numbers<[1], [0], [0], [1], [0, 0, 1, 1], [], []>} : vector<16x16xf32>, vector<16x16xf32>, vector<16x16xf32> -> vector<16x16xf32>
    %c16_133 = arith.constant 16 : index
    %c0_134 = arith.constant 0 : index
    %304 = vector.load %arg21[%c16_133, %c0_134] : memref<64x64xf32, #tpu.memory_space<vmem>>, vector<16x64xf32>
    %cst_135 = arith.constant dense<0.000000e+00> : vector<16x64xf32>
    %305 = tpu.matmul %303, %304, %cst_135 {dimension_numbers = #tpu.dot_dimension_numbers<[1], [0], [0], [1], [0, 0, 1, 1], [], []>} : vector<16x16xf32>, vector<16x64xf32>, vector<16x64xf32> -> vector<16x64xf32>
    %306 = arith.addf %286, %305 : vector<16x64xf32>
    %307 = vector.extract_strided_slice %265 {offsets = [0, 32], sizes = [16, 16], strides = [1, 1]} : vector<16x192xf32> to vector<16x16xf32>
    %308 = vector.extract_strided_slice %265 {offsets = [0, 96], sizes = [16, 16], strides = [1, 1]} : vector<16x192xf32> to vector<16x16xf32>
    %309 = vector.extract_strided_slice %265 {offsets = [0, 160], sizes = [16, 16], strides = [1, 1]} : vector<16x192xf32> to vector<16x16xf32>
    %cst_136 = arith.constant dense<0.000000e+00> : vector<16x16xf32>
    %310 = tpu.matmul %307, %308, %cst_136 {dimension_numbers = #tpu.dot_dimension_numbers<[1], [1], [0], [0], [0, 0, 1, 0], [], []>} : vector<16x16xf32>, vector<16x16xf32>, vector<16x16xf32> -> vector<16x16xf32>
    %cst_137 = arith.constant 2.500000e-01 : f32
    %311 = vector.broadcast %cst_137 : f32 to vector<16x16xf32>
    %312 = arith.mulf %310, %311 : vector<16x16xf32>
    %cst_138 = arith.constant dense<0xFF800000> : vector<16xf32>
    %313 = vector.multi_reduction <maximumf>, %312, %cst_138 [1] : vector<16x16xf32> to vector<16xf32>
    %314 = vector.shape_cast %313 : vector<16xf32> to vector<16x1xf32>
    %315 = vector.broadcast %314 : vector<16x1xf32> to vector<16x16xf32>
    %316 = arith.subf %312, %315 : vector<16x16xf32>
    %317 = math.exp %316 : vector<16x16xf32>
    %cst_139 = arith.constant dense<0.000000e+00> : vector<16xf32>
    %318 = vector.multi_reduction <add>, %317, %cst_139 [1] : vector<16x16xf32> to vector<16xf32>
    %319 = vector.shape_cast %318 : vector<16xf32> to vector<16x1xf32>
    %320 = tpu.reciprocal %319 {approx = true} : vector<16x1xf32> -> vector<16x1xf32>
    %321 = vector.broadcast %320 : vector<16x1xf32> to vector<16x16xf32>
    %322 = arith.mulf %317, %321 : vector<16x16xf32>
    %cst_140 = arith.constant dense<0.000000e+00> : vector<16x16xf32>
    %323 = tpu.matmul %322, %309, %cst_140 {dimension_numbers = #tpu.dot_dimension_numbers<[1], [0], [0], [1], [0, 0, 1, 1], [], []>} : vector<16x16xf32>, vector<16x16xf32>, vector<16x16xf32> -> vector<16x16xf32>
    %c32_141 = arith.constant 32 : index
    %c0_142 = arith.constant 0 : index
    %324 = vector.load %arg21[%c32_141, %c0_142] : memref<64x64xf32, #tpu.memory_space<vmem>>, vector<16x64xf32>
    %cst_143 = arith.constant dense<0.000000e+00> : vector<16x64xf32>
    %325 = tpu.matmul %323, %324, %cst_143 {dimension_numbers = #tpu.dot_dimension_numbers<[1], [0], [0], [1], [0, 0, 1, 1], [], []>} : vector<16x16xf32>, vector<16x64xf32>, vector<16x64xf32> -> vector<16x64xf32>
    %326 = arith.addf %306, %325 : vector<16x64xf32>
    %327 = vector.extract_strided_slice %265 {offsets = [0, 48], sizes = [16, 16], strides = [1, 1]} : vector<16x192xf32> to vector<16x16xf32>
    %328 = vector.extract_strided_slice %265 {offsets = [0, 112], sizes = [16, 16], strides = [1, 1]} : vector<16x192xf32> to vector<16x16xf32>
    %329 = vector.extract_strided_slice %265 {offsets = [0, 176], sizes = [16, 16], strides = [1, 1]} : vector<16x192xf32> to vector<16x16xf32>
    %cst_144 = arith.constant dense<0.000000e+00> : vector<16x16xf32>
    %330 = tpu.matmul %327, %328, %cst_144 {dimension_numbers = #tpu.dot_dimension_numbers<[1], [1], [0], [0], [0, 0, 1, 0], [], []>} : vector<16x16xf32>, vector<16x16xf32>, vector<16x16xf32> -> vector<16x16xf32>
    %cst_145 = arith.constant 2.500000e-01 : f32
    %331 = vector.broadcast %cst_145 : f32 to vector<16x16xf32>
    %332 = arith.mulf %330, %331 : vector<16x16xf32>
    %cst_146 = arith.constant dense<0xFF800000> : vector<16xf32>
    %333 = vector.multi_reduction <maximumf>, %332, %cst_146 [1] : vector<16x16xf32> to vector<16xf32>
    %334 = vector.shape_cast %333 : vector<16xf32> to vector<16x1xf32>
    %335 = vector.broadcast %334 : vector<16x1xf32> to vector<16x16xf32>
    %336 = arith.subf %332, %335 : vector<16x16xf32>
    %337 = math.exp %336 : vector<16x16xf32>
    %cst_147 = arith.constant dense<0.000000e+00> : vector<16xf32>
    %338 = vector.multi_reduction <add>, %337, %cst_147 [1] : vector<16x16xf32> to vector<16xf32>
    %339 = vector.shape_cast %338 : vector<16xf32> to vector<16x1xf32>
    %340 = tpu.reciprocal %339 {approx = true} : vector<16x1xf32> -> vector<16x1xf32>
    %341 = vector.broadcast %340 : vector<16x1xf32> to vector<16x16xf32>
    %342 = arith.mulf %337, %341 : vector<16x16xf32>
    %cst_148 = arith.constant dense<0.000000e+00> : vector<16x16xf32>
    %343 = tpu.matmul %342, %329, %cst_148 {dimension_numbers = #tpu.dot_dimension_numbers<[1], [0], [0], [1], [0, 0, 1, 1], [], []>} : vector<16x16xf32>, vector<16x16xf32>, vector<16x16xf32> -> vector<16x16xf32>
    %c48_149 = arith.constant 48 : index
    %c0_150 = arith.constant 0 : index
    %344 = vector.load %arg21[%c48_149, %c0_150] : memref<64x64xf32, #tpu.memory_space<vmem>>, vector<16x64xf32>
    %cst_151 = arith.constant dense<0.000000e+00> : vector<16x64xf32>
    %345 = tpu.matmul %343, %344, %cst_151 {dimension_numbers = #tpu.dot_dimension_numbers<[1], [0], [0], [1], [0, 0, 1, 1], [], []>} : vector<16x16xf32>, vector<16x64xf32>, vector<16x64xf32> -> vector<16x64xf32>
    %346 = arith.addf %326, %345 : vector<16x64xf32>
    %c0_152 = arith.constant 0 : index
    %c0_153 = arith.constant 0 : index
    %347 = vector.load %arg22[%c0_152, %c0_153] : memref<1x64xf32, #tpu.memory_space<vmem>>, vector<1x64xf32>
    %348 = vector.broadcast %347 : vector<1x64xf32> to vector<16x64xf32>
    %349 = arith.addf %346, %348 : vector<16x64xf32>
    %350 = arith.addf %349, %237 : vector<16x64xf32>
    %c0_154 = arith.constant 0 : index
    %c0_155 = arith.constant 0 : index
    %351 = vector.load %arg23[%c0_154, %c0_155] : memref<16x64xf32, #tpu.memory_space<vmem>>, vector<16x64xf32>
    %c0_156 = arith.constant 0 : index
    %c0_157 = arith.constant 0 : index
    %352 = vector.load %arg24[%c0_156, %c0_157] : memref<16x64xf32, #tpu.memory_space<vmem>>, vector<16x64xf32>
    %353 = vector.shape_cast %350 : vector<16x64xf32> to vector<1x16x64xf32>
    %cst_158 = arith.constant dense<0.000000e+00> : vector<1xf32>
    %354 = vector.multi_reduction <add>, %353, %cst_158 [1, 2] : vector<1x16x64xf32> to vector<1xf32>
    %355 = vector.shape_cast %354 : vector<1xf32> to vector<1x1x1xf32>
    %356 = vector.extract %355[0, 0, 0] : f32 from vector<1x1x1xf32>
    %cst_159 = arith.constant 1.024000e+03 : f32
    %357 = arith.divf %356, %cst_159 : f32
    %358 = vector.broadcast %357 : f32 to vector<16x64xf32>
    %359 = arith.subf %350, %358 : vector<16x64xf32>
    %360 = arith.mulf %359, %359 : vector<16x64xf32>
    %361 = vector.shape_cast %360 : vector<16x64xf32> to vector<1x16x64xf32>
    %cst_160 = arith.constant dense<0.000000e+00> : vector<1xf32>
    %362 = vector.multi_reduction <add>, %361, %cst_160 [1, 2] : vector<1x16x64xf32> to vector<1xf32>
    %363 = vector.shape_cast %362 : vector<1xf32> to vector<1x1x1xf32>
    %364 = vector.extract %363[0, 0, 0] : f32 from vector<1x1x1xf32>
    %cst_161 = arith.constant 1.024000e+03 : f32
    %365 = arith.divf %364, %cst_161 : f32
    %366 = vector.broadcast %357 : f32 to vector<16x64xf32>
    %367 = arith.subf %350, %366 : vector<16x64xf32>
    %cst_162 = arith.constant 9.99999974E-6 : f32
    %368 = arith.addf %365, %cst_162 : f32
    %369 = math.rsqrt %368 : f32
    %370 = vector.broadcast %369 : f32 to vector<16x64xf32>
    %371 = arith.mulf %367, %370 : vector<16x64xf32>
    %372 = arith.mulf %371, %351 : vector<16x64xf32>
    %373 = arith.addf %372, %352 : vector<16x64xf32>
    %c0_163 = arith.constant 0 : index
    %c0_164 = arith.constant 0 : index
    %374 = vector.load %arg25[%c0_163, %c0_164] : memref<64x128xf32, #tpu.memory_space<vmem>>, vector<64x128xf32>
    %cst_165 = arith.constant dense<0.000000e+00> : vector<16x128xf32>
    %375 = tpu.matmul %373, %374, %cst_165 {dimension_numbers = #tpu.dot_dimension_numbers<[1], [0], [0], [1], [0, 0, 1, 1], [], []>} : vector<16x64xf32>, vector<64x128xf32>, vector<16x128xf32> -> vector<16x128xf32>
    %c0_166 = arith.constant 0 : index
    %c0_167 = arith.constant 0 : index
    %376 = vector.load %arg26[%c0_166, %c0_167] : memref<1x128xf32, #tpu.memory_space<vmem>>, vector<1x128xf32>
    %377 = vector.broadcast %376 : vector<1x128xf32> to vector<16x128xf32>
    %378 = arith.addf %375, %377 : vector<16x128xf32>
    %cst_168 = arith.constant 5.000000e-01 : f32
    %379 = vector.broadcast %cst_168 : f32 to vector<16x128xf32>
    %380 = arith.mulf %379, %378 : vector<16x128xf32>
    %cst_169 = arith.constant 0.707106769 : f32
    %381 = vector.broadcast %cst_169 : f32 to vector<16x128xf32>
    %382 = arith.mulf %378, %381 : vector<16x128xf32>
    %cst_170 = arith.constant 0.000000e+00 : f32
    %383 = vector.broadcast %cst_170 : f32 to vector<16x128xf32>
    %384 = arith.cmpf oge, %382, %383 : vector<16x128xf32>
    %cst_171 = arith.constant 1.000000e+00 : f32
    %cst_172 = arith.constant -1.000000e+00 : f32
    %385 = vector.broadcast %cst_171 : f32 to vector<16x128xf32>
    %386 = vector.broadcast %cst_172 : f32 to vector<16x128xf32>
    %387 = arith.select %384, %385, %386 : vector<16x128xi1>, vector<16x128xf32>
    %388 = math.absf %382 : vector<16x128xf32>
    %cst_173 = arith.constant 0.327591091 : f32
    %389 = vector.broadcast %cst_173 : f32 to vector<16x128xf32>
    %390 = arith.mulf %389, %388 : vector<16x128xf32>
    %cst_174 = arith.constant 1.000000e+00 : f32
    %391 = vector.broadcast %cst_174 : f32 to vector<16x128xf32>
    %392 = arith.addf %391, %390 : vector<16x128xf32>
    %cst_175 = arith.constant 1.000000e+00 : f32
    %393 = vector.broadcast %cst_175 : f32 to vector<16x128xf32>
    %394 = arith.divf %393, %392 : vector<16x128xf32>
    %cst_176 = arith.constant 1.06140542 : f32
    %395 = vector.broadcast %cst_176 : f32 to vector<16x128xf32>
    %396 = arith.mulf %394, %395 : vector<16x128xf32>
    %cst_177 = arith.constant -1.45315206 : f32
    %397 = vector.broadcast %cst_177 : f32 to vector<16x128xf32>
    %398 = arith.addf %397, %396 : vector<16x128xf32>
    %399 = arith.mulf %394, %398 : vector<16x128xf32>
    %cst_178 = arith.constant 1.42141378 : f32
    %400 = vector.broadcast %cst_178 : f32 to vector<16x128xf32>
    %401 = arith.addf %400, %399 : vector<16x128xf32>
    %402 = arith.mulf %394, %401 : vector<16x128xf32>
    %cst_179 = arith.constant -0.284496725 : f32
    %403 = vector.broadcast %cst_179 : f32 to vector<16x128xf32>
    %404 = arith.addf %403, %402 : vector<16x128xf32>
    %405 = arith.mulf %394, %404 : vector<16x128xf32>
    %cst_180 = arith.constant 0.254829586 : f32
    %406 = vector.broadcast %cst_180 : f32 to vector<16x128xf32>
    %407 = arith.addf %406, %405 : vector<16x128xf32>
    %408 = arith.mulf %394, %407 : vector<16x128xf32>
    %cst_181 = arith.constant 0.000000e+00 : f32
    %409 = vector.broadcast %cst_181 : f32 to vector<16x128xf32>
    %410 = arith.subf %409, %388 : vector<16x128xf32>
    %411 = arith.mulf %410, %388 : vector<16x128xf32>
    %412 = math.exp %411 : vector<16x128xf32>
    %413 = arith.mulf %408, %412 : vector<16x128xf32>
    %cst_182 = arith.constant 1.000000e+00 : f32
    %414 = vector.broadcast %cst_182 : f32 to vector<16x128xf32>
    %415 = arith.subf %414, %413 : vector<16x128xf32>
    %416 = arith.mulf %387, %415 : vector<16x128xf32>
    %cst_183 = arith.constant 1.000000e+00 : f32
    %417 = vector.broadcast %cst_183 : f32 to vector<16x128xf32>
    %418 = arith.addf %417, %416 : vector<16x128xf32>
    %419 = arith.mulf %380, %418 : vector<16x128xf32>
    %c0_184 = arith.constant 0 : index
    %c0_185 = arith.constant 0 : index
    %420 = vector.load %arg27[%c0_184, %c0_185] : memref<128x64xf32, #tpu.memory_space<vmem>>, vector<128x64xf32>
    %cst_186 = arith.constant dense<0.000000e+00> : vector<16x64xf32>
    %421 = tpu.matmul %419, %420, %cst_186 {dimension_numbers = #tpu.dot_dimension_numbers<[1], [0], [0], [1], [0, 0, 1, 1], [], []>} : vector<16x128xf32>, vector<128x64xf32>, vector<16x64xf32> -> vector<16x64xf32>
    %c0_187 = arith.constant 0 : index
    %c0_188 = arith.constant 0 : index
    %422 = vector.load %arg28[%c0_187, %c0_188] : memref<1x64xf32, #tpu.memory_space<vmem>>, vector<1x64xf32>
    %423 = vector.broadcast %422 : vector<1x64xf32> to vector<16x64xf32>
    %424 = arith.addf %421, %423 : vector<16x64xf32>
    %cst_189 = arith.constant 5.000000e-01 : f32
    %425 = vector.broadcast %cst_189 : f32 to vector<16x64xf32>
    %426 = arith.mulf %425, %424 : vector<16x64xf32>
    %cst_190 = arith.constant 0.707106769 : f32
    %427 = vector.broadcast %cst_190 : f32 to vector<16x64xf32>
    %428 = arith.mulf %424, %427 : vector<16x64xf32>
    %cst_191 = arith.constant 0.000000e+00 : f32
    %429 = vector.broadcast %cst_191 : f32 to vector<16x64xf32>
    %430 = arith.cmpf oge, %428, %429 : vector<16x64xf32>
    %cst_192 = arith.constant 1.000000e+00 : f32
    %cst_193 = arith.constant -1.000000e+00 : f32
    %431 = vector.broadcast %cst_192 : f32 to vector<16x64xf32>
    %432 = vector.broadcast %cst_193 : f32 to vector<16x64xf32>
    %433 = arith.select %430, %431, %432 : vector<16x64xi1>, vector<16x64xf32>
    %434 = math.absf %428 : vector<16x64xf32>
    %cst_194 = arith.constant 0.327591091 : f32
    %435 = vector.broadcast %cst_194 : f32 to vector<16x64xf32>
    %436 = arith.mulf %435, %434 : vector<16x64xf32>
    %cst_195 = arith.constant 1.000000e+00 : f32
    %437 = vector.broadcast %cst_195 : f32 to vector<16x64xf32>
    %438 = arith.addf %437, %436 : vector<16x64xf32>
    %cst_196 = arith.constant 1.000000e+00 : f32
    %439 = vector.broadcast %cst_196 : f32 to vector<16x64xf32>
    %440 = arith.divf %439, %438 : vector<16x64xf32>
    %cst_197 = arith.constant 1.06140542 : f32
    %441 = vector.broadcast %cst_197 : f32 to vector<16x64xf32>
    %442 = arith.mulf %440, %441 : vector<16x64xf32>
    %cst_198 = arith.constant -1.45315206 : f32
    %443 = vector.broadcast %cst_198 : f32 to vector<16x64xf32>
    %444 = arith.addf %443, %442 : vector<16x64xf32>
    %445 = arith.mulf %440, %444 : vector<16x64xf32>
    %cst_199 = arith.constant 1.42141378 : f32
    %446 = vector.broadcast %cst_199 : f32 to vector<16x64xf32>
    %447 = arith.addf %446, %445 : vector<16x64xf32>
    %448 = arith.mulf %440, %447 : vector<16x64xf32>
    %cst_200 = arith.constant -0.284496725 : f32
    %449 = vector.broadcast %cst_200 : f32 to vector<16x64xf32>
    %450 = arith.addf %449, %448 : vector<16x64xf32>
    %451 = arith.mulf %440, %450 : vector<16x64xf32>
    %cst_201 = arith.constant 0.254829586 : f32
    %452 = vector.broadcast %cst_201 : f32 to vector<16x64xf32>
    %453 = arith.addf %452, %451 : vector<16x64xf32>
    %454 = arith.mulf %440, %453 : vector<16x64xf32>
    %cst_202 = arith.constant 0.000000e+00 : f32
    %455 = vector.broadcast %cst_202 : f32 to vector<16x64xf32>
    %456 = arith.subf %455, %434 : vector<16x64xf32>
    %457 = arith.mulf %456, %434 : vector<16x64xf32>
    %458 = math.exp %457 : vector<16x64xf32>
    %459 = arith.mulf %454, %458 : vector<16x64xf32>
    %cst_203 = arith.constant 1.000000e+00 : f32
    %460 = vector.broadcast %cst_203 : f32 to vector<16x64xf32>
    %461 = arith.subf %460, %459 : vector<16x64xf32>
    %462 = arith.mulf %433, %461 : vector<16x64xf32>
    %cst_204 = arith.constant 1.000000e+00 : f32
    %463 = vector.broadcast %cst_204 : f32 to vector<16x64xf32>
    %464 = arith.addf %463, %462 : vector<16x64xf32>
    %465 = arith.mulf %426, %464 : vector<16x64xf32>
    %466 = arith.addf %465, %350 : vector<16x64xf32>
    %467 = vector.extract_strided_slice %466 {offsets = [15, 0], sizes = [1, 64], strides = [1, 1]} : vector<16x64xf32> to vector<1x64xf32>
    %c0_205 = arith.constant 0 : index
    %c0_206 = arith.constant 0 : index
    %468 = vector.load %arg29[%c0_205, %c0_206] : memref<1x64xf32, #tpu.memory_space<vmem>>, vector<1x64xf32>
    %c0_207 = arith.constant 0 : index
    %c0_208 = arith.constant 0 : index
    %469 = vector.load %arg30[%c0_207, %c0_208] : memref<1x64xf32, #tpu.memory_space<vmem>>, vector<1x64xf32>
    %cst_209 = arith.constant dense<0.000000e+00> : vector<1xf32>
    %470 = vector.multi_reduction <add>, %467, %cst_209 [1] : vector<1x64xf32> to vector<1xf32>
    %471 = vector.shape_cast %470 : vector<1xf32> to vector<1x1xf32>
    %cst_210 = arith.constant 6.400000e+01 : f32
    %472 = vector.broadcast %cst_210 : f32 to vector<1x1xf32>
    %473 = arith.divf %471, %472 : vector<1x1xf32>
    %474 = vector.broadcast %473 : vector<1x1xf32> to vector<1x64xf32>
    %475 = arith.subf %467, %474 : vector<1x64xf32>
    %476 = arith.mulf %475, %475 : vector<1x64xf32>
    %cst_211 = arith.constant dense<0.000000e+00> : vector<1xf32>
    %477 = vector.multi_reduction <add>, %476, %cst_211 [1] : vector<1x64xf32> to vector<1xf32>
    %478 = vector.shape_cast %477 : vector<1xf32> to vector<1x1xf32>
    %cst_212 = arith.constant 6.400000e+01 : f32
    %479 = vector.broadcast %cst_212 : f32 to vector<1x1xf32>
    %480 = arith.divf %478, %479 : vector<1x1xf32>
    %481 = vector.broadcast %473 : vector<1x1xf32> to vector<1x64xf32>
    %482 = arith.subf %467, %481 : vector<1x64xf32>
    %cst_213 = arith.constant 9.99999974E-6 : f32
    %483 = vector.broadcast %cst_213 : f32 to vector<1x1xf32>
    %484 = arith.addf %480, %483 : vector<1x1xf32>
    %485 = math.rsqrt %484 : vector<1x1xf32>
    %486 = vector.broadcast %485 : vector<1x1xf32> to vector<1x64xf32>
    %487 = arith.mulf %482, %486 : vector<1x64xf32>
    %488 = arith.mulf %487, %468 : vector<1x64xf32>
    %489 = arith.addf %488, %469 : vector<1x64xf32>
    %c0_214 = arith.constant 0 : index
    %c0_215 = arith.constant 0 : index
    %490 = vector.load %arg31[%c0_214, %c0_215] : memref<64x32xf32, #tpu.memory_space<vmem>>, vector<64x32xf32>
    %cst_216 = arith.constant dense<0.000000e+00> : vector<1x32xf32>
    %491 = tpu.matmul %489, %490, %cst_216 {dimension_numbers = #tpu.dot_dimension_numbers<[1], [0], [0], [1], [0, 0, 1, 1], [], []>} : vector<1x64xf32>, vector<64x32xf32>, vector<1x32xf32> -> vector<1x32xf32>
    %c0_217 = arith.constant 0 : index
    %c0_218 = arith.constant 0 : index
    %492 = vector.load %arg32[%c0_217, %c0_218] : memref<1x32xf32, #tpu.memory_space<vmem>>, vector<1x32xf32>
    %493 = arith.addf %491, %492 : vector<1x32xf32>
    %c0_219 = arith.constant 0 : index
    %c0_220 = arith.constant 0 : index
    %494 = vector.load %arg33[%c0_219, %c0_220] : memref<1x32xf32, #tpu.memory_space<vmem>>, vector<1x32xf32>
    %c0_221 = arith.constant 0 : index
    %c0_222 = arith.constant 0 : index
    %495 = vector.load %arg34[%c0_221, %c0_222] : memref<1x32xf32, #tpu.memory_space<vmem>>, vector<1x32xf32>
    %cst_223 = arith.constant dense<0.000000e+00> : vector<1xf32>
    %496 = vector.multi_reduction <add>, %493, %cst_223 [1] : vector<1x32xf32> to vector<1xf32>
    %497 = vector.shape_cast %496 : vector<1xf32> to vector<1x1xf32>
    %cst_224 = arith.constant 3.200000e+01 : f32
    %498 = vector.broadcast %cst_224 : f32 to vector<1x1xf32>
    %499 = arith.divf %497, %498 : vector<1x1xf32>
    %500 = vector.broadcast %499 : vector<1x1xf32> to vector<1x32xf32>
    %501 = arith.subf %493, %500 : vector<1x32xf32>
    %502 = arith.mulf %501, %501 : vector<1x32xf32>
    %cst_225 = arith.constant dense<0.000000e+00> : vector<1xf32>
    %503 = vector.multi_reduction <add>, %502, %cst_225 [1] : vector<1x32xf32> to vector<1xf32>
    %504 = vector.shape_cast %503 : vector<1xf32> to vector<1x1xf32>
    %cst_226 = arith.constant 3.200000e+01 : f32
    %505 = vector.broadcast %cst_226 : f32 to vector<1x1xf32>
    %506 = arith.divf %504, %505 : vector<1x1xf32>
    %507 = vector.broadcast %499 : vector<1x1xf32> to vector<1x32xf32>
    %508 = arith.subf %493, %507 : vector<1x32xf32>
    %cst_227 = arith.constant 9.99999974E-6 : f32
    %509 = vector.broadcast %cst_227 : f32 to vector<1x1xf32>
    %510 = arith.addf %506, %509 : vector<1x1xf32>
    %511 = math.rsqrt %510 : vector<1x1xf32>
    %512 = vector.broadcast %511 : vector<1x1xf32> to vector<1x32xf32>
    %513 = arith.mulf %508, %512 : vector<1x32xf32>
    %514 = arith.mulf %513, %494 : vector<1x32xf32>
    %515 = arith.addf %514, %495 : vector<1x32xf32>
    %c0_228 = arith.constant 0 : index
    %c0_229 = arith.constant 0 : index
    %516 = vector.load %arg35[%c0_228, %c0_229] : memref<32x32xf32, #tpu.memory_space<vmem>>, vector<32x32xf32>
    %cst_230 = arith.constant dense<0.000000e+00> : vector<1x32xf32>
    %517 = tpu.matmul %515, %516, %cst_230 {dimension_numbers = #tpu.dot_dimension_numbers<[1], [0], [0], [1], [0, 0, 1, 1], [], []>} : vector<1x32xf32>, vector<32x32xf32>, vector<1x32xf32> -> vector<1x32xf32>
    %c0_231 = arith.constant 0 : index
    %c0_232 = arith.constant 0 : index
    %518 = vector.load %arg36[%c0_231, %c0_232] : memref<1x32xf32, #tpu.memory_space<vmem>>, vector<1x32xf32>
    %519 = arith.addf %517, %518 : vector<1x32xf32>
    %c0_233 = arith.constant 0 : index
    %c0_234 = arith.constant 0 : index
    %520 = vector.load %arg37[%c0_233, %c0_234] : memref<1x32xf32, #tpu.memory_space<vmem>>, vector<1x32xf32>
    %c0_235 = arith.constant 0 : index
    %c0_236 = arith.constant 0 : index
    %521 = vector.load %arg38[%c0_235, %c0_236] : memref<1x32xf32, #tpu.memory_space<vmem>>, vector<1x32xf32>
    %cst_237 = arith.constant dense<0.000000e+00> : vector<1xf32>
    %522 = vector.multi_reduction <add>, %519, %cst_237 [1] : vector<1x32xf32> to vector<1xf32>
    %523 = vector.shape_cast %522 : vector<1xf32> to vector<1x1xf32>
    %cst_238 = arith.constant 3.200000e+01 : f32
    %524 = vector.broadcast %cst_238 : f32 to vector<1x1xf32>
    %525 = arith.divf %523, %524 : vector<1x1xf32>
    %526 = vector.broadcast %525 : vector<1x1xf32> to vector<1x32xf32>
    %527 = arith.subf %519, %526 : vector<1x32xf32>
    %528 = arith.mulf %527, %527 : vector<1x32xf32>
    %cst_239 = arith.constant dense<0.000000e+00> : vector<1xf32>
    %529 = vector.multi_reduction <add>, %528, %cst_239 [1] : vector<1x32xf32> to vector<1xf32>
    %530 = vector.shape_cast %529 : vector<1xf32> to vector<1x1xf32>
    %cst_240 = arith.constant 3.200000e+01 : f32
    %531 = vector.broadcast %cst_240 : f32 to vector<1x1xf32>
    %532 = arith.divf %530, %531 : vector<1x1xf32>
    %533 = vector.broadcast %525 : vector<1x1xf32> to vector<1x32xf32>
    %534 = arith.subf %519, %533 : vector<1x32xf32>
    %cst_241 = arith.constant 9.99999974E-6 : f32
    %535 = vector.broadcast %cst_241 : f32 to vector<1x1xf32>
    %536 = arith.addf %532, %535 : vector<1x1xf32>
    %537 = math.rsqrt %536 : vector<1x1xf32>
    %538 = vector.broadcast %537 : vector<1x1xf32> to vector<1x32xf32>
    %539 = arith.mulf %534, %538 : vector<1x32xf32>
    %540 = arith.mulf %539, %520 : vector<1x32xf32>
    %541 = arith.addf %540, %521 : vector<1x32xf32>
    %c0_242 = arith.constant 0 : index
    %c0_243 = arith.constant 0 : index
    %542 = vector.load %arg39[%c0_242, %c0_243] : memref<32x32xf32, #tpu.memory_space<vmem>>, vector<32x32xf32>
    %cst_244 = arith.constant dense<0.000000e+00> : vector<1x32xf32>
    %543 = tpu.matmul %541, %542, %cst_244 {dimension_numbers = #tpu.dot_dimension_numbers<[1], [0], [0], [1], [0, 0, 1, 1], [], []>} : vector<1x32xf32>, vector<32x32xf32>, vector<1x32xf32> -> vector<1x32xf32>
    %c0_245 = arith.constant 0 : index
    %c0_246 = arith.constant 0 : index
    %544 = vector.load %arg40[%c0_245, %c0_246] : memref<1x32xf32, #tpu.memory_space<vmem>>, vector<1x32xf32>
    %545 = arith.addf %543, %544 : vector<1x32xf32>
    %c0_247 = arith.constant 0 : index
    %c0_248 = arith.constant 0 : index
    %546 = vector.load %arg41[%c0_247, %c0_248] : memref<1x32xf32, #tpu.memory_space<vmem>>, vector<1x32xf32>
    %c0_249 = arith.constant 0 : index
    %c0_250 = arith.constant 0 : index
    %547 = vector.load %arg42[%c0_249, %c0_250] : memref<1x32xf32, #tpu.memory_space<vmem>>, vector<1x32xf32>
    %cst_251 = arith.constant dense<0.000000e+00> : vector<1xf32>
    %548 = vector.multi_reduction <add>, %545, %cst_251 [1] : vector<1x32xf32> to vector<1xf32>
    %549 = vector.shape_cast %548 : vector<1xf32> to vector<1x1xf32>
    %cst_252 = arith.constant 3.200000e+01 : f32
    %550 = vector.broadcast %cst_252 : f32 to vector<1x1xf32>
    %551 = arith.divf %549, %550 : vector<1x1xf32>
    %552 = vector.broadcast %551 : vector<1x1xf32> to vector<1x32xf32>
    %553 = arith.subf %545, %552 : vector<1x32xf32>
    %554 = arith.mulf %553, %553 : vector<1x32xf32>
    %cst_253 = arith.constant dense<0.000000e+00> : vector<1xf32>
    %555 = vector.multi_reduction <add>, %554, %cst_253 [1] : vector<1x32xf32> to vector<1xf32>
    %556 = vector.shape_cast %555 : vector<1xf32> to vector<1x1xf32>
    %cst_254 = arith.constant 3.200000e+01 : f32
    %557 = vector.broadcast %cst_254 : f32 to vector<1x1xf32>
    %558 = arith.divf %556, %557 : vector<1x1xf32>
    %559 = vector.broadcast %551 : vector<1x1xf32> to vector<1x32xf32>
    %560 = arith.subf %545, %559 : vector<1x32xf32>
    %cst_255 = arith.constant 9.99999974E-6 : f32
    %561 = vector.broadcast %cst_255 : f32 to vector<1x1xf32>
    %562 = arith.addf %558, %561 : vector<1x1xf32>
    %563 = math.rsqrt %562 : vector<1x1xf32>
    %564 = vector.broadcast %563 : vector<1x1xf32> to vector<1x32xf32>
    %565 = arith.mulf %560, %564 : vector<1x32xf32>
    %566 = arith.mulf %565, %546 : vector<1x32xf32>
    %567 = arith.addf %566, %547 : vector<1x32xf32>
    %c0_256 = arith.constant 0 : index
    %c0_257 = arith.constant 0 : index
    %568 = vector.load %arg43[%c0_256, %c0_257] : memref<32x32xf32, #tpu.memory_space<vmem>>, vector<32x32xf32>
    %cst_258 = arith.constant dense<0.000000e+00> : vector<1x32xf32>
    %569 = tpu.matmul %567, %568, %cst_258 {dimension_numbers = #tpu.dot_dimension_numbers<[1], [0], [0], [1], [0, 0, 1, 1], [], []>} : vector<1x32xf32>, vector<32x32xf32>, vector<1x32xf32> -> vector<1x32xf32>
    %c0_259 = arith.constant 0 : index
    %c0_260 = arith.constant 0 : index
    %570 = vector.load %arg44[%c0_259, %c0_260] : memref<1x32xf32, #tpu.memory_space<vmem>>, vector<1x32xf32>
    %571 = arith.addf %569, %570 : vector<1x32xf32>
    %c0_261 = arith.constant 0 : index
    %c0_262 = arith.constant 0 : index
    %572 = vector.load %arg45[%c0_261, %c0_262] : memref<1x32xf32, #tpu.memory_space<vmem>>, vector<1x32xf32>
    %c0_263 = arith.constant 0 : index
    %c0_264 = arith.constant 0 : index
    %573 = vector.load %arg46[%c0_263, %c0_264] : memref<1x32xf32, #tpu.memory_space<vmem>>, vector<1x32xf32>
    %cst_265 = arith.constant dense<0.000000e+00> : vector<1xf32>
    %574 = vector.multi_reduction <add>, %571, %cst_265 [1] : vector<1x32xf32> to vector<1xf32>
    %575 = vector.shape_cast %574 : vector<1xf32> to vector<1x1xf32>
    %cst_266 = arith.constant 3.200000e+01 : f32
    %576 = vector.broadcast %cst_266 : f32 to vector<1x1xf32>
    %577 = arith.divf %575, %576 : vector<1x1xf32>
    %578 = vector.broadcast %577 : vector<1x1xf32> to vector<1x32xf32>
    %579 = arith.subf %571, %578 : vector<1x32xf32>
    %580 = arith.mulf %579, %579 : vector<1x32xf32>
    %cst_267 = arith.constant dense<0.000000e+00> : vector<1xf32>
    %581 = vector.multi_reduction <add>, %580, %cst_267 [1] : vector<1x32xf32> to vector<1xf32>
    %582 = vector.shape_cast %581 : vector<1xf32> to vector<1x1xf32>
    %cst_268 = arith.constant 3.200000e+01 : f32
    %583 = vector.broadcast %cst_268 : f32 to vector<1x1xf32>
    %584 = arith.divf %582, %583 : vector<1x1xf32>
    %585 = vector.broadcast %577 : vector<1x1xf32> to vector<1x32xf32>
    %586 = arith.subf %571, %585 : vector<1x32xf32>
    %cst_269 = arith.constant 9.99999974E-6 : f32
    %587 = vector.broadcast %cst_269 : f32 to vector<1x1xf32>
    %588 = arith.addf %584, %587 : vector<1x1xf32>
    %589 = math.rsqrt %588 : vector<1x1xf32>
    %590 = vector.broadcast %589 : vector<1x1xf32> to vector<1x32xf32>
    %591 = arith.mulf %586, %590 : vector<1x32xf32>
    %592 = arith.mulf %591, %572 : vector<1x32xf32>
    %593 = arith.addf %592, %573 : vector<1x32xf32>
    %c0_270 = arith.constant 0 : index
    %c0_271 = arith.constant 0 : index
    %594 = vector.load %arg47[%c0_270, %c0_271] : memref<32x32xf32, #tpu.memory_space<vmem>>, vector<32x32xf32>
    %cst_272 = arith.constant dense<0.000000e+00> : vector<1x32xf32>
    %595 = tpu.matmul %593, %594, %cst_272 {dimension_numbers = #tpu.dot_dimension_numbers<[1], [0], [0], [1], [0, 0, 1, 1], [], []>} : vector<1x32xf32>, vector<32x32xf32>, vector<1x32xf32> -> vector<1x32xf32>
    %c0_273 = arith.constant 0 : index
    %c0_274 = arith.constant 0 : index
    %596 = vector.load %arg48[%c0_273, %c0_274] : memref<1x32xf32, #tpu.memory_space<vmem>>, vector<1x32xf32>
    %597 = arith.addf %595, %596 : vector<1x32xf32>
    %c0_275 = arith.constant 0 : index
    %c0_276 = arith.constant 0 : index
    %598 = vector.load %arg49[%c0_275, %c0_276] : memref<32x8xf32, #tpu.memory_space<vmem>>, vector<32x8xf32>
    %cst_277 = arith.constant dense<0.000000e+00> : vector<1x8xf32>
    %599 = tpu.matmul %597, %598, %cst_277 {dimension_numbers = #tpu.dot_dimension_numbers<[1], [0], [0], [1], [0, 0, 1, 1], [], []>} : vector<1x32xf32>, vector<32x8xf32>, vector<1x8xf32> -> vector<1x8xf32>
    %c0_278 = arith.constant 0 : index
    %c0_279 = arith.constant 0 : index
    %600 = vector.load %arg50[%c0_278, %c0_279] : memref<1x8xf32, #tpu.memory_space<vmem>>, vector<1x8xf32>
    %601 = arith.addf %599, %600 : vector<1x8xf32>
    %cst_280 = arith.constant dense<0xFF800000> : vector<1xf32>
    %602 = vector.multi_reduction <maximumf>, %601, %cst_280 [1] : vector<1x8xf32> to vector<1xf32>
    %603 = vector.shape_cast %602 : vector<1xf32> to vector<1x1xf32>
    %604 = vector.broadcast %603 : vector<1x1xf32> to vector<1x8xf32>
    %605 = arith.subf %601, %604 : vector<1x8xf32>
    %606 = math.exp %605 : vector<1x8xf32>
    %cst_281 = arith.constant dense<0.000000e+00> : vector<1xf32>
    %607 = vector.multi_reduction <add>, %606, %cst_281 [1] : vector<1x8xf32> to vector<1xf32>
    %608 = vector.shape_cast %607 : vector<1xf32> to vector<1x1xf32>
    %609 = vector.broadcast %608 : vector<1x1xf32> to vector<1x8xf32>
    %610 = arith.divf %606, %609 : vector<1x8xf32>
    %c0_282 = arith.constant 0 : index
    %c0_283 = arith.constant 0 : index
    %c0_284 = arith.constant 0 : index
    %611 = vector.load %arg51[%c0_282, %c0_283, %c0_284] : memref<1x1x8xf32, #tpu.memory_space<vmem>>, vector<1x1x8xf32>
    %612 = vector.shape_cast %611 : vector<1x1x8xf32> to vector<1x8xf32>
    %613 = vector.shape_cast %610 : vector<1x8xf32> to vector<1x1x8xf32>
    tpu.vector_store %arg51[%c0_282, %c0_283, %c0_284], %613 {strides = array<i32>} : memref<1x1x8xf32, #tpu.memory_space<vmem>>, vector<1x1x8xf32>,
    return
  }
  func.func @transform_0(%arg0: i32) -> (i32, i32, i32) {
    %c0_i32 = arith.constant 0 : i32
    %c0_i32_0 = arith.constant 0 : i32
    %c0_i32_1 = arith.constant 0 : i32
    return %arg0, %c0_i32, %c0_i32_0 : i32, i32, i32
  }
  func.func @transform_1(%arg0: i32) -> (i32, i32) {
    %c0_i32 = arith.constant 0 : i32
    %c0_i32_0 = arith.constant 0 : i32
    %c0_i32_1 = arith.constant 0 : i32
    return %c0_i32, %c0_i32_0 : i32, i32
  }
  func.func @transform_2(%arg0: i32) -> (i32, i32) {
    %c0_i32 = arith.constant 0 : i32
    %c0_i32_0 = arith.constant 0 : i32
    %c0_i32_1 = arith.constant 0 : i32
    return %c0_i32, %c0_i32_0 : i32, i32
  }
  func.func @transform_3(%arg0: i32) -> (i32, i32) {
    %c0_i32 = arith.constant 0 : i32
    %c0_i32_0 = arith.constant 0 : i32
    %c0_i32_1 = arith.constant 0 : i32
    return %c0_i32, %c0_i32_0 : i32, i32
  }
  func.func @transform_4(%arg0: i32) -> (i32, i32) {
    %c0_i32 = arith.constant 0 : i32
    %c0_i32_0 = arith.constant 0 : i32
    %c0_i32_1 = arith.constant 0 : i32
    return %c0_i32, %c0_i32_0 : i32, i32
  }
  func.func @transform_5(%arg0: i32) -> (i32, i32) {
    %c0_i32 = arith.constant 0 : i32
    %c0_i32_0 = arith.constant 0 : i32
    %c0_i32_1 = arith.constant 0 : i32
    return %c0_i32, %c0_i32_0 : i32, i32
  }
  func.func @transform_6(%arg0: i32) -> (i32, i32) {
    %c0_i32 = arith.constant 0 : i32
    %c0_i32_0 = arith.constant 0 : i32
    %c0_i32_1 = arith.constant 0 : i32
    return %c0_i32, %c0_i32_0 : i32, i32
  }
  func.func @transform_7(%arg0: i32) -> (i32, i32) {
    %c0_i32 = arith.constant 0 : i32
    %c0_i32_0 = arith.constant 0 : i32
    %c0_i32_1 = arith.constant 0 : i32
    return %c0_i32, %c0_i32_0 : i32, i32
  }
  func.func @transform_8(%arg0: i32) -> (i32, i32) {
    %c0_i32 = arith.constant 0 : i32
    %c0_i32_0 = arith.constant 0 : i32
    %c0_i32_1 = arith.constant 0 : i32
    return %c0_i32, %c0_i32_0 : i32, i32
  }
  func.func @transform_9(%arg0: i32) -> (i32, i32) {
    %c0_i32 = arith.constant 0 : i32
    %c0_i32_0 = arith.constant 0 : i32
    %c0_i32_1 = arith.constant 0 : i32
    return %c0_i32, %c0_i32_0 : i32, i32
  }
  func.func @transform_10(%arg0: i32) -> (i32, i32) {
    %c0_i32 = arith.constant 0 : i32
    %c0_i32_0 = arith.constant 0 : i32
    %c0_i32_1 = arith.constant 0 : i32
    return %c0_i32, %c0_i32_0 : i32, i32
  }
  func.func @transform_11(%arg0: i32) -> (i32, i32) {
    %c0_i32 = arith.constant 0 : i32
    %c0_i32_0 = arith.constant 0 : i32
    %c0_i32_1 = arith.constant 0 : i32
    return %c0_i32, %c0_i32_0 : i32, i32
  }
  func.func @transform_12(%arg0: i32) -> (i32, i32) {
    %c0_i32 = arith.constant 0 : i32
    %c0_i32_0 = arith.constant 0 : i32
    %c0_i32_1 = arith.constant 0 : i32
    return %c0_i32, %c0_i32_0 : i32, i32
  }
  func.func @transform_13(%arg0: i32) -> (i32, i32) {
    %c0_i32 = arith.constant 0 : i32
    %c0_i32_0 = arith.constant 0 : i32
    %c0_i32_1 = arith.constant 0 : i32
    return %c0_i32, %c0_i32_0 : i32, i32
  }
  func.func @transform_14(%arg0: i32) -> (i32, i32) {
    %c0_i32 = arith.constant 0 : i32
    %c0_i32_0 = arith.constant 0 : i32
    %c0_i32_1 = arith.constant 0 : i32
    return %c0_i32, %c0_i32_0 : i32, i32
  }
  func.func @transform_15(%arg0: i32) -> (i32, i32) {
    %c0_i32 = arith.constant 0 : i32
    %c0_i32_0 = arith.constant 0 : i32
    %c0_i32_1 = arith.constant 0 : i32
    return %c0_i32, %c0_i32_0 : i32, i32
  }
  func.func @transform_16(%arg0: i32) -> (i32, i32) {
    %c0_i32 = arith.constant 0 : i32
    %c0_i32_0 = arith.constant 0 : i32
    %c0_i32_1 = arith.constant 0 : i32
    return %c0_i32, %c0_i32_0 : i32, i32
  }
  func.func @transform_17(%arg0: i32) -> (i32, i32) {
    %c0_i32 = arith.constant 0 : i32
    %c0_i32_0 = arith.constant 0 : i32
    %c0_i32_1 = arith.constant 0 : i32
    return %c0_i32, %c0_i32_0 : i32, i32
  }
  func.func @transform_18(%arg0: i32) -> (i32, i32) {
    %c0_i32 = arith.constant 0 : i32
    %c0_i32_0 = arith.constant 0 : i32
    %c0_i32_1 = arith.constant 0 : i32
    return %c0_i32, %c0_i32_0 : i32, i32
  }
  func.func @transform_19(%arg0: i32) -> (i32, i32) {
    %c0_i32 = arith.constant 0 : i32
    %c0_i32_0 = arith.constant 0 : i32
    %c0_i32_1 = arith.constant 0 : i32
    return %c0_i32, %c0_i32_0 : i32, i32
  }
  func.func @transform_20(%arg0: i32) -> (i32, i32) {
    %c0_i32 = arith.constant 0 : i32
    %c0_i32_0 = arith.constant 0 : i32
    %c0_i32_1 = arith.constant 0 : i32
    return %c0_i32, %c0_i32_0 : i32, i32
  }
  func.func @transform_21(%arg0: i32) -> (i32, i32) {
    %c0_i32 = arith.constant 0 : i32
    %c0_i32_0 = arith.constant 0 : i32
    %c0_i32_1 = arith.constant 0 : i32
    return %c0_i32, %c0_i32_0 : i32, i32
  }
  func.func @transform_22(%arg0: i32) -> (i32, i32) {
    %c0_i32 = arith.constant 0 : i32
    %c0_i32_0 = arith.constant 0 : i32
    %c0_i32_1 = arith.constant 0 : i32
    return %c0_i32, %c0_i32_0 : i32, i32
  }
  func.func @transform_23(%arg0: i32) -> (i32, i32) {
    %c0_i32 = arith.constant 0 : i32
    %c0_i32_0 = arith.constant 0 : i32
    %c0_i32_1 = arith.constant 0 : i32
    return %c0_i32, %c0_i32_0 : i32, i32
  }
  func.func @transform_24(%arg0: i32) -> (i32, i32) {
    %c0_i32 = arith.constant 0 : i32
    %c0_i32_0 = arith.constant 0 : i32
    %c0_i32_1 = arith.constant 0 : i32
    return %c0_i32, %c0_i32_0 : i32, i32
  }
  func.func @transform_25(%arg0: i32) -> (i32, i32) {
    %c0_i32 = arith.constant 0 : i32
    %c0_i32_0 = arith.constant 0 : i32
    %c0_i32_1 = arith.constant 0 : i32
    return %c0_i32, %c0_i32_0 : i32, i32
  }
  func.func @transform_26(%arg0: i32) -> (i32, i32) {
    %c0_i32 = arith.constant 0 : i32
    %c0_i32_0 = arith.constant 0 : i32
    %c0_i32_1 = arith.constant 0 : i32
    return %c0_i32, %c0_i32_0 : i32, i32
  }
  func.func @transform_27(%arg0: i32) -> (i32, i32) {
    %c0_i32 = arith.constant 0 : i32
    %c0_i32_0 = arith.constant 0 : i32
    %c0_i32_1 = arith.constant 0 : i32
    return %c0_i32, %c0_i32_0 : i32, i32
  }
  func.func @transform_28(%arg0: i32) -> (i32, i32) {
    %c0_i32 = arith.constant 0 : i32
    %c0_i32_0 = arith.constant 0 : i32
    %c0_i32_1 = arith.constant 0 : i32
    return %c0_i32, %c0_i32_0 : i32, i32
  }
  func.func @transform_29(%arg0: i32) -> (i32, i32) {
    %c0_i32 = arith.constant 0 : i32
    %c0_i32_0 = arith.constant 0 : i32
    %c0_i32_1 = arith.constant 0 : i32
    return %c0_i32, %c0_i32_0 : i32, i32
  }
  func.func @transform_30(%arg0: i32) -> (i32, i32) {
    %c0_i32 = arith.constant 0 : i32
    %c0_i32_0 = arith.constant 0 : i32
    %c0_i32_1 = arith.constant 0 : i32
    return %c0_i32, %c0_i32_0 : i32, i32
  }
  func.func @transform_31(%arg0: i32) -> (i32, i32) {
    %c0_i32 = arith.constant 0 : i32
    %c0_i32_0 = arith.constant 0 : i32
    %c0_i32_1 = arith.constant 0 : i32
    return %c0_i32, %c0_i32_0 : i32, i32
  }
  func.func @transform_32(%arg0: i32) -> (i32, i32) {
    %c0_i32 = arith.constant 0 : i32
    %c0_i32_0 = arith.constant 0 : i32
    %c0_i32_1 = arith.constant 0 : i32
    return %c0_i32, %c0_i32_0 : i32, i32
  }
  func.func @transform_33(%arg0: i32) -> (i32, i32) {
    %c0_i32 = arith.constant 0 : i32
    %c0_i32_0 = arith.constant 0 : i32
    %c0_i32_1 = arith.constant 0 : i32
    return %c0_i32, %c0_i32_0 : i32, i32
  }
  func.func @transform_34(%arg0: i32) -> (i32, i32) {
    %c0_i32 = arith.constant 0 : i32
    %c0_i32_0 = arith.constant 0 : i32
    %c0_i32_1 = arith.constant 0 : i32
    return %c0_i32, %c0_i32_0 : i32, i32
  }
  func.func @transform_35(%arg0: i32) -> (i32, i32) {
    %c0_i32 = arith.constant 0 : i32
    %c0_i32_0 = arith.constant 0 : i32
    %c0_i32_1 = arith.constant 0 : i32
    return %c0_i32, %c0_i32_0 : i32, i32
  }
  func.func @transform_36(%arg0: i32) -> (i32, i32) {
    %c0_i32 = arith.constant 0 : i32
    %c0_i32_0 = arith.constant 0 : i32
    %c0_i32_1 = arith.constant 0 : i32
    return %c0_i32, %c0_i32_0 : i32, i32
  }
  func.func @transform_37(%arg0: i32) -> (i32, i32) {
    %c0_i32 = arith.constant 0 : i32
    %c0_i32_0 = arith.constant 0 : i32
    %c0_i32_1 = arith.constant 0 : i32
    return %c0_i32, %c0_i32_0 : i32, i32
  }
  func.func @transform_38(%arg0: i32) -> (i32, i32) {
    %c0_i32 = arith.constant 0 : i32
    %c0_i32_0 = arith.constant 0 : i32
    %c0_i32_1 = arith.constant 0 : i32
    return %c0_i32, %c0_i32_0 : i32, i32
  }
  func.func @transform_39(%arg0: i32) -> (i32, i32) {
    %c0_i32 = arith.constant 0 : i32
    %c0_i32_0 = arith.constant 0 : i32
    %c0_i32_1 = arith.constant 0 : i32
    return %c0_i32, %c0_i32_0 : i32, i32
  }
  func.func @transform_40(%arg0: i32) -> (i32, i32) {
    %c0_i32 = arith.constant 0 : i32
    %c0_i32_0 = arith.constant 0 : i32
    %c0_i32_1 = arith.constant 0 : i32
    return %c0_i32, %c0_i32_0 : i32, i32
  }
  func.func @transform_41(%arg0: i32) -> (i32, i32) {
    %c0_i32 = arith.constant 0 : i32
    %c0_i32_0 = arith.constant 0 : i32
    %c0_i32_1 = arith.constant 0 : i32
    return %c0_i32, %c0_i32_0 : i32, i32
  }
  func.func @transform_42(%arg0: i32) -> (i32, i32) {
    %c0_i32 = arith.constant 0 : i32
    %c0_i32_0 = arith.constant 0 : i32
    %c0_i32_1 = arith.constant 0 : i32
    return %c0_i32, %c0_i32_0 : i32, i32
  }
  func.func @transform_43(%arg0: i32) -> (i32, i32) {
    %c0_i32 = arith.constant 0 : i32
    %c0_i32_0 = arith.constant 0 : i32
    %c0_i32_1 = arith.constant 0 : i32
    return %c0_i32, %c0_i32_0 : i32, i32
  }
  func.func @transform_44(%arg0: i32) -> (i32, i32) {
    %c0_i32 = arith.constant 0 : i32
    %c0_i32_0 = arith.constant 0 : i32
    %c0_i32_1 = arith.constant 0 : i32
    return %c0_i32, %c0_i32_0 : i32, i32
  }
  func.func @transform_45(%arg0: i32) -> (i32, i32) {
    %c0_i32 = arith.constant 0 : i32
    %c0_i32_0 = arith.constant 0 : i32
    %c0_i32_1 = arith.constant 0 : i32
    return %c0_i32, %c0_i32_0 : i32, i32
  }
  func.func @transform_46(%arg0: i32) -> (i32, i32) {
    %c0_i32 = arith.constant 0 : i32
    %c0_i32_0 = arith.constant 0 : i32
    %c0_i32_1 = arith.constant 0 : i32
    return %c0_i32, %c0_i32_0 : i32, i32
  }
  func.func @transform_47(%arg0: i32) -> (i32, i32) {
    %c0_i32 = arith.constant 0 : i32
    %c0_i32_0 = arith.constant 0 : i32
    %c0_i32_1 = arith.constant 0 : i32
    return %c0_i32, %c0_i32_0 : i32, i32
  }
  func.func @transform_48(%arg0: i32) -> (i32, i32) {
    %c0_i32 = arith.constant 0 : i32
    %c0_i32_0 = arith.constant 0 : i32
    %c0_i32_1 = arith.constant 0 : i32
    return %c0_i32, %c0_i32_0 : i32, i32
  }
  func.func @transform_49(%arg0: i32) -> (i32, i32) {
    %c0_i32 = arith.constant 0 : i32
    %c0_i32_0 = arith.constant 0 : i32
    %c0_i32_1 = arith.constant 0 : i32
    return %c0_i32, %c0_i32_0 : i32, i32
  }
  func.func @transform_50(%arg0: i32) -> (i32, i32, i32) {
    %c0_i32 = arith.constant 0 : i32
    %c0_i32_0 = arith.constant 0 : i32
    %c0_i32_1 = arith.constant 0 : i32
    return %arg0, %c0_i32, %c0_i32_0 : i32, i32, i32
  }
}

</mosaic_0001>

<bundles_post_ra>
// kernel: forward.1
= control target key start
LH: loop header
LB: loop body
LE: loop exit
PB: predicated region body
PF: predicated region fallthrough
CT: control target
= control target key end

     0   :  { %s6489_s6 = smov 1   ;;  %s6490_s10 = smov 2   ;;  %s7847_s0 = inlined_call_operand.smem [shape: u32[51], index: -1, kind: input, shape index: {}] }
   0x1   :  { %s6593_s5 = sld [smem:[%s7847_s0]]   ;;  %s6491_s14 = smov 3  }
   0x2   :  { %s6598_s9 = sld [smem:[%s7847_s0 + %s6489_s6]]   ;;  %s6492_s18 = smov 4  }
   0x3   :  { %s6603_s13 = sld [smem:[%s7847_s0 + %s6490_s10]]   ;;  %s6493_s22 = smov 5  }
   0x4   :  { %s6608_s17 = sld [smem:[%s7847_s0 + %s6491_s14]]   ;;  %s6494_s26 = smov 6  }
   0x5   :  { %s6613_s21 = sld [smem:[%s7847_s0 + %s6492_s18]]   ;;  %s6495_s30 = smov 7  }
   0x6   :  { %s6618_s25 = sld [smem:[%s7847_s0 + %s6493_s22]]   ;;  %s6496_s4 = smov 8  }
   0x7   :  { %7924 = sst [smem:[#allocation72_spill]] %s6593_s5  ;;  %s6497_s10 = smov 9  }
   0x8   :  { %7925 = sst [smem:[#allocation73_spill]] %s6598_s9  ;;  %s6498_s15 = smov 10  }
   0x9   :  { %7926 = sst [smem:[#allocation74_spill]] %s6603_s13  ;;  %s6499_s20 = smov 11  }
   0xa   :  { %7927 = sst [smem:[#allocation75_spill]] %s6608_s17  ;;  %s6501_s1 = smov 13  }
   0xb   :  { %7928 = sst [smem:[#allocation76_spill]] %s6613_s21  ;;  %s6502_s7 = smov 14  }
   0xc   :  { %7929 = sst [smem:[#allocation77_spill]] %s6618_s25  ;;  %s6504_s22 = smov 16  }
   0xd   :  { %s6623_s29 = sld [smem:[%s7847_s0 + %s6494_s26]]   ;;  %s6500_s26 = smov 12  }
   0xe   :  { %s6628_s3 = sld [smem:[%s7847_s0 + %s6495_s30]]   ;;  %s6505_s28 = smov 17  }
   0xf   :  { %s6633_s8 = sld [smem:[%s7847_s0 + %s6496_s4]]  }
  0x10   :  { %s6638_s14 = sld [smem:[%s7847_s0 + %s6497_s10]]  }
  0x11   :  { %s6643_s19 = sld [smem:[%s7847_s0 + %s6498_s15]]   ;;  %s6503_s15 = smov 15  }
  0x12   :  { %s6648_s24 = sld [smem:[%s7847_s0 + %s6499_s20]]  }
  0x13   :  { %7930 = sst [smem:[#allocation78_spill]] %s6623_s29 }
  0x14   :  { %7931 = sst [smem:[#allocation79_spill]] %s6628_s3 }
  0x15   :  { %7932 = sst [smem:[#allocation80_spill]] %s6633_s8 }
  0x16   :  { %7933 = sst [smem:[#allocation81_spill]] %s6638_s14 }
  0x17   :  { %s6653_s30 = sld [smem:[%s7847_s0 + %s6500_s26]]  }
  0x18   :  { %7934 = sst [smem:[#allocation82_spill]] %s6648_s24 }
  0x19   :  { %s6658_s6 = sld [smem:[%s7847_s0 + %s6501_s1]]  }
  0x1a   :  { %s6663_s12 = sld [smem:[%s7847_s0 + %s6502_s7]]   ;;  %s6506_s7 = smov 18  }
  0x1b   :  { %s6668_s20 = sld [smem:[%s7847_s0 + %s6503_s15]]   ;;  %s6507_s15 = smov 19  }
  0x1c   :  { %s6673_s27 = sld [smem:[%s7847_s0 + %s6504_s22]]   ;;  %s6508_s22 = smov 20  }
  0x1d   :  { %7935 = sst [smem:[#allocation83_spill]] %s6653_s30 }
  0x1e   :  { %s6678_s4 = sld [smem:[%s7847_s0 + %s6505_s28]]   ;;  %s6509_s28 = smov 21  }
  0x1f   :  { %7936 = sst [smem:[#allocation84_spill]] %s6658_s6 }
  0x20   :  { %7937 = sst [smem:[#allocation85_spill]] %s6663_s12 }
  0x21   :  { %7938 = sst [smem:[#allocation86_spill]] %s6668_s20 }
  0x22   :  { %s6683_s6 = sld [smem:[%s7847_s0 + %s6506_s7]]   ;;  %s6510_s7 = smov 22  }
  0x23   :  { %s6688_s20 = sld [smem:[%s7847_s0 + %s6507_s15]]   ;;  %s6511_s15 = smov 23  }
  0x24   :  { %7939 = sst [smem:[#allocation87_spill]] %s6678_s4 }
  0x25   :  { %s6693_s12 = sld [smem:[%s7847_s0 + %s6508_s22]]   ;;  %s6512_s22 = smov 24  }
  0x26   :  { %s6698_s30 = sld [smem:[%s7847_s0 + %s6509_s28]]   ;;  %s6513_s28 = smov 25  }
  0x28   :  { %7940 = sst [smem:[#allocation88_spill]] %s6683_s6 }
  0x29   :  { %7941 = sst [smem:[#allocation89_spill]] %s6688_s20 }
  0x2a   :  { %s6703_s6 = sld [smem:[%s7847_s0 + %s6510_s7]]   ;;  %s6514_s7 = smov 26  }
  0x2b   :  { %7942 = sst [smem:[#allocation90_spill]] %s6693_s12 }
  0x2c   :  { %7943 = sst [smem:[#allocation91_spill]] %s6698_s30 }
  0x2d   :  { %s6708_s20 = sld [smem:[%s7847_s0 + %s6511_s15]]   ;;  %s6515_s15 = smov 27  }
  0x2e   :  { %s6713_s12 = sld [smem:[%s7847_s0 + %s6512_s22]]   ;;  %s6516_s22 = smov 28  }
  0x2f   :  { %s6718_s30 = sld [smem:[%s7847_s0 + %s6513_s28]]   ;;  %s6517_s28 = smov 29  }
  0x30   :  { %7944 = sst [smem:[#allocation92_spill]] %s6703_s6 }
  0x31   :  { %s6723_s8 = sld [smem:[%s7847_s0 + %s6514_s7]]   ;;  %s6518_s7 = smov 30  }
  0x32   :  { %s6728_s29 = sld [smem:[%s7847_s0 + %s6515_s15]]   ;;  %s6519_s15 = smov 31  }
  0x33   :  { %7945 = sst [smem:[#allocation93_spill]] %s6708_s20 }
  0x34   :  { %s6733_s13 = sld [smem:[%s7847_s0 + %s6516_s22]]   ;;  %s6520_s22 = smov 32  }
  0x35   :  { %7946 = sst [smem:[#allocation94_spill]] %s6718_s30 }
  0x36   :  { %s6738_s5 = sld [smem:[%s7847_s0 + %s6517_s28]]   ;;  %s6521_s28 = smov 33  }
  0x37   :  { %7947 = sst [smem:[#allocation95_spill]] %s6723_s8 }
  0x38   :  { %s6743_s8 = sld [smem:[%s7847_s0 + %s6518_s7]]   ;;  %s6522_s7 = smov 34  }
  0x39   :  { %s6748_s9 = sld [smem:[%s7847_s0 + %s6519_s15]]   ;;  %s6523_s15 = smov 35  }
  0x3a   :  { %7948 = sst [smem:[#allocation96_spill]] %s6733_s13 }
  0x3b   :  { %s6753_s13 = sld [smem:[%s7847_s0 + %s6520_s22]]   ;;  %s6524_s22 = smov 36  }
  0x3c   :  { %7949 = sst [smem:[#allocation97_spill]] %s6738_s5 }
  0x3d   :  { %s6758_s30 = sld [smem:[%s7847_s0 + %s6521_s28]]   ;;  %s6525_s28 = smov 37  }
  0x3e   :  { %7950 = sst [smem:[#allocation98_spill]] %s6743_s8 }
  0x3f   :  { %7951 = sst [smem:[#allocation99_spill]] %s6748_s9 }
  0x40   :  { %s6763_s8 = sld [smem:[%s7847_s0 + %s6522_s7]]   ;;  %s6526_s7 = smov 38  }
  0x41   :  { %s6768_s9 = sld [smem:[%s7847_s0 + %s6523_s15]]   ;;  %s6527_s15 = smov 39  }
  0x42   :  { %s6773_s20 = sld [smem:[%s7847_s0 + %s6524_s22]]   ;;  %s6528_s22 = smov 40  }
  0x43   :  { %7952 = sst [smem:[#allocation100_spill]] %s6758_s30 }
  0x44   :  { %s6778_s30 = sld [smem:[%s7847_s0 + %s6525_s28]]   ;;  %s6529_s28 = smov 41  }
  0x45   :  { %s6783_s4 = sld [smem:[%s7847_s0 + %s6526_s7]]   ;;  %s6530_s7 = smov 42  }
  0x46   :  { %7953 = sst [smem:[#allocation101_spill]] %s6763_s8 }
  0x47   :  { %7954 = sst [smem:[#allocation102_spill]] %s6768_s9 }
  0x48   :  { %s6788_s9 = sld [smem:[%s7847_s0 + %s6527_s15]]   ;;  %s6531_s15 = smov 43  }
  0x49   :  { %s6793_s24 = sld [smem:[%s7847_s0 + %s6528_s22]]   ;;  %s6532_s22 = smov 44  }
  0x4a   :  { %7955 = sst [smem:[#allocation103_spill]] %s6778_s30 }
  0x4b   :  { %7956 = sst [smem:[#allocation104_spill]] %s6783_s4 }
  0x4c   :  { %s6798_s30 = sld [smem:[%s7847_s0 + %s6529_s28]]   ;;  %s6533_s28 = smov 45  }
  0x4d   :  { %s6803_s14 = sld [smem:[%s7847_s0 + %s6530_s7]]   ;;  %s6534_s7 = smov 46  }
  0x4e   :  { %7957 = sst [smem:[#allocation105_spill]] %s6788_s9 }
  0x4f   :  { %s6808_s9 = sld [smem:[%s7847_s0 + %s6531_s15]]   ;;  %s6535_s15 = smov 47  }
  0x50   :  { %s6813_s25 = sld [smem:[%s7847_s0 + %s6532_s22]]   ;;  %s6536_s22 = smov 48  }
  0x51   :  { %s6828_s17 = sld [smem:[%s7847_s0 + %s6535_s15]]  }
  0x52   :  { %7958 = sst [smem:[#allocation106_spill]] %s6798_s30 }
  0x53   :  { %7959 = sst [smem:[#allocation107_spill]] %s6803_s14 }
  0x54   :  { %s6818_s30 = sld [smem:[%s7847_s0 + %s6533_s28]]   ;;  %s6537_s28 = smov 49  }
  0x55   :  { %s6823_s14 = sld [smem:[%s7847_s0 + %s6534_s7]]   ;;  %s6538_s7 = smov 50  }
  0x56   :  { %7960 = sst [smem:[#allocation108_spill]] %s6813_s25 }
  0x57   :  { %s6833_s25 = sld [smem:[%s7847_s0 + %s6536_s22]]  }
  0x5a   :  { %7961 = sst [smem:[#allocation109_spill]] %s6818_s30 }
  0x5b   :  { %7962 = sst [smem:[#allocation110_spill]] %s6823_s14 }
  0x5c   :  { %s6838_s30 = sld [smem:[%s7847_s0 + %s6537_s28]]  }
  0x5d   :  { %s6843_s14 = sld [smem:[%s7847_s0 + %s6538_s7]]  }
  0x5e   :  { %106 = vsyncpa [#allocation3], 0 }
  0x5f   :  { %107 = vsyncpa [#allocation6], 0 }
  0x60   :  { %108 = vsyncpa [#allocation9], 0 }
  0x61   :  { %109 = vsyncpa [#allocation12], 0 }
  0x62   :  { %110 = vsyncpa [#allocation15], 0 }
  0x63   :  { %111 = vsyncpa [#allocation18], 0 }
  0x64   :  { %112 = vsyncpa [#allocation21], 0 }
  0x65   :  { %113 = vsyncpa [#allocation24], 0 }
  0x66   :  { %114 = vsyncpa [#allocation27], 0 }
  0x67   :  { %115 = vsyncpa [#allocation30], 0 }
  0x68   :  { %116 = vsyncpa [#allocation33], 0 }
  0x69   :  { %117 = vsyncpa [#allocation36], 0 }
  0x6a   :  { %118 = vsyncpa [#allocation39], 0 }
  0x6b   :  { %119 = vsyncpa [#allocation42], 0 }
  0x6c   :  { %120 = vsyncpa [#allocation45], 0 }
  0x6d   :  { %121 = vsyncpa [#allocation48], 0 }
  0x6e   :  { %122 = vsyncpa [#allocation51], 0 }
  0x6f   :  { %123 = vsyncpa [#allocation4], 0 }
  0x70   :  { %125 = vsyncpa [#allocation4 + $0x1], 0  ;;  %s6845_s0 = smov 0   ;;  %s6847_s15 = smov 0  }
  0x71   :  { %s6849_s16 = smov 0   ;;  %s6851_s18 = smov 0  }
  0x72 LB: > { %s7963_s8 = sld [smem:[#allocation101_spill]]  ;;  %s6866_s22 = sadd.s32 4294967295, %s6487_s18   ;;  %s6479_s15 = sphi %s6847_s15, %s8036_s15   ;;  %s6475_s0 = sphi %s6845_s0, %s8035_s0   ;;  %s6487_s18 = sphi %s6851_s18, %s8032_s18   ;;  %s6483_s16 = sphi %s6849_s16, %s8034_s16  }
  0x73   : > { %s7964_s6 = sld [smem:[#allocation92_spill]]  ;;  %s4754_s23 = sadd.s32 4294967294, %s6487_s18  }
  0x74   : > { %s7965_s5 = sld [smem:[#allocation97_spill]]  ;;  %s6870_s26 = sadd.s32 1, %s6487_s18  }
  0x75   : > { %s7966_s4 = sld [smem:[#allocation104_spill]]  ;;  %s1193_s28 = sadd.s32 1, %s6483_s16 }
  0x76   : > { %s7967_s3 = sld [smem:[#allocation79_spill]]  ;;  %s1190_s1 = ssub.s32 %s6487_s18, %s6870_s26 }
  0x77   : > { %s7968_s21 = sld [smem:[#allocation76_spill]]  ;;  %p1203_p0 = scmp.ne.s32.totalorder %s6483_s16, %s6479_s15 }
  0x78   : > { %7969 = sst [smem:[#allocation111_spill]] %s6475_s0  ;;  %p1191_p1 = scmp.eq.s32.totalorder %s1190_s1, 0 }
  0x79   : > { %7970 = sst [smem:[#allocation112_spill]] %s6483_s16  ;;  %p1204_p2 = scmp.eq.s32.totalorder %s6866_s22, 1 }
  0x7a   : > { %7971 = sst [smem:[#allocation113_spill]] %s6487_s18  ;;  %p1209_p3 = scmp.ne.s32.totalorder %s6479_s15, %s6475_s0 }
  0x7b   : > { %7972 = sst [smem:[#allocation114_spill]] %s6870_s26  ;;  %p1210_p4 = scmp.eq.s32.totalorder %s4754_s23, 1 }
  0x7c   : > { %s6881_s2 = scalar_select %p1191_p1, %s6483_s16, %s1193_s28  }
  0x7d   : > { %p6883_p5 = por %p1204_p2, %p1203_p0  ;;  %p6887_p6 = por %p1210_p4, %p1209_p3 }
  0x7e   : > { %7973 = sst [smem:[#allocation115_spill]] %s6881_s2  ;;  %p4755_p7 = scmp.ge.s32.totalorder %s6487_s18, 1 }
  0x7f   : > { %s7974_s7 = scalar_select %p6883_p5, 1, 0 }
  0x80   : > { %s7976_s10 = scalar_select %p6887_p6, 1, 0 }
  0x81   : > { %7975 = sst [smem:[#allocation116_spill]] %s7974_s7  ;;  %p1217_p8 = scmp.lt.s32.totalorder %s6487_s18, 3 }
  0x82   : > { %7977 = sst [smem:[#allocation117_spill]] %s7976_s10 }
  0x83   : > { %p6893_p9 = pnand %p4755_p7, %p1217_p8 }
  0x84   : > { %p5079_p10 = scmp.eq.s32.totalorder (!%p6893_p9), %s6866_s22, 0  ;;  %s1248_s23 = sshll.u32 (!%p6893_p9), %s7968_s21, 4  ;;  %s1249_s23 = int_to_ptr.hbm [resolvable:$true] %s1248_s23 }
  0x85   : > { %1221 = sbr.rel (%p6893_p9) target bundleno = 569 (0x239), region = 12  ;;  %s6539_s28 = smov (!%p6893_p9), [#allocation5]  }
  0x86   : > { %s1250_s1 = sshll.u32 (!%p6893_p9), %s6539_s28, 4  ;;  %s1280_s2 = sshll.u32 (!%p6893_p9), %s7967_s3, 4  ;;  %s1251_s1 = int_to_ptr.vmem [resolvable:$true] %s1250_s1  ;;  %s6902_s2 = int_to_ptr.hbm [resolvable:$true] %s1280_s2 }
  0x87   : > { %s5433_s16 = sshra.s32 (!%p6893_p9), %s1249_s23, 4  ;;  %s5439_s10 = scalar_lea.hbm (!%p6893_p9), %s7968_s21, 16  ;;  %s5434_s16 = int_to_ptr.hbm [resolvable:$true] %s5433_s16 }
  0x88   : > { %s5435_s26 = scalar_lea.hbm (!%p6893_p9), %s5434_s16, 16  ;;  %p5440_p0 = scmp.lt.s32.totalorder (!%p6893_p9), %s5434_s16, %s7968_s21 }
  0x89   : > { %p5436_p11 = scmp.ne.s32.totalorder (!%p6893_p9), %s5434_s16, %s5435_s26  ;;  %p5441_p1 = scmp.lt.s32.totalorder (!%p6893_p9), %s5439_s10, %s5435_s26 }
  0x8b   : > { %p5437_p12 = pnand %p5436_p11, %p5079_p10  ;;  %p5442_p2 = por %p5441_p1, %p5440_p0 }
  0x8d   : > { %p5438_p13 = pneg %p5437_p12 }
  0x8f   : > { %p5443_p3 = pnand %p5442_p2, %p5438_p13 }
  0x91   : > { %5446 = shalt.err (!%p5443_p3)
}
  0x92   : > { %s7884_s0 = smov 128   ;;  %s7886_s28 = smov 8  }
  0x93   : > { %4944 = dma.hbm_to_vmem [thread:$0]  (%p5079_p10), %s1249_s23, 256, %s1251_s1, [#allocation6], %s7884_s0, %s7884_s0, %s7886_s28  }
  0x94   : > { %s1306_s18 = sshll.u32 %s6643_s19, 4  ;;  %s6542_s7 = smov [#allocation8]   ;;  %s6914_s18 = int_to_ptr.hbm [resolvable:$true] %s1306_s18 }
  0x95   : > { %s1282_s16 = sshll.u32 %s6542_s7, 4  ;;  %s5461_s26 = sshra.s32 %s6902_s2, 4  ;;  %s1283_s16 = int_to_ptr.vmem [resolvable:$true] %s1282_s16  ;;  %s5462_s26 = int_to_ptr.hbm [resolvable:$true] %s5461_s26 }
  0x96   : > { %s5463_s10 = scalar_lea.hbm %s5462_s26, 2  ;;  %s5467_s21 = scalar_lea.hbm %s7967_s3, 2 }
  0x97   : > { %p5464_p4 = scmp.ne.s32.totalorder %s5462_s26, %s5463_s10  ;;  %p5468_p11 = scmp.lt.s32.totalorder %s5462_s26, %s7967_s3 }
  0x98   : > { %p5469_p12 = scmp.lt.s32.totalorder %s5467_s21, %s5463_s10 }
  0x99   : > { %p5465_p7 = pnand %p5464_p4, %p5079_p10 }
  0x9a   : > { %p5470_p13 = por %p5469_p12, %p5468_p11 }
  0x9b   : > { %p5466_p8 = pneg %p5465_p7 }
  0x9d   : > { %p5471_p0 = pnand %p5470_p13, %p5466_p8 }
  0x9f   : > { %5474 = shalt.err (!%p5471_p0)
}
  0xa0   : > { %4948 = dma.hbm_to_vmem [thread:$0]  (%p5079_p10), %s6902_s2, 32, %s1283_s16, [#allocation9]  }
  0xa1   : > { %s6543_s7 = smov [#allocation11]   ;;  %s1346_s1 = sshll.u32 %s6673_s27, 4  ;;  %s6925_s1 = int_to_ptr.hbm [resolvable:$true] %s1346_s1 }
  0xa2   : > { %s1308_s23 = sshll.u32 %s6543_s7, 4  ;;  %s5489_s26 = sshra.s32 %s6914_s18, 4  ;;  %s1309_s23 = int_to_ptr.vmem [resolvable:$true] %s1308_s23  ;;  %s5490_s26 = int_to_ptr.hbm [resolvable:$true] %s5489_s26 }
  0xa3   : > { %s5491_s21 = scalar_lea.hbm %s5490_s26, 16  ;;  %s5495_s10 = scalar_lea.hbm %s6643_s19, 16 }
  0xa4   : > { %p5492_p1 = scmp.ne.s32.totalorder %s5490_s26, %s5491_s21  ;;  %p5496_p4 = scmp.lt.s32.totalorder %s5490_s26, %s6643_s19 }
  0xa5   : > { %p5497_p7 = scmp.lt.s32.totalorder %s5495_s10, %s5491_s21 }
  0xa6   : > { %p5493_p2 = pnand %p5492_p1, %p5079_p10 }
  0xa7   : > { %p5498_p8 = por %p5497_p7, %p5496_p4 }
  0xa8   : > { %p5494_p3 = pneg %p5493_p2 }
  0xaa   : > { %p5499_p11 = pnand %p5498_p8, %p5494_p3 }
  0xac   : > { %5502 = shalt.err (!%p5499_p11)
}
  0xad   : > { %4952 = dma.hbm_to_vmem [thread:$0]  (%p5079_p10), %s6914_s18, 256, %s1309_s23, [#allocation12], %s7884_s0, %s7884_s0, %s7886_s28  }
  0xae   : > { %s1386_s2 = sshll.u32 %s7964_s6, 4  ;;  %s6544_s16 = smov [#allocation14]   ;;  %s6939_s2 = int_to_ptr.hbm [resolvable:$true] %s1386_s2 }
  0xaf   : > { %s1348_s7 = sshll.u32 %s6544_s16, 4  ;;  %s5517_s26 = sshra.s32 %s6925_s1, 4  ;;  %s1349_s7 = int_to_ptr.vmem [resolvable:$true] %s1348_s7  ;;  %s5518_s26 = int_to_ptr.hbm [resolvable:$true] %s5517_s26 }
  0xb0   : > { %s5519_s21 = scalar_lea.hbm %s5518_s26, 16  ;;  %s5523_s10 = scalar_lea.hbm %s6673_s27, 16 }
  0xb1   : > { %p5520_p12 = scmp.ne.s32.totalorder %s5518_s26, %s5519_s21  ;;  %p5524_p1 = scmp.lt.s32.totalorder %s5518_s26, %s6673_s27 }
  0xb2   : > { %p5525_p2 = scmp.lt.s32.totalorder %s5523_s10, %s5519_s21 }
  0xb3   : > { %p5521_p13 = pnand %p5520_p12, %p5079_p10 }
  0xb4   : > { %p5526_p3 = por %p5525_p2, %p5524_p1 }
  0xb5   : > { %p5522_p0 = pneg %p5521_p13 }
  0xb7   : > { %p5527_p4 = pnand %p5526_p3, %p5522_p0 }
  0xb9   : > { %5530 = shalt.err (!%p5527_p4)
}
  0xba   : > { %4956 = dma.hbm_to_vmem [thread:$0]  (%p5079_p10), %s6925_s1, 256, %s1349_s7, [#allocation15], %s7884_s0, %s7884_s0, %s7886_s28  }
  0xbb   : > { %s6545_s18 = smov [#allocation17]   ;;  %s1414_s16 = sshll.u32 %s6713_s12, 4  ;;  %s6953_s16 = int_to_ptr.hbm [resolvable:$true] %s1414_s16 }
  0xbc   : > { %s1388_s23 = sshll.u32 %s6545_s18, 4  ;;  %s5545_s26 = sshra.s32 %s6939_s2, 4  ;;  %s1389_s23 = int_to_ptr.vmem [resolvable:$true] %s1388_s23  ;;  %s5546_s26 = int_to_ptr.hbm [resolvable:$true] %s5545_s26 }
  0xbd   : > { %s5547_s21 = scalar_lea.hbm %s5546_s26, 16  ;;  %s5551_s10 = scalar_lea.hbm %s7964_s6, 16 }
  0xbe   : > { %p5548_p7 = scmp.ne.s32.totalorder %s5546_s26, %s5547_s21  ;;  %p5552_p12 = scmp.lt.s32.totalorder %s5546_s26, %s7964_s6 }
  0xbf   : > { %p5553_p13 = scmp.lt.s32.totalorder %s5551_s10, %s5547_s21 }
  0xc0   : > { %p5549_p8 = pnand %p5548_p7, %p5079_p10 }
  0xc1   : > { %p5554_p0 = por %p5553_p13, %p5552_p12 }
  0xc2   : > { %p5550_p11 = pneg %p5549_p8 }
  0xc4   : > { %p5555_p1 = pnand %p5554_p0, %p5550_p11 }
  0xc6   : > { %5558 = shalt.err (!%p5555_p1)
}
  0xc7   : > { %4960 = dma.hbm_to_vmem [thread:$0]  (%p5079_p10), %s6939_s2, 256, %s1389_s23, [#allocation18], %s7884_s0, %s7884_s0, %s7886_s28  }
  0xc8   : > { %s1444_s1 = sshll.u32 %s6728_s29, 4  ;;  %s6546_s7 = smov [#allocation20]   ;;  %s6967_s1 = int_to_ptr.hbm [resolvable:$true] %s1444_s1 }
  0xc9   : > { %s1416_s18 = sshll.u32 %s6546_s7, 4  ;;  %s5573_s26 = sshra.s32 %s6953_s16, 4  ;;  %s1417_s18 = int_to_ptr.vmem [resolvable:$true] %s1416_s18  ;;  %s5574_s26 = int_to_ptr.hbm [resolvable:$true] %s5573_s26 }
  0xca   : > { %s5575_s21 = scalar_lea.hbm %s5574_s26, 64  ;;  %s5579_s10 = scalar_lea.hbm %s6713_s12, 64 }
  0xcb   : > { %p5576_p2 = scmp.ne.s32.totalorder %s5574_s26, %s5575_s21  ;;  %p5580_p7 = scmp.lt.s32.totalorder %s5574_s26, %s6713_s12 }
  0xcc   : > { %p5581_p8 = scmp.lt.s32.totalorder %s5579_s10, %s5575_s21 }
  0xcd   : > { %p5577_p3 = pnand %p5576_p2, %p5079_p10 }
  0xce   : > { %p5582_p11 = por %p5581_p8, %p5580_p7 }
  0xcf   : > { %p5578_p4 = pneg %p5577_p3 }
  0xd1   : > { %p5583_p12 = pnand %p5582_p11, %p5578_p4 }
  0xd3   : > { %5586 = shalt.err (!%p5583_p12)
}
  0xd4   : > { %4964 = dma.hbm_to_vmem [thread:$0]  (%p5079_p10), %s6953_s16, 1024, %s1417_s18, [#allocation21], %s7884_s0, %s7884_s0, %s7886_s28  }
  0xd5   : > { %s6547_s2 = smov [#allocation23]   ;;  %s1468_s7 = sshll.u32 %s7965_s5, 4  ;;  %s6981_s7 = int_to_ptr.hbm [resolvable:$true] %s1468_s7 }
  0xd6   : > { %s1446_s23 = sshll.u32 %s6547_s2, 4  ;;  %s5601_s26 = sshra.s32 %s6967_s1, 4  ;;  %s1447_s23 = int_to_ptr.vmem [resolvable:$true] %s1446_s23  ;;  %s5602_s26 = int_to_ptr.hbm [resolvable:$true] %s5601_s26 }
  0xd7   : > { %s5603_s21 = scalar_lea.hbm %s5602_s26, 1  ;;  %s5607_s10 = scalar_lea.hbm %s6728_s29, 1 }
  0xd8   : > { %p5604_p13 = scmp.ne.s32.totalorder %s5602_s26, %s5603_s21  ;;  %p5608_p2 = scmp.lt.s32.totalorder %s5602_s26, %s6728_s29 }
  0xd9   : > { %p5609_p3 = scmp.lt.s32.totalorder %s5607_s10, %s5603_s21 }
  0xda   : > { %p5605_p0 = pnand %p5604_p13, %p5079_p10 }
  0xdb   : > { %p5610_p4 = por %p5609_p3, %p5608_p2 }
  0xdc   : > { %p5606_p1 = pneg %p5605_p0 }
  0xde   : > { %p5611_p7 = pnand %p5610_p4, %p5606_p1 }
  0xe0   : > { %5614 = shalt.err (!%p5611_p7)
}
  0xe1   : > { %4968 = dma.hbm_to_vmem [thread:$0]  (%p5079_p10), %s6967_s1, 16, %s1447_s23, [#allocation24]  }
  0xe2   : > { %s1495_s16 = sshll.u32 %s6753_s13, 4  ;;  %s6548_s18 = smov [#allocation26]   ;;  %s6992_s16 = int_to_ptr.hbm [resolvable:$true] %s1495_s16 }
  0xe3   : > { %s1470_s2 = sshll.u32 %s6548_s18, 4  ;;  %s5629_s26 = sshra.s32 %s6981_s7, 4  ;;  %s1471_s2 = int_to_ptr.vmem [resolvable:$true] %s1470_s2  ;;  %s5630_s26 = int_to_ptr.hbm [resolvable:$true] %s5629_s26 }
  0xe4   : > { %s5631_s21 = scalar_lea.hbm %s5630_s26, 1  ;;  %s5635_s10 = scalar_lea.hbm %s7965_s5, 1 }
  0xe5   : > { %p5632_p8 = scmp.ne.s32.totalorder %s5630_s26, %s5631_s21  ;;  %p5636_p13 = scmp.lt.s32.totalorder %s5630_s26, %s7965_s5 }
  0xe6   : > { %p5637_p0 = scmp.lt.s32.totalorder %s5635_s10, %s5631_s21 }
  0xe7   : > { %p5633_p11 = pnand %p5632_p8, %p5079_p10 }
  0xe8   : > { %p5638_p1 = por %p5637_p0, %p5636_p13 }
  0xe9   : > { %p5634_p12 = pneg %p5633_p11 }
  0xeb   : > { %p5639_p2 = pnand %p5638_p1, %p5634_p12 }
  0xed   : > { %5642 = shalt.err (!%p5639_p2)
}
  0xee   : > { %4972 = dma.hbm_to_vmem [thread:$0]  (%p5079_p10), %s6981_s7, 16, %s1471_s2, [#allocation27]  }
  0xef   : > { %s6549_s1 = smov [#allocation29]   ;;  %s1518_s18 = sshll.u32 %s7963_s8, 4  ;;  %s7003_s18 = int_to_ptr.hbm [resolvable:$true] %s1518_s18 }
  0xf0   : > { %s1497_s23 = sshll.u32 %s6549_s1, 4  ;;  %s5657_s26 = sshra.s32 %s6992_s16, 4  ;;  %s1498_s23 = int_to_ptr.vmem [resolvable:$true] %s1497_s23  ;;  %s5658_s26 = int_to_ptr.hbm [resolvable:$true] %s5657_s26 }
  0xf1   : > { %s5659_s21 = scalar_lea.hbm %s5658_s26, 1  ;;  %s5663_s10 = scalar_lea.hbm %s6753_s13, 1 }
  0xf2   : > { %p5660_p3 = scmp.ne.s32.totalorder %s5658_s26, %s5659_s21  ;;  %p5664_p8 = scmp.lt.s32.totalorder %s5658_s26, %s6753_s13 }
  0xf3   : > { %p5665_p11 = scmp.lt.s32.totalorder %s5663_s10, %s5659_s21 }
  0xf4   : > { %p5661_p4 = pnand %p5660_p3, %p5079_p10 }
  0xf5   : > { %p5666_p12 = por %p5665_p11, %p5664_p8 }
  0xf6   : > { %p5662_p7 = pneg %p5661_p4 }
  0xf8   : > { %p5667_p13 = pnand %p5666_p12, %p5662_p7 }
  0xfa   : > { %5670 = shalt.err (!%p5667_p13)
}
  0xfb   : > { %4976 = dma.hbm_to_vmem [thread:$0]  (%p5079_p10), %s6992_s16, 16, %s1498_s23, [#allocation30]  }
  0xfc   : > { %s1545_s7 = sshll.u32 %s6773_s20, 4  ;;  %s6550_s2 = smov [#allocation32]   ;;  %s7014_s7 = int_to_ptr.hbm [resolvable:$true] %s1545_s7 }
  0xfd   : > { %s1520_s1 = sshll.u32 %s6550_s2, 4  ;;  %s5685_s26 = sshra.s32 %s7003_s18, 4  ;;  %s1521_s1 = int_to_ptr.vmem [resolvable:$true] %s1520_s1  ;;  %s5686_s26 = int_to_ptr.hbm [resolvable:$true] %s5685_s26 }
  0xfe   : > { %s5687_s21 = scalar_lea.hbm %s5686_s26, 32  ;;  %s5691_s10 = scalar_lea.hbm %s7963_s8, 32 }
  0xff   : > { %p5688_p0 = scmp.ne.s32.totalorder %s5686_s26, %s5687_s21  ;;  %p5692_p3 = scmp.lt.s32.totalorder %s5686_s26, %s7963_s8 }
 0x100   : > { %p5693_p4 = scmp.lt.s32.totalorder %s5691_s10, %s5687_s21 }
 0x101   : > { %p5689_p1 = pnand %p5688_p0, %p5079_p10 }
 0x102   : > { %p5694_p7 = por %p5693_p4, %p5692_p3 }
 0x103   : > { %p5690_p2 = pneg %p5689_p1 }
 0x105   : > { %p5695_p8 = pnand %p5694_p7, %p5690_p2 }
 0x107   : > { %5698 = shalt.err (!%p5695_p8)
}
 0x108   : > { %4980 = dma.hbm_to_vmem [thread:$0]  (%p5079_p10), %s7003_s18, 512, %s1521_s1, [#allocation33], %s7884_s0, %s7884_s0, %s7886_s28  }
 0x109   : > { %s6551_s16 = smov [#allocation35]   ;;  %s1568_s2 = sshll.u32 %s7966_s4, 4  ;;  %s7028_s2 = int_to_ptr.hbm [resolvable:$true] %s1568_s2 }
 0x10a   : > { %s1547_s23 = sshll.u32 %s6551_s16, 4  ;;  %s5713_s26 = sshra.s32 %s7014_s7, 4  ;;  %s1548_s23 = int_to_ptr.vmem [resolvable:$true] %s1547_s23  ;;  %s5714_s26 = int_to_ptr.hbm [resolvable:$true] %s5713_s26 }
 0x10b   : > { %s5715_s21 = scalar_lea.hbm %s5714_s26, 1  ;;  %s5719_s10 = scalar_lea.hbm %s6773_s20, 1 }
 0x10c   : > { %p5716_p11 = scmp.ne.s32.totalorder %s5714_s26, %s5715_s21  ;;  %p5720_p0 = scmp.lt.s32.totalorder %s5714_s26, %s6773_s20 }
 0x10d   : > { %p5721_p1 = scmp.lt.s32.totalorder %s5719_s10, %s5715_s21 }
 0x10e   : > { %p5717_p12 = pnand %p5716_p11, %p5079_p10 }
 0x10f   : > { %p5722_p2 = por %p5721_p1, %p5720_p0 }
 0x110   : > { %p5718_p13 = pneg %p5717_p12 }
 0x112   : > { %p5723_p3 = pnand %p5722_p2, %p5718_p13 }
 0x114   : > { %5726 = shalt.err (!%p5723_p3)
}
 0x115   : > { %4984 = dma.hbm_to_vmem [thread:$0]  (%p5079_p10), %s7014_s7, 16, %s1548_s23, [#allocation36]  }
 0x116   : > { %s1595_s18 = sshll.u32 %s6793_s24, 4  ;;  %s6552_s1 = smov [#allocation38]   ;;  %s7039_s18 = int_to_ptr.hbm [resolvable:$true] %s1595_s18 }
 0x117   : > { %s1570_s16 = sshll.u32 %s6552_s1, 4  ;;  %s5741_s26 = sshra.s32 %s7028_s2, 4  ;;  %s1571_s16 = int_to_ptr.vmem [resolvable:$true] %s1570_s16  ;;  %s5742_s26 = int_to_ptr.hbm [resolvable:$true] %s5741_s26 }
 0x118   : > { %s5743_s21 = scalar_lea.hbm %s5742_s26, 32  ;;  %s5747_s10 = scalar_lea.hbm %s7966_s4, 32 }
 0x119   : > { %p5744_p4 = scmp.ne.s32.totalorder %s5742_s26, %s5743_s21  ;;  %p5748_p11 = scmp.lt.s32.totalorder %s5742_s26, %s7966_s4 }
 0x11a   : > { %p5749_p12 = scmp.lt.s32.totalorder %s5747_s10, %s5743_s21 }
 0x11b   : > { %p5745_p7 = pnand %p5744_p4, %p5079_p10 }
 0x11c   : > { %p5750_p13 = por %p5749_p12, %p5748_p11 }
 0x11d   : > { %p5746_p8 = pneg %p5745_p7 }
 0x11f   : > { %p5751_p0 = pnand %p5750_p13, %p5746_p8 }
 0x121   : > { %5754 = shalt.err (!%p5751_p0)
}
 0x122   : > { %4988 = dma.hbm_to_vmem [thread:$0]  (%p5079_p10), %s7028_s2, 512, %s1571_s16, [#allocation39], %s7884_s0, %s7884_s0, %s7886_s28  }
 0x123   : > { %s6553_s7 = smov [#allocation41]   ;;  %s1622_s1 = sshll.u32 %s6808_s9, 4  ;;  %s7053_s1 = int_to_ptr.hbm [resolvable:$true] %s1622_s1 }
 0x124   : > { %s1597_s23 = sshll.u32 %s6553_s7, 4  ;;  %s5769_s26 = sshra.s32 %s7039_s18, 4  ;;  %s1598_s23 = int_to_ptr.vmem [resolvable:$true] %s1597_s23  ;;  %s5770_s26 = int_to_ptr.hbm [resolvable:$true] %s5769_s26 }
 0x125   : > { %s5771_s21 = scalar_lea.hbm %s5770_s26, 1  ;;  %s5775_s10 = scalar_lea.hbm %s6793_s24, 1 }
 0x126   : > { %p5772_p1 = scmp.ne.s32.totalorder %s5770_s26, %s5771_s21  ;;  %p5776_p4 = scmp.lt.s32.totalorder %s5770_s26, %s6793_s24 }
 0x127   : > { %p5777_p7 = scmp.lt.s32.totalorder %s5775_s10, %s5771_s21 }
 0x128   : > { %p5773_p2 = pnand %p5772_p1, %p5079_p10 }
 0x129   : > { %p5778_p8 = por %p5777_p7, %p5776_p4 }
 0x12a   : > { %p5774_p3 = pneg %p5773_p2 }
 0x12c   : > { %p5779_p11 = pnand %p5778_p8, %p5774_p3 }
 0x12e   : > { %5782 = shalt.err (!%p5779_p11)
}
 0x12f   : > { %s7979_s2 = sld [smem:[#allocation109_spill]]  ;;  %s6554_s7 = smov [#allocation44]  }
 0x130   : > { %4992 = dma.hbm_to_vmem [thread:$0]  (%p5079_p10), %s7039_s18, 16, %s1598_s23, [#allocation42]  }
 0x131   : > { %s1624_s0 = sshll.u32 %s6554_s7, 4  ;;  %s5797_s26 = sshra.s32 %s7053_s1, 4  ;;  %s1625_s0 = int_to_ptr.vmem [resolvable:$true] %s1624_s0  ;;  %s5798_s26 = int_to_ptr.hbm [resolvable:$true] %s5797_s26 }
 0x132   : > { %s5799_s21 = scalar_lea.hbm %s5798_s26, 1  ;;  %s5803_s10 = scalar_lea.hbm %s6808_s9, 1 }
 0x133   : > { %p5800_p12 = scmp.ne.s32.totalorder %s5798_s26, %s5799_s21  ;;  %p5804_p1 = scmp.lt.s32.totalorder %s5798_s26, %s6808_s9 }
 0x134   : > { %p5805_p2 = scmp.lt.s32.totalorder %s5803_s10, %s5799_s21 }
 0x135   : > { %s1646_s16 = sshll.u32 %s7979_s2, 4  ;;  %p5801_p13 = pnand %p5800_p12, %p5079_p10  ;;  %s7064_s16 = int_to_ptr.hbm [resolvable:$true] %s1646_s16 }
 0x136   : > { %p5806_p3 = por %p5805_p2, %p5804_p1 }
 0x137   : > { %p5802_p0 = pneg %p5801_p13 }
 0x139   : > { %p5807_p4 = pnand %p5806_p3, %p5802_p0 }
 0x13b   : > { %5810 = shalt.err (!%p5807_p4)
}
 0x13c   : > { %4996 = dma.hbm_to_vmem [thread:$0]  (%p5079_p10), %s7053_s1, 16, %s1625_s0, [#allocation45]  }
 0x13d   : > { %s6555_s18 = smov [#allocation47]   ;;  %s1672_s7 = sshll.u32 %s6828_s17, 4  ;;  %s7075_s7 = int_to_ptr.hbm [resolvable:$true] %s1672_s7 }
 0x13e   : > { %s1648_s23 = sshll.u32 %s6555_s18, 4  ;;  %s5825_s26 = sshra.s32 %s7064_s16, 4  ;;  %s1649_s23 = int_to_ptr.vmem [resolvable:$true] %s1648_s23  ;;  %s5826_s26 = int_to_ptr.hbm [resolvable:$true] %s5825_s26 }
 0x13f   : > { %s5827_s21 = scalar_lea.hbm %s5826_s26, 1  ;;  %s5831_s10 = scalar_lea.hbm %s7979_s2, 1 }
 0x140   : > { %p5828_p7 = scmp.ne.s32.totalorder %s5826_s26, %s5827_s21  ;;  %p5832_p12 = scmp.lt.s32.totalorder %s5826_s26, %s7979_s2 }
 0x141   : > { %p5833_p13 = scmp.lt.s32.totalorder %s5831_s10, %s5827_s21 }
 0x142   : > { %p5829_p8 = pnand %p5828_p7, %p5079_p10 }
 0x143   : > { %p5834_p0 = por %p5833_p13, %p5832_p12 }
 0x144   : > { %p5830_p11 = pneg %p5829_p8 }
 0x146   : > { %p5835_p1 = pnand %p5834_p0, %p5830_p11 }
 0x148   : > { %5838 = shalt.err (!%p5835_p1)
}
 0x149   : > { %s7980_s0 = sld [smem:[#allocation75_spill]]  ;;  %s6556_s18 = smov [#allocation50]  }
 0x14a   : > { %5000 = dma.hbm_to_vmem [thread:$0]  (%p5079_p10), %s7064_s16, 16, %s1649_s23, [#allocation48]  }
 0x14b   : > { %s1674_s28 = sshll.u32 %s6556_s18, 4  ;;  %s5853_s26 = sshra.s32 %s7075_s7, 4  ;;  %s1675_s28 = int_to_ptr.vmem [resolvable:$true] %s1674_s28  ;;  %s5854_s26 = int_to_ptr.hbm [resolvable:$true] %s5853_s26 }
 0x14c   : > { %s5855_s21 = scalar_lea.hbm %s5854_s26, 1  ;;  %s5859_s10 = scalar_lea.hbm %s6828_s17, 1 }
 0x14d   : > { %p5856_p2 = scmp.ne.s32.totalorder %s5854_s26, %s5855_s21  ;;  %p5860_p7 = scmp.lt.s32.totalorder %s5854_s26, %s6828_s17 }
 0x14e   : > { %p5861_p8 = scmp.lt.s32.totalorder %s5859_s10, %s5855_s21 }
 0x14f   : > { %s7981_s1 = smov %s7980_s0  ;;  %s1234_s3 = sshll.u32 %s7980_s0, 4  ;;  %s7086_s3 = int_to_ptr.hbm [resolvable:$true] %s1234_s3 }
 0x150   : > { %p5857_p3 = pnand %p5856_p2, %p5079_p10  ;;  %p5862_p11 = por %p5861_p8, %p5860_p7 }
 0x152   : > { %p5858_p4 = pneg %p5857_p3 }
 0x154   : > { %p5863_p12 = pnand %p5862_p11, %p5858_p4 }
 0x156   : > { %5866 = shalt.err (!%p5863_p12)
}
 0x157   : > { %s7982_s16 = sld [smem:[#allocation77_spill]]  ;;  %s6557_s18 = smov [#allocation2]  }
 0x158   : > { %5004 = dma.hbm_to_vmem [thread:$0]  (%p5079_p10), %s7075_s7, 16, %s1675_s28, [#allocation51]  }
 0x159   : > { %s1236_s2 = sshll.u32 %s6557_s18, 4  ;;  %s5881_s26 = sshra.s32 %s7086_s3, 4  ;;  %s1237_s2 = int_to_ptr.vmem [resolvable:$true] %s1236_s2  ;;  %s5882_s26 = int_to_ptr.hbm [resolvable:$true] %s5881_s26 }
 0x15a   : > { %s5883_s21 = scalar_lea.hbm %s5882_s26, 16  ;;  %s5887_s10 = scalar_lea.hbm %s7981_s1, 16 }
 0x15b   : > { %p5884_p13 = scmp.ne.s32.totalorder %s5882_s26, %s5883_s21  ;;  %p5888_p2 = scmp.lt.s32.totalorder %s5882_s26, %s7981_s1 }
 0x15c   : > { %p5889_p3 = scmp.lt.s32.totalorder %s5887_s10, %s5883_s21 }
 0x15d   : > { %s7983_s23 = smov %s7982_s16  ;;  %s1262_s0 = sshll.u32 %s7982_s16, 4  ;;  %s7097_s0 = int_to_ptr.hbm [resolvable:$true] %s1262_s0 }
 0x15e   : > { %p5885_p0 = pnand %p5884_p13, %p5079_p10  ;;  %p5890_p4 = por %p5889_p3, %p5888_p2 }
 0x160   : > { %p5886_p1 = pneg %p5885_p0 }
 0x162   : > { %p5891_p7 = pnand %p5890_p4, %p5886_p1 }
 0x164   : > { %5894 = shalt.err (!%p5891_p7)
}
 0x165   : > { %s7984_s28 = smov 8   ;;  %s7985_s7 = smov 128  }
 0x166   : > { %s7986_s16 = sld [smem:[#allocation81_spill]]  ;;  %s6558_s18 = smov [#allocation7]  }
 0x167   : > { %4942 = dma.hbm_to_vmem [thread:$0]  (%p5079_p10), %s7086_s3, 256, %s1237_s2, [#allocation3], %s7985_s7, %s7985_s7, %s7984_s28  }
 0x168   : > { %s1264_s5 = sshll.u32 %s6558_s18, 4  ;;  %s5909_s26 = sshra.s32 %s7097_s0, 4  ;;  %s1265_s5 = int_to_ptr.vmem [resolvable:$true] %s1264_s5  ;;  %s5910_s26 = int_to_ptr.hbm [resolvable:$true] %s5909_s26 }
 0x169   : > { %s5911_s21 = scalar_lea.hbm %s5910_s26, 16  ;;  %s5915_s10 = scalar_lea.hbm %s7983_s23, 16 }
 0x16a   : > { %p5912_p8 = scmp.ne.s32.totalorder %s5910_s26, %s5911_s21  ;;  %p5916_p13 = scmp.lt.s32.totalorder %s5910_s26, %s7983_s23 }
 0x16b   : > { %p5917_p0 = scmp.lt.s32.totalorder %s5915_s10, %s5911_s21 }
 0x16c   : > { %s7987_s4 = smov %s7986_s16  ;;  %s1295_s6 = sshll.u32 %s7986_s16, 4  ;;  %s7111_s6 = int_to_ptr.hbm [resolvable:$true] %s1295_s6 }
 0x16d   : > { %p5913_p11 = pnand %p5912_p8, %p5079_p10  ;;  %p5918_p1 = por %p5917_p0, %p5916_p13 }
 0x16f   : > { %p5914_p12 = pneg %p5913_p11 }
 0x171   : > { %p5919_p2 = pnand %p5918_p1, %p5914_p12 }
 0x173   : > { %5922 = shalt.err (!%p5919_p2)
}
 0x174   : > { %s7988_s3 = sld [smem:[#allocation82_spill]]  ;;  %s6559_s16 = smov [#allocation10]  }
 0x175   : > { %4946 = dma.hbm_to_vmem [thread:$0]  (%p5079_p10), %s7097_s0, 256, %s1265_s5, [#allocation6], %s7985_s7, %s7985_s7, %s7984_s28  }
 0x176   : > { %s1297_s18 = sshll.u32 %s6559_s16, 4  ;;  %s5937_s26 = sshra.s32 %s7111_s6, 4  ;;  %s1298_s18 = int_to_ptr.vmem [resolvable:$true] %s1297_s18  ;;  %s5938_s26 = int_to_ptr.hbm [resolvable:$true] %s5937_s26 }
 0x177   : > { %s5939_s21 = scalar_lea.hbm %s5938_s26, 1  ;;  %s5943_s10 = scalar_lea.hbm %s7987_s4, 1 }
 0x178   : > { %p5940_p3 = scmp.ne.s32.totalorder %s5938_s26, %s5939_s21  ;;  %p5944_p8 = scmp.lt.s32.totalorder %s5938_s26, %s7987_s4 }
 0x179   : > { %p5945_p11 = scmp.lt.s32.totalorder %s5943_s10, %s5939_s21 }
 0x17a   : > { %s1320_s2 = sshll.u32 %s7988_s3, 4  ;;  %p5941_p4 = pnand %p5940_p3, %p5079_p10  ;;  %s7125_s2 = int_to_ptr.hbm [resolvable:$true] %s1320_s2 }
 0x17b   : > { %p5946_p12 = por %p5945_p11, %p5944_p8 }
 0x17c   : > { %p5942_p7 = pneg %p5941_p4 }
 0x17e   : > { %p5947_p13 = pnand %p5946_p12, %p5942_p7 }
 0x180   : > { %5950 = shalt.err (!%p5947_p13)
}
 0x181   : > { %s7989_s5 = sld [smem:[#allocation87_spill]]  ;;  %s6560_s0 = smov [#allocation13]  }
 0x182   : > { %4950 = dma.hbm_to_vmem [thread:$0]  (%p5079_p10), %s7111_s6, 16, %s1298_s18, [#allocation9]  }
 0x183   : > { %s1322_s16 = sshll.u32 %s6560_s0, 4  ;;  %s5965_s26 = sshra.s32 %s7125_s2, 4  ;;  %s1323_s16 = int_to_ptr.vmem [resolvable:$true] %s1322_s16  ;;  %s5966_s26 = int_to_ptr.hbm [resolvable:$true] %s5965_s26 }
 0x184   : > { %s5967_s21 = scalar_lea.hbm %s5966_s26, 16  ;;  %s5971_s10 = scalar_lea.hbm %s7988_s3, 16 }
 0x185   : > { %p5968_p0 = scmp.ne.s32.totalorder %s5966_s26, %s5967_s21  ;;  %p5972_p3 = scmp.lt.s32.totalorder %s5966_s26, %s7988_s3 }
 0x186   : > { %p5973_p4 = scmp.lt.s32.totalorder %s5971_s10, %s5967_s21 }
 0x187   : > { %s1360_s1 = sshll.u32 %s7989_s5, 4  ;;  %p5969_p1 = pnand %p5968_p0, %p5079_p10  ;;  %s7136_s1 = int_to_ptr.hbm [resolvable:$true] %s1360_s1 }
 0x188   : > { %p5974_p7 = por %p5973_p4, %p5972_p3 }
 0x189   : > { %p5970_p2 = pneg %p5969_p1 }
 0x18b   : > { %p5975_p8 = pnand %p5974_p7, %p5970_p2 }
 0x18d   : > { %5978 = shalt.err (!%p5975_p8)
}
 0x18e   : > { %s7990_s6 = sld [smem:[#allocation93_spill]]  ;;  %s6561_s0 = smov [#allocation16]  }
 0x18f   : > { %4954 = dma.hbm_to_vmem [thread:$0]  (%p5079_p10), %s7125_s2, 256, %s1323_s16, [#allocation12], %s7985_s7, %s7985_s7, %s7984_s28  }
 0x190   : > { %s1362_s4 = sshll.u32 %s6561_s0, 4  ;;  %s5993_s26 = sshra.s32 %s7136_s1, 4  ;;  %s1363_s4 = int_to_ptr.vmem [resolvable:$true] %s1362_s4  ;;  %s5994_s26 = int_to_ptr.hbm [resolvable:$true] %s5993_s26 }
 0x191   : > { %s5995_s21 = scalar_lea.hbm %s5994_s26, 16  ;;  %s5999_s10 = scalar_lea.hbm %s7989_s5, 16 }
 0x192   : > { %p5996_p11 = scmp.ne.s32.totalorder %s5994_s26, %s5995_s21  ;;  %p6000_p0 = scmp.lt.s32.totalorder %s5994_s26, %s7989_s5 }
 0x193   : > { %p6001_p1 = scmp.lt.s32.totalorder %s5999_s10, %s5995_s21 }
 0x194   : > { %s1400_s18 = sshll.u32 %s7990_s6, 4  ;;  %p5997_p12 = pnand %p5996_p11, %p5079_p10  ;;  %s7150_s18 = int_to_ptr.hbm [resolvable:$true] %s1400_s18 }
 0x195   : > { %p6002_p2 = por %p6001_p1, %p6000_p0 }
 0x196   : > { %p5998_p13 = pneg %p5997_p12 }
 0x198   : > { %p6003_p3 = pnand %p6002_p2, %p5998_p13 }
 0x19a   : > { %6006 = shalt.err (!%p6003_p3)
}
 0x19b   : > { %s7991_s2 = sld [smem:[#allocation94_spill]]  ;;  %s6562_s16 = smov [#allocation19]  }
 0x19c   : > { %4958 = dma.hbm_to_vmem [thread:$0]  (%p5079_p10), %s7136_s1, 256, %s1363_s4, [#allocation15], %s7985_s7, %s7985_s7, %s7984_s28  }
 0x19d   : > { %s1402_s0 = sshll.u32 %s6562_s16, 4  ;;  %s6021_s26 = sshra.s32 %s7150_s18, 4  ;;  %s1403_s0 = int_to_ptr.vmem [resolvable:$true] %s1402_s0  ;;  %s6022_s26 = int_to_ptr.hbm [resolvable:$true] %s6021_s26 }
 0x19e   : > { %s6023_s21 = scalar_lea.hbm %s6022_s26, 16  ;;  %s6027_s10 = scalar_lea.hbm %s7990_s6, 16 }
 0x19f   : > { %p6024_p4 = scmp.ne.s32.totalorder %s6022_s26, %s6023_s21  ;;  %p6028_p11 = scmp.lt.s32.totalorder %s6022_s26, %s7990_s6 }
 0x1a0   : > { %p6029_p12 = scmp.lt.s32.totalorder %s6027_s10, %s6023_s21 }
 0x1a1   : > { %s1429_s3 = sshll.u32 %s7991_s2, 4  ;;  %p6025_p7 = pnand %p6024_p4, %p5079_p10  ;;  %s7164_s3 = int_to_ptr.hbm [resolvable:$true] %s1429_s3 }
 0x1a2   : > { %p6030_p13 = por %p6029_p12, %p6028_p11 }
 0x1a3   : > { %p6026_p8 = pneg %p6025_p7 }
 0x1a5   : > { %p6031_p0 = pnand %p6030_p13, %p6026_p8 }
 0x1a7   : > { %6034 = shalt.err (!%p6031_p0)
}
 0x1a8   : > { %s7992_s4 = sld [smem:[#allocation96_spill]]  ;;  %s6563_s16 = smov [#allocation22]  }
 0x1a9   : > { %4962 = dma.hbm_to_vmem [thread:$0]  (%p5079_p10), %s7150_s18, 256, %s1403_s0, [#allocation18], %s7985_s7, %s7985_s7, %s7984_s28  }
 0x1aa   : > { %s1431_s5 = sshll.u32 %s6563_s16, 4  ;;  %s6049_s26 = sshra.s32 %s7164_s3, 4  ;;  %s1432_s5 = int_to_ptr.vmem [resolvable:$true] %s1431_s5  ;;  %s6050_s26 = int_to_ptr.hbm [resolvable:$true] %s6049_s26 }
 0x1ab   : > { %s6051_s21 = scalar_lea.hbm %s6050_s26, 1  ;;  %s6055_s10 = scalar_lea.hbm %s7991_s2, 1 }
 0x1ac   : > { %p6052_p1 = scmp.ne.s32.totalorder %s6050_s26, %s6051_s21  ;;  %p6056_p4 = scmp.lt.s32.totalorder %s6050_s26, %s7991_s2 }
 0x1ad   : > { %p6057_p7 = scmp.lt.s32.totalorder %s6055_s10, %s6051_s21 }
 0x1ae   : > { %s1456_s1 = sshll.u32 %s7992_s4, 4  ;;  %p6053_p2 = pnand %p6052_p1, %p5079_p10  ;;  %s7178_s1 = int_to_ptr.hbm [resolvable:$true] %s1456_s1 }
 0x1af   : > { %p6058_p8 = por %p6057_p7, %p6056_p4 }
 0x1b0   : > { %p6054_p3 = pneg %p6053_p2 }
 0x1b2   : > { %p6059_p11 = pnand %p6058_p8, %p6054_p3 }
 0x1b4   : > { %6062 = shalt.err (!%p6059_p11)
}
 0x1b5   : > { %s7993_s18 = sld [smem:[#allocation99_spill]]  ;;  %s6564_s0 = smov [#allocation25]  }
 0x1b6   : > { %4966 = dma.hbm_to_vmem [thread:$0]  (%p5079_p10), %s7164_s3, 16, %s1432_s5, [#allocation21]  }
 0x1b7   : > { %s1458_s16 = sshll.u32 %s6564_s0, 4  ;;  %s6077_s26 = sshra.s32 %s7178_s1, 4  ;;  %s1459_s16 = int_to_ptr.vmem [resolvable:$true] %s1458_s16  ;;  %s6078_s26 = int_to_ptr.hbm [resolvable:$true] %s6077_s26 }
 0x1b8   : > { %s6079_s21 = scalar_lea.hbm %s6078_s26, 1  ;;  %s6083_s10 = scalar_lea.hbm %s7992_s4, 1 }
 0x1b9   : > { %p6080_p12 = scmp.ne.s32.totalorder %s6078_s26, %s6079_s21  ;;  %p6084_p1 = scmp.lt.s32.totalorder %s6078_s26, %s7992_s4 }
 0x1ba   : > { %p6085_p2 = scmp.lt.s32.totalorder %s6083_s10, %s6079_s21 }
 0x1bb   : > { %s7994_s6 = smov %s7993_s18  ;;  %s1483_s8 = sshll.u32 %s7993_s18, 4  ;;  %s7189_s8 = int_to_ptr.hbm [resolvable:$true] %s1483_s8 }
 0x1bc   : > { %p6081_p13 = pnand %p6080_p12, %p5079_p10  ;;  %p6086_p3 = por %p6085_p2, %p6084_p1 }
 0x1be   : > { %p6082_p0 = pneg %p6081_p13 }
 0x1c0   : > { %p6087_p4 = pnand %p6086_p3, %p6082_p0 }
 0x1c2   : > { %6090 = shalt.err (!%p6087_p4)
}
 0x1c3   : > { %s7995_s3 = sld [smem:[#allocation100_spill]]  ;;  %s6565_s18 = smov [#allocation28]  }
 0x1c4   : > { %4970 = dma.hbm_to_vmem [thread:$0]  (%p5079_p10), %s7178_s1, 16, %s1459_s16, [#allocation24]  }
 0x1c5   : > { %s1485_s0 = sshll.u32 %s6565_s18, 4  ;;  %s6105_s26 = sshra.s32 %s7189_s8, 4  ;;  %s1486_s0 = int_to_ptr.vmem [resolvable:$true] %s1485_s0  ;;  %s6106_s26 = int_to_ptr.hbm [resolvable:$true] %s6105_s26 }
 0x1c6   : > { %s6107_s21 = scalar_lea.hbm %s6106_s26, 1  ;;  %s6111_s10 = scalar_lea.hbm %s7994_s6, 1 }
 0x1c7   : > { %p6108_p7 = scmp.ne.s32.totalorder %s6106_s26, %s6107_s21  ;;  %p6112_p12 = scmp.lt.s32.totalorder %s6106_s26, %s7994_s6 }
 0x1c8   : > { %p6113_p13 = scmp.lt.s32.totalorder %s6111_s10, %s6107_s21 }
 0x1c9   : > { %s1507_s5 = sshll.u32 %s7995_s3, 4  ;;  %p6109_p8 = pnand %p6108_p7, %p5079_p10  ;;  %s7200_s5 = int_to_ptr.hbm [resolvable:$true] %s1507_s5 }
 0x1ca   : > { %p6114_p0 = por %p6113_p13, %p6112_p12 }
 0x1cb   : > { %p6110_p11 = pneg %p6109_p8 }
 0x1cd   : > { %p6115_p1 = pnand %p6114_p0, %p6110_p11 }
 0x1cf   : > { %6118 = shalt.err (!%p6115_p1)
}
 0x1d0   : > { %s7996_s1 = sld [smem:[#allocation102_spill]]  ;;  %s6566_s16 = smov [#allocation31]  }
 0x1d1   : > { %4974 = dma.hbm_to_vmem [thread:$0]  (%p5079_p10), %s7189_s8, 16, %s1486_s0, [#allocation27]  }
 0x1d2   : > { %s1509_s18 = sshll.u32 %s6566_s16, 4  ;;  %s6133_s26 = sshra.s32 %s7200_s5, 4  ;;  %s1510_s18 = int_to_ptr.vmem [resolvable:$true] %s1509_s18  ;;  %s6134_s26 = int_to_ptr.hbm [resolvable:$true] %s6133_s26 }
 0x1d3   : > { %s6135_s21 = scalar_lea.hbm %s6134_s26, 1  ;;  %s6139_s10 = scalar_lea.hbm %s7995_s3, 1 }
 0x1d4   : > { %p6136_p2 = scmp.ne.s32.totalorder %s6134_s26, %s6135_s21  ;;  %p6140_p7 = scmp.lt.s32.totalorder %s6134_s26, %s7995_s3 }
 0x1d5   : > { %p6141_p8 = scmp.lt.s32.totalorder %s6139_s10, %s6135_s21 }
 0x1d6   : > { %s1533_s2 = sshll.u32 %s7996_s1, 4  ;;  %p6137_p3 = pnand %p6136_p2, %p5079_p10  ;;  %s7211_s2 = int_to_ptr.hbm [resolvable:$true] %s1533_s2 }
 0x1d7   : > { %p6142_p11 = por %p6141_p8, %p6140_p7 }
 0x1d8   : > { %p6138_p4 = pneg %p6137_p3 }
 0x1da   : > { %p6143_p12 = pnand %p6142_p11, %p6138_p4 }
 0x1dc   : > { %6146 = shalt.err (!%p6143_p12)
}
 0x1dd   : > { %s7997_s8 = sld [smem:[#allocation103_spill]]  ;;  %s6567_s16 = smov [#allocation34]  }
 0x1de   : > { %4978 = dma.hbm_to_vmem [thread:$0]  (%p5079_p10), %s7200_s5, 16, %s1510_s18, [#allocation30]  }
 0x1df   : > { %s1535_s4 = sshll.u32 %s6567_s16, 4  ;;  %s6161_s26 = sshra.s32 %s7211_s2, 4  ;;  %s1536_s4 = int_to_ptr.vmem [resolvable:$true] %s1535_s4  ;;  %s6162_s26 = int_to_ptr.hbm [resolvable:$true] %s6161_s26 }
 0x1e0   : > { %s6163_s21 = scalar_lea.hbm %s6162_s26, 1  ;;  %s6167_s10 = scalar_lea.hbm %s7996_s1, 1 }
 0x1e1   : > { %p6164_p13 = scmp.ne.s32.totalorder %s6162_s26, %s6163_s21  ;;  %p6168_p2 = scmp.lt.s32.totalorder %s6162_s26, %s7996_s1 }
 0x1e2   : > { %p6169_p3 = scmp.lt.s32.totalorder %s6167_s10, %s6163_s21 }
 0x1e3   : > { %s1557_s0 = sshll.u32 %s7997_s8, 4  ;;  %p6165_p0 = pnand %p6164_p13, %p5079_p10  ;;  %s7222_s0 = int_to_ptr.hbm [resolvable:$true] %s1557_s0 }
 0x1e4   : > { %p6170_p4 = por %p6169_p3, %p6168_p2 }
 0x1e5   : > { %p6166_p1 = pneg %p6165_p0 }
 0x1e7   : > { %p6171_p7 = pnand %p6170_p4, %p6166_p1 }
 0x1e9   : > { %6174 = shalt.err (!%p6171_p7)
}
 0x1ea   : > { %s7998_s5 = sld [smem:[#allocation105_spill]]  ;;  %s6568_s18 = smov [#allocation37]  }
 0x1eb   : > { %4982 = dma.hbm_to_vmem [thread:$0]  (%p5079_p10), %s7211_s2, 16, %s1536_s4, [#allocation33]  }
 0x1ec   : > { %s1559_s16 = sshll.u32 %s6568_s18, 4  ;;  %s6189_s26 = sshra.s32 %s7222_s0, 4  ;;  %s1560_s16 = int_to_ptr.vmem [resolvable:$true] %s1559_s16  ;;  %s6190_s26 = int_to_ptr.hbm [resolvable:$true] %s6189_s26 }
 0x1ed   : > { %s6191_s21 = scalar_lea.hbm %s6190_s26, 1  ;;  %s6195_s10 = scalar_lea.hbm %s7997_s8, 1 }
 0x1ee   : > { %p6192_p8 = scmp.ne.s32.totalorder %s6190_s26, %s6191_s21  ;;  %p6196_p13 = scmp.lt.s32.totalorder %s6190_s26, %s7997_s8 }
 0x1ef   : > { %p6197_p0 = scmp.lt.s32.totalorder %s6195_s10, %s6191_s21 }
 0x1f0   : > { %s1583_s3 = sshll.u32 %s7998_s5, 4  ;;  %p6193_p11 = pnand %p6192_p8, %p5079_p10  ;;  %s7233_s3 = int_to_ptr.hbm [resolvable:$true] %s1583_s3 }
 0x1f1   : > { %p6198_p1 = por %p6197_p0, %p6196_p13 }
 0x1f2   : > { %p6194_p12 = pneg %p6193_p11 }
 0x1f4   : > { %p6199_p2 = pnand %p6198_p1, %p6194_p12 }
 0x1f6   : > { %6202 = shalt.err (!%p6199_p2)
}
 0x1f7   : > { %s7999_s2 = sld [smem:[#allocation106_spill]]  ;;  %s6569_s18 = smov [#allocation40]  }
 0x1f8   : > { %4986 = dma.hbm_to_vmem [thread:$0]  (%p5079_p10), %s7222_s0, 16, %s1560_s16, [#allocation36]  }
 0x1f9   : > { %s1585_s1 = sshll.u32 %s6569_s18, 4  ;;  %s6217_s26 = sshra.s32 %s7233_s3, 4  ;;  %s1586_s1 = int_to_ptr.vmem [resolvable:$true] %s1585_s1  ;;  %s6218_s26 = int_to_ptr.hbm [resolvable:$true] %s6217_s26 }
 0x1fa   : > { %s6219_s21 = scalar_lea.hbm %s6218_s26, 1  ;;  %s6223_s10 = scalar_lea.hbm %s7998_s5, 1 }
 0x1fb   : > { %p6220_p3 = scmp.ne.s32.totalorder %s6218_s26, %s6219_s21  ;;  %p6224_p8 = scmp.lt.s32.totalorder %s6218_s26, %s7998_s5 }
 0x1fc   : > { %p6225_p11 = scmp.lt.s32.totalorder %s6223_s10, %s6219_s21 }
 0x1fd   : > { %s1607_s4 = sshll.u32 %s7999_s2, 4  ;;  %p6221_p4 = pnand %p6220_p3, %p5079_p10  ;;  %s7244_s4 = int_to_ptr.hbm [resolvable:$true] %s1607_s4 }
 0x1fe   : > { %p6226_p12 = por %p6225_p11, %p6224_p8 }
 0x1ff   : > { %p6222_p7 = pneg %p6221_p4 }
 0x201   : > { %p6227_p13 = pnand %p6226_p12, %p6222_p7 }
 0x203   : > { %6230 = shalt.err (!%p6227_p13)
}
 0x204   : > { %s8000_s0 = sld [smem:[#allocation108_spill]]  ;;  %s6570_s16 = smov [#allocation43]  }
 0x205   : > { %4990 = dma.hbm_to_vmem [thread:$0]  (%p5079_p10), %s7233_s3, 16, %s1586_s1, [#allocation39]  }
 0x206   : > { %s1609_s18 = sshll.u32 %s6570_s16, 4  ;;  %s6245_s26 = sshra.s32 %s7244_s4, 4  ;;  %s1610_s18 = int_to_ptr.vmem [resolvable:$true] %s1609_s18  ;;  %s6246_s26 = int_to_ptr.hbm [resolvable:$true] %s6245_s26 }
 0x207   : > { %s6247_s21 = scalar_lea.hbm %s6246_s26, 1  ;;  %s6251_s10 = scalar_lea.hbm %s7999_s2, 1 }
 0x208   : > { %p6248_p0 = scmp.ne.s32.totalorder %s6246_s26, %s6247_s21  ;;  %p6252_p3 = scmp.lt.s32.totalorder %s6246_s26, %s7999_s2 }
 0x209   : > { %p6253_p4 = scmp.lt.s32.totalorder %s6251_s10, %s6247_s21 }
 0x20a   : > { %s8001_s6 = smov %s8000_s0  ;;  %s1634_s8 = sshll.u32 %s8000_s0, 4  ;;  %s7255_s8 = int_to_ptr.hbm [resolvable:$true] %s1634_s8 }
 0x20b   : > { %p6249_p1 = pnand %p6248_p0, %p5079_p10  ;;  %p6254_p7 = por %p6253_p4, %p6252_p3 }
 0x20d   : > { %p6250_p2 = pneg %p6249_p1 }
 0x20f   : > { %p6255_p8 = pnand %p6254_p7, %p6250_p2 }
 0x211   : > { %6258 = shalt.err (!%p6255_p8)
}
 0x212   : > { %s8002_s3 = sld [smem:[#allocation110_spill]]  ;;  %s6571_s0 = smov [#allocation46]  }
 0x213   : > { %4994 = dma.hbm_to_vmem [thread:$0]  (%p5079_p10), %s7244_s4, 16, %s1610_s18, [#allocation42]  }
 0x214   : > { %s1636_s16 = sshll.u32 %s6571_s0, 4  ;;  %s6273_s26 = sshra.s32 %s7255_s8, 4  ;;  %s1637_s16 = int_to_ptr.vmem [resolvable:$true] %s1636_s16  ;;  %s6274_s26 = int_to_ptr.hbm [resolvable:$true] %s6273_s26 }
 0x215   : > { %s6275_s21 = scalar_lea.hbm %s6274_s26, 1  ;;  %s6279_s10 = scalar_lea.hbm %s8001_s6, 1 }
 0x216   : > { %p6276_p11 = scmp.ne.s32.totalorder %s6274_s26, %s6275_s21  ;;  %p6280_p0 = scmp.lt.s32.totalorder %s6274_s26, %s8001_s6 }
 0x217   : > { %p6281_p1 = scmp.lt.s32.totalorder %s6279_s10, %s6275_s21 }
 0x218   : > { %s1657_s1 = sshll.u32 %s8002_s3, 4  ;;  %p6277_p12 = pnand %p6276_p11, %p5079_p10  ;;  %s7266_s1 = int_to_ptr.hbm [resolvable:$true] %s1657_s1 }
 0x219   : > { %p6282_p2 = por %p6281_p1, %p6280_p0 }
 0x21a   : > { %p6278_p13 = pneg %p6277_p12 }
 0x21c   : > { %p6283_p3 = pnand %p6282_p2, %p6278_p13 }
 0x21e   : > { %6286 = shalt.err (!%p6283_p3)
}
 0x21f   : > { %4998 = dma.hbm_to_vmem [thread:$0]  (%p5079_p10), %s7255_s8, 16, %s1637_s16, [#allocation45]  }
 0x220   : > { %s6572_s4 = smov [#allocation49]   ;;  %s1687_s0 = sshll.u32 %s6838_s30, 4  ;;  %s1688_s0 = int_to_ptr.hbm [resolvable:$true] %s1687_s0 }
 0x221   : > { %s1659_s18 = sshll.u32 %s6572_s4, 4  ;;  %s6301_s2 = sshra.s32 %s7266_s1, 4  ;;  %s1660_s18 = int_to_ptr.vmem [resolvable:$true] %s1659_s18  ;;  %s6302_s2 = int_to_ptr.hbm [resolvable:$true] %s6301_s2 }
 0x222   : > { %s6303_s26 = scalar_lea.hbm %s6302_s2, 32  ;;  %s6307_s21 = scalar_lea.hbm %s8002_s3, 32 }
 0x223   : > { %p6304_p4 = scmp.ne.s32.totalorder %s6302_s2, %s6303_s26  ;;  %p6308_p11 = scmp.lt.s32.totalorder %s6302_s2, %s8002_s3 }
 0x224   : > { %p6309_p12 = scmp.lt.s32.totalorder %s6307_s21, %s6303_s26 }
 0x225   : > { %p6305_p7 = pnand %p6304_p4, %p5079_p10 }
 0x226   : > { %p6310_p13 = por %p6309_p12, %p6308_p11 }
 0x227   : > { %p6306_p8 = pneg %p6305_p7 }
 0x229   : > { %p6311_p0 = pnand %p6310_p13, %p6306_p8 }
 0x22b   : > { %6314 = shalt.err (!%p6311_p0)
}
 0x22c   : > { %5002 = dma.hbm_to_vmem [thread:$0]  (%p5079_p10), %s7266_s1, 512, %s1660_s18, [#allocation48], %s7985_s7, %s7985_s7, %s7984_s28  }
 0x22d   : > { %s6573_s8 = smov [#allocation52]   ;;  %s6329_s10 = sshra.s32 %s1688_s0, 4  ;;  %s6330_s10 = int_to_ptr.hbm [resolvable:$true] %s6329_s10 }
 0x22e   : > { %s1689_s16 = sshll.u32 %s6573_s8, 4  ;;  %s6331_s2 = scalar_lea.hbm %s6330_s10, 1  ;;  %s1690_s16 = int_to_ptr.vmem [resolvable:$true] %s1689_s16 }
 0x22f   : > { %p6332_p1 = scmp.ne.s32.totalorder %s6330_s10, %s6331_s2  ;;  %s6335_s4 = scalar_lea.hbm %s6838_s30, 1 }
 0x230   : > { %p6336_p4 = scmp.lt.s32.totalorder %s6330_s10, %s6838_s30  ;;  %p6337_p7 = scmp.lt.s32.totalorder %s6335_s4, %s6331_s2 }
 0x231   : > { %p6333_p2 = pnand %p6332_p1, %p5079_p10 }
 0x232   : > { %p6338_p8 = por %p6337_p7, %p6336_p4 }
 0x233   : > { %p6334_p3 = pneg %p6333_p2 }
 0x235   : > { %p6339_p11 = pnand %p6338_p8, %p6334_p3 }
 0x237   : > { %6342 = shalt.err (!%p6339_p11)
}
 0x238   : > { %5006 = dma.hbm_to_vmem [thread:$0]  (%p5079_p10), %s1688_s0, 16, %s1690_s16, [#allocation51]  }
 0x239 PF: > { %1710 = sbr.rel (%p6893_p9) target bundleno = 8619 (0x21ab), region = 220  ;;  %p5112_p12 = scmp.eq.s32.totalorder (!%p6893_p9), %s6866_s22, 0 }
 0x23e   : > { %6402 = dma.done.wait (%p5112_p12), [#allocation3], 256  }
 0x23f   : > { %6404 = vsyncadd (%p5112_p12), [#allocation3], 4294967040 }
 0x240   : > { %6406 = dma.done.wait (%p5112_p12), [#allocation6], 512  }
 0x241   : > { %6408 = vsyncadd (%p5112_p12), [#allocation6], 4294966784 }
 0x242   : > { %6410 = dma.done.wait (%p5112_p12), [#allocation9], 48  }
 0x243   : > { %6412 = vsyncadd (%p5112_p12), [#allocation9], 4294967248 }
 0x244   : > { %6414 = dma.done.wait (%p5112_p12), [#allocation12], 512  }
 0x245   : > { %6416 = vsyncadd (%p5112_p12), [#allocation12], 4294966784 }
 0x246   : > { %6418 = dma.done.wait (%p5112_p12), [#allocation15], 512  }
 0x247   : > { %6420 = vsyncadd (%p5112_p12), [#allocation15], 4294966784 }
 0x248   : > { %6422 = dma.done.wait (%p5112_p12), [#allocation18], 512  }
 0x249   : > { %6424 = vsyncadd (%p5112_p12), [#allocation18], 4294966784 }
 0x24a   : > { %6426 = dma.done.wait (%p5112_p12), [#allocation21], 1040  }
 0x24b   : > { %6428 = vsyncadd (%p5112_p12), [#allocation21], 4294966256 }
 0x24c   : > { %6430 = dma.done.wait (%p5112_p12), [#allocation24], 32  }
 0x24d   : > { %6432 = vsyncadd (%p5112_p12), [#allocation24], 4294967264 }
 0x24e   : > { %6434 = dma.done.wait (%p5112_p12), [#allocation27], 32  }
 0x24f   : > { %6436 = vsyncadd (%p5112_p12), [#allocation27], 4294967264 }
 0x250   : > { %6438 = dma.done.wait (%p5112_p12), [#allocation30], 32  }
 0x251   : > { %6440 = vsyncadd (%p5112_p12), [#allocation30], 4294967264 }
 0x252   : > { %6442 = dma.done.wait (%p5112_p12), [#allocation33], 528  }
 0x253   : > { %6444 = vsyncadd (%p5112_p12), [#allocation33], 4294966768 }
 0x254   : > { %6446 = dma.done.wait (%p5112_p12), [#allocation36], 32  }
 0x255   : > { %6448 = vsyncadd (%p5112_p12), [#allocation36], 4294967264 }
 0x256   : > { %6450 = dma.done.wait (%p5112_p12), [#allocation39], 528  }
 0x257   : > { %6452 = vsyncadd (%p5112_p12), [#allocation39], 4294966768 }
 0x258   : > { %6454 = dma.done.wait (%p5112_p12), [#allocation42], 32  }
 0x259   : > { %6456 = vsyncadd (%p5112_p12), [#allocation42], 4294967264 }
 0x25a   : > { %6458 = dma.done.wait (%p5112_p12), [#allocation45], 32  }
 0x25b   : > { %6460 = vsyncadd (%p5112_p12), [#allocation45], 4294967264 }
 0x25c   : > { %6462 = dma.done.wait (%p5112_p12), [#allocation48], 528  }
 0x25d   : > { %6464 = vsyncadd (%p5112_p12), [#allocation48], 4294966768 }
 0x25e   : > { %6466 = dma.done.wait (%p5112_p12), [#allocation51], 32  }
 0x25f   : > { %6468 = vsyncadd (%p5112_p12), [#allocation51], 4294967264  ;;  %s8003_s11 = sld [smem:[#allocation73_spill]]  ;;  %p1988_p9 = scmp.lt.s32.totalorder %s6866_s22, 1  ;;  %vm2007_vm0 = vcmask 523264   ;;  %v2037_v13 = vld [vmem:[#allocation2] sm:$0xff] }
 0x260   : > { %s8004_s28 = sld [smem:[#allocation72_spill]]  ;;  %v2038_v15 = vld [vmem:[#allocation2 + $0x8] sm:$0xff]  ;;  %v6574_v22 = vmov 1024.0   ;;  %vm2192_vm5 = vcmask 130048   ;;  %s8022_s3 = smov 112  }
 0x261   : > { %s1989_s7 = scalar_select %p1988_p9, %s6866_s22, 1  ;;  %5313 = vrcp.f32 %v6574_v22  ;;  %v2044_v22 = vld [vmem:[#allocation7 + $0x8] sm:$0xff] }
 0x262   : > { %s8005_s1 = sld [smem:[#allocation74_spill]] }
 0x263   : > { %s4912_s18 = sshll.u32 %s1989_s7, 4  ;;  %s8006_s16 = sld [smem:[#allocation78_spill]] }
 0x265   : > { %v2002_v0 = vld [vmem:[%s8003_s11 + $0x38] sm:$0xff]  ;;  %v2001_v1 = vld [vmem:[%s8003_s11 + $0x30] sm:$0xff]  ;;  %v2000_v2 = vld [vmem:[%s8003_s11 + $0x28] sm:$0xff] }
 0x266   : > { %2022 = vmatpush.msra.mxu0 %v2002_v0  ;;  %v1999_v3 = vld [vmem:[%s8003_s11 + $0x20] sm:$0xff]  ;;  %v1998_v4 = vld [vmem:[%s8003_s11 + $0x18] sm:$0xff]  ;;  %v1997_v5 = vld [vmem:[%s8003_s11 + $0x10] sm:$0xff]  ;;  %s1992_s0 = scalar_lea.vmem %s8004_s28, %s4912_s18  ;;  %s6576_s18 = smov 48  }
 0x267   : > { %v1996_v6 = vld [vmem:[%s8003_s11 + $0x8] sm:$0xff]  ;;  %v1995_v7 = vld [vmem:[%s8003_s11] sm:$0xff]  ;;  %v5314_v23 = vpop.eup %5313 }
 0x268   : > { %2023 = vmatpush.msra.mxu0 %v2001_v1  ;;  %v1993_v8 = vld [vmem:[%s1992_s0] sm:$0xff]  ;;  %v1994_v9 = vld [vmem:[%s1992_s0 + $0x8] sm:$0xff]  ;;  %v2058_v24 = vmul.f32 1024.0, %v5314_v23  ;;  %vm2062_vm1 = vweird.f32 %v5314_v23  ;;  %s7915_s0 = smov 112  }
 0x269   : > { %v5304_v11 = vld [vmem:[%s8005_s1] ss:$0 sm:$0xff]  ;;  %s8007_s10 = smov %s8006_s16  ;;  %v2126_v51 = vld [vmem:[%s8006_s16 + $0x70] sm:$0xff]  ;;  %s6575_s1 = smov 64  }
 0x26a   : > { %2024 = vmatpush.msra.mxu0 %v2000_v2  ;;  %v2059_v25 = vsub.f32 1.0, %v2058_v24  ;;  %v2127_v52 = vld [vmem:[%s8007_s10 + $0x78] sm:$0xff]  ;;  %v2124_v53 = vld [vmem:[%s8007_s10 + $0x60] sm:$0xff]  ;;  %2148 = vmatpush.msra.mxu1 %v2126_v51  ;;  %v2125_v54 = vld [vmem:[%s8007_s10 + $0x68] sm:$0xff]  ;;  %s8008_s16 = sld [smem:[#allocation80_spill]] }
 0x26b   : > { %2171 = vmatpush.msra.mxu2 %v2127_v52  ;;  %v2122_v55 = vld [vmem:[%s8007_s10 + $0x50] sm:$0xff]  ;;  %v2123_v56 = vld [vmem:[%s8007_s10 + $0x58] sm:$0xff]  ;;  %v2120_v57 = vld [vmem:[%s8007_s10 + $0x40] sm:$0xff] }
 0x26c   : > { %2025 = vmatpush.msra.mxu0 %v1999_v3  ;;  %v2060_v29 = vmul.f32 %v5314_v23, %v2059_v25  ;;  %2149 = vmatpush.msra.mxu1 %v2124_v53  ;;  %v2121_v58 = vld [vmem:[%s8007_s10 + $0x48] sm:$0xff]  ;;  %v2118_v3 = vld [vmem:[%s8007_s10 + $0x30] sm:$0xff] }
 0x26d   : > { %2172 = vmatpush.msra.mxu2 %v2125_v54  ;;  %v2128_v25 = vld [vmem:[#allocation8] sm:$0x3] }
 0x26e   : > { %2026 = vmatpush.msra.mxu0 %v1998_v4  ;;  %v2061_v32 = vadd.f32 %v5314_v23, %v2060_v29  ;;  %2150 = vmatpush.msra.mxu1 %v2122_v55  ;;  %v2119_v4 = vld [vmem:[%s8007_s10 + $0x38] sm:$0xff] }
 0x26f   : > { %2173 = vmatpush.msra.mxu2 %v2123_v56 }
 0x270   : > { %2027 = vmatpush.msra.mxu0 %v1997_v5  ;;  %v2063_v35 = vsel %vm2062_vm1, %v5314_v23, %v2061_v32  ;;  %2151 = vmatpush.msra.mxu1 %v2120_v57  ;;  %v2116_v5 = vld [vmem:[%s8007_s10 + $0x20] sm:$0xff]  ;;  %v2278_v55 = vld [vmem:[%s8008_s16 + $0x8] sm:$0xff] }
 0x271   : > { %2174 = vmatpush.msra.mxu2 %v2121_v58 }
 0x272   : > { %2028 = vmatpush.msra.mxu0 %v1996_v6  ;;  %2152 = vmatpush.msra.mxu1 %v2118_v3  ;;  %v2117_v6 = vld [vmem:[%s8007_s10 + $0x28] sm:$0xff] }
 0x273   : > { %2175 = vmatpush.msra.mxu2 %v2119_v4 }
 0x274   : > { %2029 = vmatpush.msra.mxu0 %v1995_v7  ;;  %2153 = vmatpush.msra.mxu1 %v2116_v5  ;;  %v2114_v7 = vld [vmem:[%s8007_s10 + $0x10] sm:$0xff] }
 0x275   : > { %4826 = vmatmul.msk.f32.vlgmr.msra.gmra.mxu0 %vm2007_vm0, %v1993_v8  ;;  %2176 = vmatpush.msra.mxu2 %v2117_v6  ;;  %v2115_v8 = vld [vmem:[%s8007_s10 + $0x18] sm:$0xff] }
 0x276   : > { %2154 = vmatpush.msra.mxu1 %v2114_v7 }
 0x277   : > { %2177 = vmatpush.msra.mxu2 %v2115_v8 }
 0x27d   : > { %4827 = vmatmul.msk.f32.gmra.mxu0 %vm2007_vm0, %v1994_v9  ;;  %v2112_v9 = vld [vmem:[%s8007_s10] sm:$0xff] }
 0x27e   : > { %2155 = vmatpush.msra.mxu1 %v2112_v9 }
 0x2f2   : > { %v2031_v10 = vpop.f32.mrf.mxu0 }
 0x2f3   : > { %v2032_v12 = vadd.f32 %v5304_v11, %v2031_v10  ;;  %v2113_v10 = vld [vmem:[%s8007_s10 + $0x8] sm:$0xff] }
 0x2f4   : > { %2178 = vmatpush.msra.mxu2 %v2113_v10 }
 0x2f5   : > { %v7379_v16 = vadd.f32 %v2037_v13, %v2032_v12 }
 0x2f7   : > { %v2045_v19 = vsel %vm2007_vm0, %v7379_v16, 0.0 }
 0x2fa   : > { %v2034_v14 = vpop.f32.mrf.mxu0 }
 0x2fb   : > { %v2035_v17 = vadd.f32 %v5304_v11, %v2034_v14  ;;  %v2041_v11 = vld [vmem:[#allocation5] sm:$0xff]  ;;  %v2043_v14 = vld [vmem:[#allocation7] sm:$0xff] }
 0x2fd   : > { %v7381_v18 = vadd.f32 %v2038_v15, %v2035_v17 }
 0x2ff   : > { %v2046_v20 = vsel %vm2007_vm0, %v7381_v18, 0.0 }
 0x300   : > { %v2047_v21 = vadd.f32 %v2046_v20, %v2045_v19  ;;  %v2042_v20 = vld [vmem:[#allocation5 + $0x8] sm:$0xff] }
 0x302   : > { %2048 = vadd.xlane.f32.xlu0 %v2047_v21 }
 0x375   : > { %v2049_v26 = vpop.xlane.xlu0 %2048 }
 0x376   : > { %v2050_v27 = vrot.slane %v2049_v26, 4 }
 0x378   : > { %v2051_v28 = vadd.f32 %v2050_v27, %v2049_v26  ;;  %v2130_v26 = vperm.slane %v2128_v25, 0 }
 0x37a   : > { %v2052_v30 = vrot.slane %v2051_v28, 2 }
 0x37c   : > { %v2053_v31 = vadd.f32 %v2052_v30, %v2051_v28 }
 0x37e   : > { %v2054_v33 = vrot.slane %v2053_v31, 1 }
 0x380   : > { %v2055_v34 = vadd.f32 %v2054_v33, %v2053_v31  ;;  %v2131_v33 = vperm.slane %v2128_v25, 1 }
 0x382   : > { %4915 = vpush %v2055_v34 }
 0x383   : > { %4917 = vpush %v2063_v35 }
 0x3b3   : > { %s4916_s26 = spop %4915 }
 0x3b4   : > { %s7387_s21 = spop %4917 }
 0x3b5   : > { %s2065_s8 = smul.f32 %s7387_s21, %s4916_s26  ;;  %s7912_s26 = smov 32  }
 0x3b7   : > { %v2066_v36 = vstv %s2065_s8  ;;  %s7906_s8 = smov 80  }
 0x3b8   : > { %v7391_v37 = vsub.f32 %v7379_v16, %v2066_v36  ;;  %v7394_v38 = vsub.f32 %v7381_v18, %v2066_v36 }
 0x3ba   : > { %v2069_v39 = vmul.f32 %v7391_v37, %v7391_v37  ;;  %v2070_v40 = vmul.f32 %v7394_v38, %v7394_v38 }
 0x3bc   : > { %v2071_v41 = vsel %vm2007_vm0, %v2069_v39, 0.0  ;;  %v2072_v42 = vsel %vm2007_vm0, %v2070_v40, 0.0 }
 0x3bd   : > { %v2073_v43 = vadd.f32 %v2072_v42, %v2071_v41 }
 0x3bf   : > { %2074 = vadd.xlane.f32.xlu0 %v2073_v43 }
 0x432   : > { %v2075_v44 = vpop.xlane.xlu0 %2074 }
 0x433   : > { %v2076_v45 = vrot.slane %v2075_v44, 4 }
 0x435   : > { %v2077_v46 = vadd.f32 %v2076_v45, %v2075_v44 }
 0x437   : > { %v2078_v47 = vrot.slane %v2077_v46, 2 }
 0x439   : > { %v2079_v48 = vadd.f32 %v2078_v47, %v2077_v46 }
 0x43b   : > { %v2080_v49 = vrot.slane %v2079_v48, 1 }
 0x43d   : > { %v2081_v50 = vadd.f32 %v2080_v49, %v2079_v48 }
 0x43f   : > { %4919 = vpush %v2081_v50 }
 0x470   : > { %s4920_s2 = spop %4919 }
 0x471   : > { %s2091_s4 = smul.f32 %s4920_s2, %s7387_s21  ;;  %s8009_s2 = smov %s8008_s16 }
 0x472   : > { %v2277_v56 = vld [vmem:[%s8009_s2] sm:$0xff] }
 0x473   : > { %s2092_s28 = sadd.f32 1e-05, %s2091_s4  ;;  %s7910_s4 = smov 16  }
 0x475   : > { %v2093_v59 = vstv %s2092_s28  ;;  %s7908_s28 = smov 96  }
 0x476   : > { %5315 = vrsqrt.f32 %v2093_v59  ;;  %vm2100_vm3 = vweird.f32 %v2093_v59 }
 0x47c   : > { %v5316_v60 = vpop.eup %5315 }
 0x47d   : > { %v2095_v61 = vmul.f32 %v5316_v60, %v2093_v59  ;;  %vm2101_vm2 = vweird.f32 %v5316_v60 }
 0x47e   : > { %vm2102_vm4 = vmor %vm2100_vm3, %vm2101_vm2 }
 0x47f   : > { %v2096_v62 = vmul.f32 %v5316_v60, %v2095_v61 }
 0x481   : > { %v2097_v63 = vmul.f32 0.5, %v2096_v62 }
 0x483   : > { %v2098_v0 = vsub.f32 1.5, %v2097_v63 }
 0x485   : > { %v2099_v1 = vmul.f32 %v5316_v60, %v2098_v0 }
 0x487   : > { %v2103_v2 = vsel %vm2102_vm4, %v5316_v60, %v2099_v1 }
 0x488   : > { %4921 = vpush %v2103_v2 }
 0x4b9   : > { %s4922_s7 = spop %4921 }
 0x4ba   : > { %v2105_v12 = vstv %s4922_s7 }
 0x4bb   : > { %v2106_v13 = vmul.f32 %v2105_v12, %v7391_v37  ;;  %v2107_v17 = vmul.f32 %v2105_v12, %v7394_v38 }
 0x4bd   : > { %v2108_v15 = vmul.f32 %v2106_v13, %v2041_v11  ;;  %v2109_v21 = vmul.f32 %v2107_v17, %v2042_v20 }
 0x4bf   : > { %v2110_v19 = vadd.f32 %v2108_v15, %v2043_v14  ;;  %v2111_v23 = vadd.f32 %v2109_v21, %v2044_v22 }
 0x4c1   : > { %4828 = vmatmul.msk.f32.vlgmr.msra.gmra.mxu1 %vm2007_vm0, %v2110_v19  ;;  %4830 = vmatmul.msk.f32.vlgmr.msra.gmra.mxu2 %vm2007_vm0, %v2110_v19 }
 0x4c9   : > { %4829 = vmatmul.msk.f32.gmra.mxu1 %vm2007_vm0, %v2111_v23  ;;  %4831 = vmatmul.msk.f32.gmra.mxu2 %vm2007_vm0, %v2111_v23 }
 0x53e   : > { %v2157_v24 = vpop.f32.mrf.mxu1 }
 0x53f   : > { %v2158_v29 = vadd.f32 %v2157_v24, %v2130_v26 }
 0x544   : > { %v2180_v30 = vpop.f32.mrf.mxu2 }
 0x545   : > { %v7432_v36 = vadd.f32 %v2180_v30, %v2131_v33 }
 0x546   : > { %v2160_v27 = vpop.f32.mrf.mxu1 }
 0x547   : > { %v2161_v28 = vadd.f32 %v2160_v27, %v2130_v26 }
 0x549   : > { %2190 = vrot.lane.b32.xlu1 %v2161_v28, %s6575_s1 }
 0x54c   : > { %v2183_v32 = vpop.f32.mrf.mxu2 }
 0x54d   : > { %v7428_v34 = vadd.f32 %v2183_v32, %v2131_v33 }
 0x551   : > { %2188 = vrot.lane.b32.xlu1 %v2158_v29, %s6575_s1 }
 0x5bb   : > { %v2191_v31 = vpop.permute.xlu1 %2190 }
 0x5bc   : > { %4832 = vmatpush.xpose.msk.msra.mxu3 %vm2192_vm5, %v2191_v31 }
 0x5c3   : > { %v2189_v35 = vpop.permute.xlu1 %2188 }
 0x5c4   : > { %4833 = vmatpush.xpose.msk.msra.mxu3 %vm2192_vm5, %v2189_v35 }
 0x5c7   : > { %4834 = vmatmul.msk.f32.vlgmr.msra.gmra.mxu3 %vm2192_vm5, %v2158_v29 }
 0x5c8   : > { %2268 = vmatpush.msrb.mxu3 %v7428_v34 }
 0x5ca   : > { %2269 = vmatpush.msrb.mxu3 %v7432_v36 }
 0x5cc   : > { %2430 = vmatpush.msra.mxu3 %v2278_v55  ;;  %v5274_v55 = vpack.i.bf16 %v7432_v36, %v7428_v34 }
 0x5ce   : > { %2431 = vmatpush.msra.mxu3 %v2277_v56 }
 0x5cf   : > { %4835 = vmatmul.msk.f32.gmra.mxu3 %vm2192_vm5, %v2161_v28 }
 0x64a   : > { %v2218_v37 = vpop.f32.mrf.mxu3 }
 0x64b   : > { %v2224_v38 = vmul.f32 0.25, %v2218_v37 }
 0x64d   : > { %v2226_v39 = vsel %vm2192_vm5, %v2224_v38, -inf }
 0x64e   : > { %2227 = vmax.xlane.f32.xlu2 %v2226_v39 }
 0x652   : > { %v2221_v40 = vpop.f32.mrf.mxu3 }
 0x653   : > { %v2225_v41 = vmul.f32 0.25, %v2221_v40 }
 0x655   : > { %v2229_v42 = vsel %vm2192_vm5, %v2225_v41, -inf }
 0x656   : > { %2230 = vmax.xlane.f32.xlu2 %v2229_v42 }
 0x66e   : > { %2285 = vrot.lane.b32.xlu2 %v2161_v28, %s6576_s18 }
 0x676   : > { %2279 = vrot.lane.b32.xlu2 %v2158_v29, %s7915_s0 }
 0x67e   : > { %2445 = vrot.lane.b32.xlu2 %v2161_v28, %s7912_s26 }
 0x686   : > { %2443 = vrot.lane.b32.xlu2 %v2158_v29, %s7912_s26 }
 0x68e   : > { %2570 = vrot.lane.b32.xlu2 %v2158_v29, %s7906_s8 }
 0x696   : > { %2572 = vrot.lane.b32.xlu2 %v2161_v28, %s7906_s8 }
 0x6c1   : > { %v2228_v43 = vpop.xlane.xlu2 %2227 }
 0x6c2   : > { %v2232_v44 = vsub.f32 %v2224_v38, %v2228_v43 }
 0x6c4   : > { %v2234_v45 = vmul.f32 1.442695, %v2232_v44 }
 0x6c6   : > { %5317 = vpow2.f32 %v2234_v45 }
 0x6c9   : > { %v2231_v46 = vpop.xlane.xlu2 %2230 }
 0x6ca   : > { %v2233_v47 = vsub.f32 %v2225_v41, %v2231_v46 }
 0x6cc   : > { %v5318_v48 = vpop.eup %5317  ;;  %v2236_v49 = vmul.f32 1.442695, %v2233_v47 }
 0x6cd   : > { %v2238_v50 = vsel %vm2192_vm5, %v5318_v48, 0.0 }
 0x6ce   : > { %5319 = vpow2.f32 %v2236_v49  ;;  %2239 = vadd.xlane.f32.xlu0 %v2238_v50 }
 0x6d1   : > { %v2286_v51 = vpop.permute.xlu2 %2285 }
 0x6d2   : > { %4838 = vmatpush.xpose.msk.msrb.mxu0 %vm2192_vm5, %v2286_v51  ;;  %4913 = vmatpush.xpose.msk.msrb.mxu2 %vm2192_vm5, %v2286_v51 }
 0x6d4   : > { %v5320_v52 = vpop.eup %5319 }
 0x6d5   : > { %v2241_v53 = vsel %vm2192_vm5, %v5320_v52, 0.0 }
 0x6d6   : > { %2242 = vadd.xlane.f32.xlu1 %v2241_v53 }
 0x6d9   : > { %v2280_v57 = vpop.permute.xlu2 %2279 }
 0x6e1   : > { %v2446_v61 = vpop.permute.xlu2 %2445 }
 0x6e2   : > { %2283 = vrot.lane.b32.xlu0 %v2158_v29, %s6576_s18 }
 0x6e9   : > { %v2444_v1 = vpop.permute.xlu2 %2443 }
 0x6ea   : > { %2281 = vrot.lane.b32.xlu0 %v2161_v28, %s7915_s0 }
 0x6ef   : > { %2574 = vrot.lane.b32.xlu1 %v2158_v29, %s7910_s4 }
 0x6f1   : > { %v2571_v12 = vpop.permute.xlu2 %2570 }
 0x6f2   : > { %2576 = vrot.lane.b32.xlu0 %v2161_v28, %s7910_s4  ;;  %s8014_s4 = sld [smem:[#allocation88_spill]] }
 0x6f9   : > { %v2573_v17 = vpop.permute.xlu2 %2572 }
 0x6fa   : > { %2439 = vrot.lane.b32.xlu0 %v2158_v29, %s7908_s28 }
 0x702   : > { %2441 = vrot.lane.b32.xlu0 %v2161_v28, %s7908_s28 }
 0x741   : > { %v2240_v54 = vpop.xlane.xlu0 %2239 }
 0x742   : > { %5321 = vrcp.f32 %v2240_v54 }
 0x748   : > { %v5322_v58 = vpop.eup %5321 }
 0x749   : > { %v2243_v59 = vpop.xlane.xlu1 %2242  ;;  %v2246_v60 = vmul.f32 %v5322_v58, %v5318_v48 }
 0x74a   : > { %5323 = vrcp.f32 %v2243_v59 }
 0x74b   : > { %4836 = vmatmul.msk.f32.vlgmr.msrb.gmra.mxu3 %vm2192_vm5, %v2246_v60 }
 0x750   : > { %v5324_v62 = vpop.eup %5323 }
 0x751   : > { %v2247_v63 = vmul.f32 %v5324_v62, %v5320_v52 }
 0x753   : > { %4837 = vmatmul.msk.f32.gmra.mxu3 %vm2192_vm5, %v2247_v63 }
 0x754   : > { %v2284_v0 = vpop.permute.xlu0 %2283 }
 0x755   : > { %4839 = vmatpush.xpose.msk.msrb.mxu0 %vm2192_vm5, %v2284_v0  ;;  %4914 = vmatpush.xpose.msk.msrb.mxu2 %vm2192_vm5, %v2284_v0 }
 0x758   : > { %4840 = vmatmul.msk.f32.vlgmr.msrb.gmra.mxu0 %vm2192_vm5, %v2280_v57 }
 0x759   : > { %4848 = vmatpush.xpose.msk.msra.mxu0 %vm2192_vm5, %v2446_v61 }
 0x75c   : > { %v2282_v2 = vpop.permute.xlu0 %2281 }
 0x75d   : > { %4849 = vmatpush.xpose.msk.msra.mxu0 %vm2192_vm5, %v2444_v1  ;;  %4841 = vmatmul.msk.f32.vlgmr.msrb.gmra.mxu2 %vm2192_vm5, %v2282_v2 }
 0x761   : > { %v2575_v4 = vpop.permute.xlu1 %2574 }
 0x764   : > { %v2577_v3 = vpop.permute.xlu0 %2576 }
 0x765   : > { %4856 = vmatpush.xpose.msk.msrb.mxu3 %vm2192_vm5, %v2577_v3 }
 0x769   : > { %4857 = vmatpush.xpose.msk.msrb.mxu3 %vm2192_vm5, %v2575_v4 }
 0x76c   : > { %v2440_v5 = vpop.permute.xlu0 %2439 }
 0x76d   : > { %4850 = vmatmul.msk.f32.vlgmr.msra.gmra.mxu0 %vm2192_vm5, %v2440_v5 }
 0x774   : > { %v2442_v6 = vpop.permute.xlu0 %2441 }
 0x775   : > { %4851 = vmatmul.msk.f32.gmra.mxu0 %vm2192_vm5, %v2442_v6 }
 0x7ce   : > { %v2271_v7 = vpop.f32.mrf.mxu3 }
 0x7cf   : > { %4846 = vmatmul.msk.f32.vlgmr.msra.gmra.mxu3 %vm2192_vm5, %v2271_v7 }
 0x7d5   : > { %v2312_v8 = vpop.f32.mrf.mxu0 }
 0x7d6   : > { %v2318_v9 = vmul.f32 0.25, %v2312_v8  ;;  %v2274_v10 = vpop.f32.mrf.mxu3 }
 0x7d7   : > { %4847 = vmatmul.msk.f32.gmra.mxu3 %vm2192_vm5, %v2274_v10 }
 0x7d8   : > { %v2320_v11 = vsel %vm2192_vm5, %v2318_v9, -inf }
 0x7d9   : > { %2321 = vmax.xlane.f32.xlu0 %v2320_v11 }
 0x7df   : > { %4858 = vmatmul.msk.f32.vlgmr.msrb.gmra.mxu3 %vm2192_vm5, %v2571_v12 }
 0x7e0   : > { %v2315_v13 = vpop.f32.mrf.mxu2 }
 0x7e1   : > { %v2319_v14 = vmul.f32 0.25, %v2315_v13 }
 0x7e3   : > { %v2323_v15 = vsel %vm2192_vm5, %v2319_v14, -inf }
 0x7e4   : > { %2324 = vmax.xlane.f32.xlu2 %v2323_v15 }
 0x7e7   : > { %4859 = vmatmul.msk.f32.gmra.mxu3 %vm2192_vm5, %v2573_v17 }
 0x7ea   : > { %v2472_v19 = vpop.f32.mrf.mxu0 }
 0x7eb   : > { %v2478_v20 = vmul.f32 0.25, %v2472_v19 }
 0x7ed   : > { %v2480_v21 = vsel %vm2192_vm5, %v2478_v20, -inf }
 0x7ee   : > { %2481 = vmax.xlane.f32.xlu1 %v2480_v21 }
 0x7f2   : > { %v2475_v22 = vpop.f32.mrf.mxu0 }
 0x7f3   : > { %v2479_v23 = vmul.f32 0.25, %v2475_v22 }
 0x7f5   : > { %v2483_v24 = vsel %vm2192_vm5, %v2479_v23, -inf }
 0x7f6   : > { %2484 = vmax.xlane.f32.xlu0 %v2483_v24  ;;  %v2379_v24 = vld [vmem:[%s8009_s2 + $0x10] sm:$0xff] }
 0x84c   : > { %v2322_v25 = vpop.xlane.xlu0 %2321 }
 0x84d   : > { %v2326_v26 = vsub.f32 %v2318_v9, %v2322_v25  ;;  %v2538_v25 = vld [vmem:[%s8009_s2 + $0x28] sm:$0xff] }
 0x84f   : > { %v2328_v27 = vmul.f32 1.442695, %v2326_v26 }
 0x851   : > { %5325 = vpow2.f32 %v2328_v27 }
 0x852   : > { %v7477_v28 = vpop.f32.mrf.mxu3 }
 0x857   : > { %v5326_v29 = vpop.eup %5325  ;;  %v2325_v32 = vpop.xlane.xlu2 %2324 }
 0x858   : > { %v2332_v30 = vsel %vm2192_vm5, %v5326_v29, 0.0  ;;  %v2327_v39 = vsub.f32 %v2319_v14, %v2325_v32  ;;  %v2537_v32 = vld [vmem:[%s8009_s2 + $0x20] sm:$0xff] }
 0x859   : > { %2333 = vadd.xlane.f32.xlu0 %v2332_v30 }
 0x85a   : > { %v7480_v31 = vpop.f32.mrf.mxu3  ;;  %v2330_v42 = vmul.f32 1.442695, %v2327_v39  ;;  %v2668_v39 = vld [vmem:[%s8009_s2 + $0x30] sm:$0xff] }
 0x861   : > { %v2482_v33 = vpop.xlane.xlu1 %2481 }
 0x862   : > { %v2486_v35 = vsub.f32 %v2478_v20, %v2482_v33  ;;  %v2603_v37 = vpop.f32.mrf.mxu3 }
 0x863   : > { %v2609_v38 = vmul.f32 0.25, %v2603_v37 }
 0x864   : > { %v2488_v40 = vmul.f32 1.442695, %v2486_v35 }
 0x865   : > { %v2611_v41 = vsel %vm2192_vm5, %v2609_v38, -inf }
 0x866   : > { %5327 = vpow2.f32 %v2488_v40  ;;  %2612 = vmax.xlane.f32.xlu2 %v2611_v41 }
 0x867   : > { %5329 = vpow2.f32 %v2330_v42 }
 0x869   : > { %v2485_v43 = vpop.xlane.xlu0 %2484 }
 0x86a   : > { %v2487_v44 = vsub.f32 %v2479_v23, %v2485_v43  ;;  %v2606_v45 = vpop.f32.mrf.mxu3  ;;  %v2380_v23 = vld [vmem:[%s8009_s2 + $0x18] sm:$0xff] }
 0x86b   : > { %v2610_v46 = vmul.f32 0.25, %v2606_v45  ;;  %2401 = vmatpush.msra.mxu2 %v2380_v23 }
 0x86c   : > { %v5328_v47 = vpop.eup %5327  ;;  %v2490_v48 = vmul.f32 1.442695, %v2487_v44 }
 0x86d   : > { %v2492_v49 = vsel %vm2192_vm5, %v5328_v47, 0.0  ;;  %v2614_v50 = vsel %vm2192_vm5, %v2610_v46, -inf  ;;  %v5330_v51 = vpop.eup %5329  ;;  %2402 = vmatpush.msra.mxu2 %v2379_v24 }
 0x86e   : > { %5331 = vpow2.f32 %v2490_v48  ;;  %2493 = vadd.xlane.f32.xlu0 %v2492_v49  ;;  %2615 = vmax.xlane.f32.xlu1 %v2614_v50  ;;  %v2335_v54 = vsel %vm2192_vm5, %v5330_v51, 0.0 }
 0x86f   : > { %2559 = vmatpush.msrb.mxu2 %v2538_v25 }
 0x871   : > { %2560 = vmatpush.msrb.mxu2 %v2537_v32 }
 0x874   : > { %v5332_v52 = vpop.eup %5331 }
 0x875   : > { %v2495_v53 = vsel %vm2192_vm5, %v5332_v52, 0.0 }
 0x876   : > { %2496 = vadd.xlane.f32.xlu0 %v2495_v53  ;;  %2336 = vadd.xlane.f32.xlu1 %v2335_v54 }
 0x87e   : > { %5275 = vrot.lane.b32.xlu2 %v5274_v55, %s7915_s0 }
 0x886   : > { %5285 = vrot.lane.b32.xlu2 %v5274_v55, %s7906_s8  ;;  %s8010_s8 = sld [smem:[#allocation83_spill]] }
 0x88f   : > { %5280 = vrot.lane.b32.xlu1 %v5274_v55, %s7908_s28 }
 0x8cc   : > { %v2334_v57 = vpop.xlane.xlu0 %2333 }
 0x8cd   : > { %5333 = vrcp.f32 %v2334_v57 }
 0x8d3   : > { %v5334_v63 = vpop.eup %5333 }
 0x8d4   : > { %v2340_v3 = vmul.f32 %v5334_v63, %v5326_v29 }
 0x8d9   : > { %v2613_v56 = vpop.xlane.xlu2 %2612 }
 0x8da   : > { %v2617_v58 = vsub.f32 %v2609_v38, %v2613_v56  ;;  %v2669_v38 = vld [vmem:[%s8009_s2 + $0x38] sm:$0xff] }
 0x8dc   : > { %v2619_v59 = vmul.f32 1.442695, %v2617_v58 }
 0x8de   : > { %5335 = vpow2.f32 %v2619_v59 }
 0x8e1   : > { %v2616_v60 = vpop.xlane.xlu1 %2615  ;;  %v5276_v62 = vpop.permute.xlu2 %5275 }
 0x8e2   : > { %v2618_v61 = vsub.f32 %v2610_v46, %v2616_v60  ;;  %v5277_v0 = vunpack.i.l.bf16 %v5276_v62  ;;  %v5278_v36 = vunpack.i.h.bf16 %v5276_v62  ;;  %v2494_v12 = vpop.xlane.xlu0 %2493 }
 0x8e4   : > { %v5336_v1 = vpop.eup %5335  ;;  %v2621_v2 = vmul.f32 1.442695, %v2618_v61  ;;  %2370 = vmatpush.msrb.mxu1 %v5277_v0 }
 0x8e5   : > { %v2623_v34 = vsel %vm2192_vm5, %v5336_v1, 0.0 }
 0x8e6   : > { %5337 = vpow2.f32 %v2621_v2  ;;  %2624 = vadd.xlane.f32.xlu0 %v2623_v34  ;;  %2371 = vmatpush.msrb.mxu1 %v5278_v36 }
 0x8e7   : > { %4842 = vmatmul.msk.f32.vlgmr.msrb.gmra.mxu1 %vm2192_vm5, %v2340_v3 }
 0x8e9   : > { %v2337_v4 = vpop.xlane.xlu1 %2336  ;;  %v5286_v5 = vpop.permute.xlu2 %5285 }
 0x8ea   : > { %5339 = vrcp.f32 %v2337_v4  ;;  %v5287_v6 = vunpack.i.l.bf16 %v5286_v5  ;;  %v5288_v8 = vunpack.i.h.bf16 %v5286_v5  ;;  %v2497_v13 = vpop.xlane.xlu0 %2496 }
 0x8eb   : > { %5341 = vrcp.f32 %v2494_v12 }
 0x8ec   : > { %v5338_v7 = vpop.eup %5337  ;;  %2659 = vmatpush.msrb.mxu0 %v5287_v6  ;;  %5343 = vrcp.f32 %v2497_v13 }
 0x8ed   : > { %v2626_v9 = vsel %vm2192_vm5, %v5338_v7, 0.0 }
 0x8ee   : > { %2627 = vadd.xlane.f32.xlu0 %v2626_v9  ;;  %2660 = vmatpush.msrb.mxu0 %v5288_v8 }
 0x8f0   : > { %v5340_v10 = vpop.eup %5339 }
 0x8f1   : > { %v2341_v11 = vmul.f32 %v5340_v10, %v5330_v51  ;;  %v5342_v15 = vpop.eup %5341 }
 0x8f2   : > { %v2500_v20 = vmul.f32 %v5342_v15, %v5328_v47  ;;  %v5344_v21 = vpop.eup %5343 }
 0x8f3   : > { %4843 = vmatmul.msk.f32.gmra.mxu1 %vm2192_vm5, %v2341_v11  ;;  %v2501_v22 = vmul.f32 %v5344_v21, %v5332_v52  ;;  %v5305_v52 = vld [vmem:[#allocation10] ss:$0 sm:$0xff]  ;;  %v2785_v21 = vld [vmem:[%s8010_s8 + $0x28] sm:$0xff] }
 0x901   : > { %v5281_v14 = vpop.permute.xlu1 %5280 }
 0x902   : > { %v5282_v17 = vunpack.i.l.bf16 %v5281_v14  ;;  %v5283_v19 = vunpack.i.h.bf16 %v5281_v14 }
 0x904   : > { %2528 = vmatpush.msra.mxu1 %v5282_v17 }
 0x906   : > { %2529 = vmatpush.msra.mxu1 %v5283_v19  ;;  %v2787_v19 = vld [vmem:[%s8010_s8 + $0x38] sm:$0xff] }
 0x907   : > { %4852 = vmatmul.msk.f32.vlgmr.msra.gmra.mxu1 %vm2192_vm5, %v2500_v20  ;;  %v2786_v20 = vld [vmem:[%s8010_s8 + $0x30] sm:$0xff] }
 0x908   : > { %2690 = vmatpush.msrb.mxu1 %v2669_v38  ;;  %v2780_v38 = vld [vmem:[%s8010_s8] sm:$0xff] }
 0x90a   : > { %2691 = vmatpush.msrb.mxu1 %v2668_v39  ;;  %v2709_v39 = vld [vmem:[#allocation11] sm:$0xff] }
 0x90f   : > { %4853 = vmatmul.msk.f32.gmra.mxu1 %vm2192_vm5, %v2501_v22  ;;  %v2784_v22 = vld [vmem:[%s8010_s8 + $0x20] sm:$0xff] }
 0x959   : > { %v2625_v26 = vpop.xlane.xlu0 %2624 }
 0x95a   : > { %5345 = vrcp.f32 %v2625_v26 }
 0x960   : > { %v5346_v27 = vpop.eup %5345 }
 0x961   : > { %v2631_v29 = vmul.f32 %v5346_v27, %v5336_v1  ;;  %v2628_v30 = vpop.xlane.xlu0 %2627 }
 0x962   : > { %5347 = vrcp.f32 %v2628_v30 }
 0x963   : > { %4860 = vmatmul.msk.f32.vlgmr.msrb.gmra.mxu0 %vm2192_vm5, %v2631_v29 }
 0x964   : > { %v2373_v33 = vpop.f32.mrf.mxu1 }
 0x965   : > { %4844 = vmatmul.msk.f32.vlgmr.msra.gmra.mxu2 %vm2192_vm5, %v2373_v33  ;;  %v2783_v33 = vld [vmem:[%s8010_s8 + $0x18] sm:$0xff] }
 0x966   : > { %2806 = vmatpush.msra.mxu2 %v2787_v19 }
 0x968   : > { %v5348_v35 = vpop.eup %5347  ;;  %2807 = vmatpush.msra.mxu2 %v2786_v20 }
 0x969   : > { %v2632_v37 = vmul.f32 %v5348_v35, %v5338_v7  ;;  %v2782_v35 = vld [vmem:[%s8010_s8 + $0x10] sm:$0xff] }
 0x96a   : > { %2808 = vmatpush.msra.mxu2 %v2785_v21 }
 0x96b   : > { %4861 = vmatmul.msk.f32.gmra.mxu0 %vm2192_vm5, %v2632_v37  ;;  %v2781_v37 = vld [vmem:[%s8010_s8 + $0x8] sm:$0xff] }
 0x96c   : > { %2809 = vmatpush.msra.mxu2 %v2784_v22 }
 0x96e   : > { %2810 = vmatpush.msra.mxu2 %v2783_v33 }
 0x970   : > { %v2376_v40 = vpop.f32.mrf.mxu1  ;;  %2811 = vmatpush.msra.mxu2 %v2782_v35 }
 0x971   : > { %4845 = vmatmul.msk.f32.gmra.mxu2 %vm2192_vm5, %v2376_v40 }
 0x972   : > { %2812 = vmatpush.msra.mxu2 %v2781_v37 }
 0x974   : > { %2813 = vmatpush.msra.mxu2 %v2780_v38 }
 0x984   : > { %v2531_v41 = vpop.f32.mrf.mxu1 }
 0x985   : > { %4854 = vmatmul.msk.f32.vlgmr.msrb.gmra.mxu2 %vm2192_vm5, %v2531_v41 }
 0x98c   : > { %v2534_v42 = vpop.f32.mrf.mxu1 }
 0x98d   : > { %4855 = vmatmul.msk.f32.gmra.mxu2 %vm2192_vm5, %v2534_v42  ;;  %v2711_v42 = vld [vmem:[#allocation13] sm:$0xff] }
 0x9e0   : > { %v2662_v43 = vpop.f32.mrf.mxu0 }
 0x9e1   : > { %4862 = vmatmul.msk.f32.vlgmr.msrb.gmra.mxu1 %vm2192_vm5, %v2662_v43 }
 0x9e8   : > { %v2665_v44 = vpop.f32.mrf.mxu0  ;;  %v2404_v45 = vpop.f32.mrf.mxu2 }
 0x9e9   : > { %4863 = vmatmul.msk.f32.gmra.mxu1 %vm2192_vm5, %v2665_v44  ;;  %v2434_v48 = vadd.f32 %v7477_v28, %v2404_v45 }
 0x9f4   : > { %v2407_v46 = vpop.f32.mrf.mxu2 }
 0x9f5   : > { %v2437_v54 = vadd.f32 %v7480_v31, %v2407_v46  ;;  %v2710_v46 = vld [vmem:[#allocation11 + $0x8] sm:$0xff] }
 0xa08   : > { %v2562_v47 = vpop.f32.mrf.mxu2 }
 0xa09   : > { %v2568_v50 = vadd.f32 %v2562_v47, %v2434_v48  ;;  %v2712_v48 = vld [vmem:[#allocation13 + $0x8] sm:$0xff] }
 0xa10   : > { %v2565_v53 = vpop.f32.mrf.mxu2 }
 0xa11   : > { %v2569_v55 = vadd.f32 %v2565_v53, %v2437_v54 }
 0xa5e   : > { %v2693_v49 = vpop.f32.mrf.mxu1 }
 0xa5f   : > { %v2699_v51 = vadd.f32 %v2693_v49, %v2568_v50 }
 0xa61   : > { %v2705_v56 = vadd.f32 %v5305_v52, %v2699_v51 }
 0xa63   : > { %v7515_v59 = vadd.f32 %v2705_v56, %v7379_v16 }
 0xa65   : > { %v2713_v28 = vsel %vm2007_vm0, %v7515_v59, 0.0 }
 0xa66   : > { %v2696_v57 = vpop.f32.mrf.mxu1 }
 0xa67   : > { %v2700_v58 = vadd.f32 %v2696_v57, %v2569_v55 }
 0xa69   : > { %v2706_v60 = vadd.f32 %v5305_v52, %v2700_v58 }
 0xa6b   : > { %v7518_v61 = vadd.f32 %v2706_v60, %v7381_v18 }
 0xa6d   : > { %v2714_v62 = vsel %vm2007_vm0, %v7518_v61, 0.0 }
 0xa6e   : > { %v2715_v63 = vadd.f32 %v2714_v62, %v2713_v28 }
 0xa70   : > { %2716 = vadd.xlane.f32.xlu2 %v2715_v63 }
 0xae3   : > { %v2717_v31 = vpop.xlane.xlu2 %2716 }
 0xae4   : > { %v2718_v0 = vrot.slane %v2717_v31, 4 }
 0xae6   : > { %v2719_v1 = vadd.f32 %v2718_v0, %v2717_v31 }
 0xae8   : > { %v2720_v2 = vrot.slane %v2719_v1, 2 }
 0xaea   : > { %v2721_v34 = vadd.f32 %v2720_v2, %v2719_v1 }
 0xaec   : > { %v2722_v16 = vrot.slane %v2721_v34, 1 }
 0xaee   : > { %v2723_v36 = vadd.f32 %v2722_v16, %v2721_v34 }
 0xaf0   : > { %4923 = vpush %v2723_v36 }
 0xb21   : > { %s4924_s7 = spop %4923 }
 0xb22   : > { %s2733_s16 = smul.f32 %s4924_s7, %s7387_s21 }
 0xb24   : > { %v2734_v18 = vstv %s2733_s16 }
 0xb25   : > { %v2735_v3 = vsub.f32 %v7515_v59, %v2734_v18  ;;  %v2736_v4 = vsub.f32 %v7518_v61, %v2734_v18 }
 0xb27   : > { %v2737_v5 = vmul.f32 %v2735_v3, %v2735_v3  ;;  %v2738_v6 = vmul.f32 %v2736_v4, %v2736_v4 }
 0xb29   : > { %v2739_v7 = vsel %vm2007_vm0, %v2737_v5, 0.0  ;;  %v2740_v8 = vsel %vm2007_vm0, %v2738_v6, 0.0 }
 0xb2a   : > { %v2741_v9 = vadd.f32 %v2740_v8, %v2739_v7 }
 0xb2c   : > { %2742 = vadd.xlane.f32.xlu0 %v2741_v9 }
 0xb9f   : > { %v2743_v10 = vpop.xlane.xlu0 %2742 }
 0xba0   : > { %v2744_v11 = vrot.slane %v2743_v10, 4 }
 0xba2   : > { %v2745_v12 = vadd.f32 %v2744_v11, %v2743_v10 }
 0xba4   : > { %v2746_v13 = vrot.slane %v2745_v12, 2 }
 0xba6   : > { %v2747_v14 = vadd.f32 %v2746_v13, %v2745_v12 }
 0xba8   : > { %v2748_v15 = vrot.slane %v2747_v14, 1 }
 0xbaa   : > { %v2749_v17 = vadd.f32 %v2748_v15, %v2747_v14 }
 0xbac   : > { %4925 = vpush %v2749_v17 }
 0xbdd   : > { %s4926_s7 = spop %4925 }
 0xbde   : > { %s2759_s16 = smul.f32 %s4926_s7, %s7387_s21 }
 0xbe0   : > { %s2760_s28 = sadd.f32 1e-05, %s2759_s16 }
 0xbe1   : > { %s8012_s16 = sld [smem:[#allocation84_spill]] }
 0xbe2   : > { %v2761_v23 = vstv %s2760_s28  ;;  %s8011_s28 = sld [smem:[#allocation85_spill]] }
 0xbe3   : > { %5349 = vrsqrt.f32 %v2761_v23  ;;  %vm2768_vm7 = vweird.f32 %v2761_v23 }
 0xbe7   : > { %v5306_v52 = vld [vmem:[%s8012_s16] ss:$0 sm:$0xff] }
 0xbe8   : > { %v2916_v50 = vld [vmem:[%s8011_s28 + $0x78] sm:$0xff]  ;;  %v2915_v51 = vld [vmem:[%s8011_s28 + $0x70] sm:$0xff]  ;;  %v2914_v53 = vld [vmem:[%s8011_s28 + $0x68] sm:$0xff] }
 0xbe9   : > { %v5350_v24 = vpop.eup %5349  ;;  %2921 = vmatpush.msra.mxu3 %v2916_v50  ;;  %v2913_v54 = vld [vmem:[%s8011_s28 + $0x60] sm:$0xff]  ;;  %v2912_v57 = vld [vmem:[%s8011_s28 + $0x58] sm:$0xff]  ;;  %v2911_v60 = vld [vmem:[%s8011_s28 + $0x50] sm:$0xff] }
 0xbea   : > { %v2763_v25 = vmul.f32 %v5350_v24, %v2761_v23  ;;  %vm2769_vm6 = vweird.f32 %v5350_v24  ;;  %v2910_v62 = vld [vmem:[%s8011_s28 + $0x48] sm:$0xff]  ;;  %v2909_v31 = vld [vmem:[%s8011_s28 + $0x40] sm:$0xff]  ;;  %v2908_v34 = vld [vmem:[%s8011_s28 + $0x38] sm:$0xff] }
 0xbeb   : > { %vm2770_vm8 = vmor %vm2768_vm7, %vm2769_vm6  ;;  %2922 = vmatpush.msra.mxu3 %v2915_v51  ;;  %v2907_v16 = vld [vmem:[%s8011_s28 + $0x30] sm:$0xff]  ;;  %v2906_v18 = vld [vmem:[%s8011_s28 + $0x28] sm:$0xff] }
 0xbec   : > { %v2764_v26 = vmul.f32 %v5350_v24, %v2763_v25  ;;  %v2904_v7 = vld [vmem:[%s8011_s28 + $0x18] sm:$0xff]  ;;  %v2903_v10 = vld [vmem:[%s8011_s28 + $0x10] sm:$0xff]  ;;  %v2902_v13 = vld [vmem:[%s8011_s28 + $0x8] sm:$0xff] }
 0xbed   : > { %2923 = vmatpush.msra.mxu3 %v2914_v53  ;;  %v2901_v17 = vld [vmem:[%s8011_s28] sm:$0xff] }
 0xbee   : > { %v2765_v27 = vmul.f32 0.5, %v2764_v26 }
 0xbef   : > { %2924 = vmatpush.msra.mxu3 %v2913_v54 }
 0xbf0   : > { %v2766_v29 = vsub.f32 1.5, %v2765_v27 }
 0xbf1   : > { %2925 = vmatpush.msra.mxu3 %v2912_v57 }
 0xbf2   : > { %v2767_v30 = vmul.f32 %v5350_v24, %v2766_v29 }
 0xbf3   : > { %2926 = vmatpush.msra.mxu3 %v2911_v60 }
 0xbf4   : > { %v2771_v32 = vsel %vm2770_vm8, %v5350_v24, %v2767_v30 }
 0xbf5   : > { %4927 = vpush %v2771_v32  ;;  %2927 = vmatpush.msra.mxu3 %v2910_v62 }
 0xbf7   : > { %2928 = vmatpush.msra.mxu3 %v2909_v31  ;;  %v6582_v31 = vmov -1.0  }
 0xbf9   : > { %2929 = vmatpush.msra.mxu3 %v2908_v34 }
 0xbfb   : > { %2930 = vmatpush.msra.mxu3 %v2907_v16 }
 0xbfd   : > { %2931 = vmatpush.msra.mxu3 %v2906_v18 }
 0xc26   : > { %s4928_s7 = spop %4927 }
 0xc27   : > { %v2773_v40 = vstv %s4928_s7  ;;  %s8013_s7 = sld [smem:[#allocation86_spill]] }
 0xc28   : > { %v2774_v41 = vmul.f32 %v2773_v40, %v2735_v3  ;;  %v2775_v44 = vmul.f32 %v2773_v40, %v2736_v4  ;;  %v2905_v4 = vld [vmem:[%s8011_s28 + $0x20] sm:$0xff] }
 0xc29   : > { %2932 = vmatpush.msra.mxu3 %v2905_v4 }
 0xc2a   : > { %v2776_v43 = vmul.f32 %v2774_v41, %v2709_v39  ;;  %v2777_v47 = vmul.f32 %v2775_v44, %v2710_v46 }
 0xc2b   : > { %2933 = vmatpush.msra.mxu3 %v2904_v7 }
 0xc2c   : > { %v2778_v45 = vadd.f32 %v2776_v43, %v2711_v42  ;;  %v2779_v49 = vadd.f32 %v2777_v47, %v2712_v48 }
 0xc2d   : > { %2934 = vmatpush.msra.mxu3 %v2903_v10 }
 0xc2e   : > { %4864 = vmatmul.msk.f32.vlgmr.msra.gmra.mxu2 %vm2007_vm0, %v2778_v45 }
 0xc2f   : > { %2935 = vmatpush.msra.mxu3 %v2902_v13  ;;  %v5307_v13 = vld [vmem:[%s8013_s7] ss:$0 sm:$0xff] }
 0xc31   : > { %2936 = vmatpush.msra.mxu3 %v2901_v17 }
 0xc36   : > { %4865 = vmatmul.msk.f32.gmra.mxu2 %vm2007_vm0, %v2779_v49 }
 0xcb1   : > { %v2815_v55 = vpop.f32.mrf.mxu2 }
 0xcb2   : > { %v7545_v56 = vadd.f32 %v5306_v52, %v2815_v55 }
 0xcb4   : > { %v7549_v58 = vmul.f32 0.70710677, %v7545_v56  ;;  %v2821_v18 = vmul.f32 0.5, %v7545_v56 }
 0xcb6   : > { %v2829_v28 = vand.u32 2147483647, %v7549_v58  ;;  %vm2825_vm2 = vcmp.ge.f32.partialorder %v7549_v58, 0.0 }
 0xcb8   : > { %v2831_v63 = vmul.f32 0.3275911, %v2829_v28  ;;  %v2883_v24 = vsub.f32 0.0, %v2829_v28 }
 0xcb9   : > { %v2818_v0 = vpop.f32.mrf.mxu2 }
 0xcba   : > { %v2833_v1 = vadd.f32 1.0, %v2831_v63  ;;  %v7555_v2 = vadd.f32 %v5306_v52, %v2818_v0  ;;  %v2885_v32 = vmul.f32 %v2883_v24, %v2829_v28  ;;  %v2827_v0 = vsel %vm2825_vm2, 1.0, %v6582_v31 }
 0xcbc   : > { %5351 = vrcp.f32 %v2833_v1  ;;  %v7560_v36 = vmul.f32 0.70710677, %v7555_v2  ;;  %v2846_v12 = vand.u32 2147483648, %v2833_v1  ;;  %v2844_v15 = vand.u32 2147483647, %v2833_v1 }
 0xcbd   : > { %vm2840_vm10 = vweird.f32 %v2833_v1  ;;  %v2887_v41 = vmul.f32 1.442695, %v2885_v32  ;;  %v2822_v10 = vmul.f32 0.5, %v7555_v2 }
 0xcbe   : > { %v2830_v3 = vand.u32 2147483647, %v7560_v36  ;;  %v2847_v20 = vor.u32 1.1754944e-38, %v2846_v12  ;;  %vm2845_vm12 = vcmp.eq.f32.partialorder %v2844_v15, 8.507059e+37  ;;  %vm2826_vm3 = vcmp.ge.f32.partialorder %v7560_v36, 0.0 }
 0xcc0   : > { %v2832_v5 = vmul.f32 0.3275911, %v2830_v3  ;;  %v2884_v44 = vsub.f32 0.0, %v2830_v3 }
 0xcc2   : > { %v5352_v6 = vpop.eup %5351  ;;  %v2834_v9 = vadd.f32 1.0, %v2832_v5  ;;  %v2886_v50 = vmul.f32 %v2884_v44, %v2830_v3 }
 0xcc3   : > { %v2836_v8 = vmul.f32 %v5352_v6, %v2833_v1  ;;  %vm2841_vm9 = vweird.f32 %v5352_v6 }
 0xcc4   : > { %5353 = vrcp.f32 %v2834_v9  ;;  %vm2842_vm11 = vmor %vm2840_vm10, %vm2841_vm9  ;;  %v2861_v30 = vand.u32 2147483648, %v2834_v9  ;;  %v2859_v35 = vand.u32 2147483647, %v2834_v9  ;;  %vm2855_vm14 = vweird.f32 %v2834_v9 }
 0xcc5   : > { %v2837_v11 = vsub.f32 1.0, %v2836_v8  ;;  %5355 = vpow2.f32 %v2887_v41  ;;  %v2889_v55 = vmul.f32 1.442695, %v2886_v50  ;;  %v2828_v8 = vsel %vm2826_vm3, 1.0, %v6582_v31 }
 0xcc6   : > { %v2862_v40 = vor.u32 1.1754944e-38, %v2861_v30  ;;  %vm2860_vm1 = vcmp.eq.f32.partialorder %v2859_v35, 8.507059e+37 }
 0xcc7   : > { %v2838_v14 = vmul.f32 %v5352_v6, %v2837_v11  ;;  %5357 = vpow2.f32 %v2889_v55 }
 0xcc9   : > { %v2839_v19 = vadd.f32 %v5352_v6, %v2838_v14 }
 0xcca   : > { %v5354_v21 = vpop.eup %5353 }
 0xccb   : > { %v2843_v22 = vsel %vm2842_vm11, %v5352_v6, %v2839_v19  ;;  %v2851_v25 = vmul.f32 %v5354_v21, %v2834_v9  ;;  %vm2856_vm13 = vweird.f32 %v5354_v21  ;;  %v5356_v57 = vpop.eup %5355 }
 0xccc   : > { %v2848_v23 = vsel %vm2845_vm12, %v2847_v20, %v2843_v22  ;;  %vm2857_vm15 = vmor %vm2855_vm14, %vm2856_vm13 }
 0xccd   : > { %v2865_v26 = vmul.f32 1.0614054, %v2848_v23  ;;  %v2852_v27 = vsub.f32 1.0, %v2851_v25  ;;  %v5358_v5 = vpop.eup %5357 }
 0xccf   : > { %v2867_v29 = vadd.f32 -1.4531521, %v2865_v26  ;;  %v2853_v33 = vmul.f32 %v5354_v21, %v2852_v27 }
 0xcd1   : > { %v2869_v37 = vmul.f32 %v2867_v29, %v2848_v23  ;;  %v2854_v38 = vadd.f32 %v5354_v21, %v2853_v33 }
 0xcd3   : > { %v2871_v39 = vadd.f32 1.4214138, %v2869_v37  ;;  %v2858_v42 = vsel %vm2857_vm15, %v5354_v21, %v2854_v38 }
 0xcd4   : > { %v2863_v45 = vsel %vm2860_vm1, %v2862_v40, %v2858_v42 }
 0xcd5   : > { %v2873_v43 = vmul.f32 %v2871_v39, %v2848_v23  ;;  %v2866_v46 = vmul.f32 1.0614054, %v2863_v45 }
 0xcd7   : > { %v2875_v47 = vadd.f32 -0.28449672, %v2873_v43  ;;  %v2868_v48 = vadd.f32 -1.4531521, %v2866_v46 }
 0xcd9   : > { %v2877_v49 = vmul.f32 %v2875_v47, %v2848_v23  ;;  %v2870_v51 = vmul.f32 %v2868_v48, %v2863_v45 }
 0xcdb   : > { %v2879_v52 = vadd.f32 0.2548296, %v2877_v49  ;;  %v2872_v53 = vadd.f32 1.4214138, %v2870_v51 }
 0xcdd   : > { %v2881_v54 = vmul.f32 %v2879_v52, %v2848_v23  ;;  %v2874_v60 = vmul.f32 %v2872_v53, %v2863_v45 }
 0xcdf   : > { %v2891_v28 = vmul.f32 %v5356_v57, %v2881_v54  ;;  %v2876_v62 = vadd.f32 -0.28449672, %v2874_v60 }
 0xce1   : > { %v2893_v63 = vsub.f32 1.0, %v2891_v28  ;;  %v2878_v1 = vmul.f32 %v2876_v62, %v2863_v45 }
 0xce3   : > { %v2895_v34 = vmul.f32 %v2893_v63, %v2827_v0  ;;  %v2880_v16 = vadd.f32 0.2548296, %v2878_v1 }
 0xce5   : > { %v2897_v3 = vadd.f32 1.0, %v2895_v34  ;;  %v2882_v4 = vmul.f32 %v2880_v16, %v2863_v45 }
 0xce7   : > { %v2899_v6 = vmul.f32 %v2897_v3, %v2821_v18  ;;  %v2892_v58 = vmul.f32 %v5358_v5, %v2882_v4 }
 0xce9   : > { %2937 = vmatmul.f32.vlgmr.msra.gmra.mxu3 %v2899_v6  ;;  %v2894_v7 = vsub.f32 1.0, %v2892_v58 }
 0xceb   : > { %v2896_v9 = vmul.f32 %v2894_v7, %v2828_v8 }
 0xced   : > { %v2898_v11 = vadd.f32 1.0, %v2896_v9 }
 0xcef   : > { %v2900_v12 = vmul.f32 %v2898_v11, %v2822_v10 }
 0xcf1   : > { %2940 = vmatmul.f32.gmra.mxu3 %v2900_v12 }
 0xd6c   : > { %v2938_v14 = vpop.f32.mrf.mxu3 }
 0xd6d   : > { %v7576_v56 = vadd.f32 %v5307_v13, %v2938_v14 }
 0xd6f   : > { %v7579_v15 = vmul.f32 0.70710677, %v7576_v56 }
 0xd71   : > { %v2952_v36 = vand.u32 2147483647, %v7579_v15  ;;  %vm2948_vm13 = vcmp.ge.f32.partialorder %v7579_v15, 0.0 }
 0xd72   : > { %v2950_v10 = vsel %vm2948_vm13, 1.0, %v6582_v31 }
 0xd73   : > { %v2954_v17 = vmul.f32 0.3275911, %v2952_v36  ;;  %v3006_v40 = vsub.f32 0.0, %v2952_v36 }
 0xd74   : > { %v2941_v20 = vpop.f32.mrf.mxu3 }
 0xd75   : > { %v2956_v19 = vadd.f32 1.0, %v2954_v17  ;;  %v7582_v21 = vadd.f32 %v5307_v13, %v2941_v20  ;;  %v3008_v46 = vmul.f32 %v3006_v40, %v2952_v36 }
 0xd77   : > { %5359 = vrcp.f32 %v2956_v19  ;;  %v7585_v2 = vmul.f32 0.70710677, %v7582_v21  ;;  %v2969_v29 = vand.u32 2147483648, %v2956_v19  ;;  %v2967_v32 = vand.u32 2147483647, %v2956_v19 }
 0xd78   : > { %vm2963_vm6 = vweird.f32 %v2956_v19  ;;  %v3010_v53 = vmul.f32 1.442695, %v3008_v46 }
 0xd79   : > { %v2953_v22 = vand.u32 2147483647, %v7585_v2  ;;  %v2970_v35 = vor.u32 1.1754944e-38, %v2969_v29  ;;  %vm2968_vm8 = vcmp.eq.f32.partialorder %v2967_v32, 8.507059e+37  ;;  %vm2949_vm14 = vcmp.ge.f32.partialorder %v7585_v2, 0.0 }
 0xd7b   : > { %v2955_v23 = vmul.f32 0.3275911, %v2953_v22  ;;  %v3007_v60 = vsub.f32 0.0, %v2953_v22 }
 0xd7d   : > { %v5360_v24 = vpop.eup %5359  ;;  %v2957_v26 = vadd.f32 1.0, %v2955_v23  ;;  %v3009_v1 = vmul.f32 %v3007_v60, %v2953_v22  ;;  %v2951_v22 = vsel %vm2949_vm14, 1.0, %v6582_v31  ;;  %v3107_v60 = vld [vmem:[%s8014_s4 + $0x50] sm:$0xff] }
 0xd7e   : > { %v2959_v25 = vmul.f32 %v5360_v24, %v2956_v19  ;;  %vm2964_vm4 = vweird.f32 %v5360_v24  ;;  %v2944_v19 = vmul.f32 0.5, %v7576_v56 }
 0xd7f   : > { %5361 = vrcp.f32 %v2957_v26  ;;  %vm2965_vm7 = vmor %vm2963_vm6, %vm2964_vm4  ;;  %v2984_v45 = vand.u32 2147483648, %v2957_v26  ;;  %v2982_v48 = vand.u32 2147483647, %v2957_v26  ;;  %vm2978_vm10 = vweird.f32 %v2957_v26 }
 0xd80   : > { %v2960_v27 = vsub.f32 1.0, %v2959_v25  ;;  %5363 = vpow2.f32 %v3010_v53  ;;  %v3012_v4 = vmul.f32 1.442695, %v3009_v1  ;;  %v3111_v53 = vld [vmem:[%s8014_s4 + $0x70] sm:$0xff] }
 0xd81   : > { %v2985_v52 = vor.u32 1.1754944e-38, %v2984_v45  ;;  %vm2983_vm12 = vcmp.eq.f32.partialorder %v2982_v48, 8.507059e+37  ;;  %3133 = vmatpush.msra.mxu0 %v3111_v53 }
 0xd82   : > { %v2961_v30 = vmul.f32 %v5360_v24, %v2960_v27  ;;  %5365 = vpow2.f32 %v3012_v4 }
 0xd84   : > { %v2962_v33 = vadd.f32 %v5360_v24, %v2961_v30 }
 0xd85   : > { %v5362_v37 = vpop.eup %5361 }
 0xd86   : > { %v2966_v38 = vsel %vm2965_vm7, %v5360_v24, %v2962_v33  ;;  %v2974_v41 = vmul.f32 %v5362_v37, %v2957_v26  ;;  %vm2979_vm9 = vweird.f32 %v5362_v37  ;;  %v5364_v5 = vpop.eup %5363  ;;  %v2945_v24 = vmul.f32 0.5, %v7582_v21 }
 0xd87   : > { %v2971_v39 = vsel %vm2968_vm8, %v2970_v35, %v2966_v38  ;;  %vm2980_vm11 = vmor %vm2978_vm10, %vm2979_vm9 }
 0xd88   : > { %v2988_v42 = vmul.f32 1.0614054, %v2971_v39  ;;  %v2975_v43 = vsub.f32 1.0, %v2974_v41  ;;  %v5366_v14 = vpop.eup %5365 }
 0xd8a   : > { %v2990_v44 = vadd.f32 -1.4531521, %v2988_v42  ;;  %v2976_v47 = vmul.f32 %v5362_v37, %v2975_v43 }
 0xd8c   : > { %v2992_v49 = vmul.f32 %v2990_v44, %v2971_v39  ;;  %v2977_v50 = vadd.f32 %v5362_v37, %v2976_v47 }
 0xd8e   : > { %v2994_v51 = vadd.f32 1.4214138, %v2992_v49  ;;  %v2981_v54 = vsel %vm2980_vm11, %v5362_v37, %v2977_v50 }
 0xd8f   : > { %v2986_v57 = vsel %vm2983_vm12, %v2985_v52, %v2981_v54  ;;  %v3112_v54 = vld [vmem:[%s8014_s4 + $0x78] sm:$0xff] }
 0xd90   : > { %v2996_v55 = vmul.f32 %v2994_v51, %v2971_v39  ;;  %v2989_v28 = vmul.f32 1.0614054, %v2986_v57  ;;  %3156 = vmatpush.msra.mxu1 %v3112_v54 }
 0xd92   : > { %v2998_v62 = vadd.f32 -0.28449672, %v2996_v55  ;;  %v2991_v63 = vadd.f32 -1.4531521, %v2989_v28  ;;  %v3109_v55 = vld [vmem:[%s8014_s4 + $0x60] sm:$0xff]  ;;  %v3108_v28 = vld [vmem:[%s8014_s4 + $0x58] sm:$0xff] }
 0xd93   : > { %3134 = vmatpush.msra.mxu0 %v3109_v55 }
 0xd94   : > { %v3000_v0 = vmul.f32 %v2998_v62, %v2971_v39  ;;  %v2993_v34 = vmul.f32 %v2991_v63, %v2986_v57  ;;  %v3105_v62 = vld [vmem:[%s8014_s4 + $0x40] sm:$0xff]  ;;  %v3106_v63 = vld [vmem:[%s8014_s4 + $0x48] sm:$0xff] }
 0xd95   : > { %3135 = vmatpush.msra.mxu0 %v3107_v60 }
 0xd96   : > { %v3002_v16 = vadd.f32 0.2548296, %v3000_v0  ;;  %v2995_v18 = vadd.f32 1.4214138, %v2993_v34 }
 0xd97   : > { %3136 = vmatpush.msra.mxu0 %v3105_v62 }
 0xd98   : > { %v3004_v3 = vmul.f32 %v3002_v16, %v2971_v39  ;;  %v2997_v6 = vmul.f32 %v2995_v18, %v2986_v57 }
 0xd9a   : > { %v3014_v58 = vmul.f32 %v5364_v5, %v3004_v3  ;;  %v2999_v7 = vadd.f32 -0.28449672, %v2997_v6  ;;  %v3103_v6 = vld [vmem:[%s8014_s4 + $0x30] sm:$0xff] }
 0xd9b   : > { %3137 = vmatpush.msra.mxu0 %v3103_v6 }
 0xd9c   : > { %v3016_v8 = vsub.f32 1.0, %v3014_v58  ;;  %v3001_v9 = vmul.f32 %v2999_v7, %v2986_v57  ;;  %v3104_v58 = vld [vmem:[%s8014_s4 + $0x38] sm:$0xff]  ;;  %v3101_v7 = vld [vmem:[%s8014_s4 + $0x20] sm:$0xff] }
 0xd9d   : > { %3138 = vmatpush.msra.mxu0 %v3101_v7 }
 0xd9e   : > { %v3018_v11 = vmul.f32 %v3016_v8, %v2950_v10  ;;  %v3003_v12 = vadd.f32 0.2548296, %v3001_v9  ;;  %v3102_v8 = vld [vmem:[%s8014_s4 + $0x28] sm:$0xff]  ;;  %v3099_v9 = vld [vmem:[%s8014_s4 + $0x10] sm:$0xff]  ;;  %v3100_v10 = vld [vmem:[%s8014_s4 + $0x18] sm:$0xff] }
 0xd9f   : > { %3139 = vmatpush.msra.mxu0 %v3099_v9 }
 0xda0   : > { %v3005_v13 = vmul.f32 %v3003_v12, %v2986_v57  ;;  %v3020_v36 = vadd.f32 1.0, %v3018_v11  ;;  %v3110_v57 = vld [vmem:[%s8014_s4 + $0x68] sm:$0xff]  ;;  %v3097_v11 = vld [vmem:[%s8014_s4] sm:$0xff] }
 0xda1   : > { %3157 = vmatpush.msra.mxu1 %v3110_v57  ;;  %v3098_v12 = vld [vmem:[%s8014_s4 + $0x8] sm:$0xff]  ;;  %3140 = vmatpush.msra.mxu0 %v3097_v11  ;;  %s6377_s4 = scalar_lea.hbm %s6843_s14, 2 }
 0xda2   : > { %v3015_v17 = vmul.f32 %v5366_v14, %v3005_v13  ;;  %v3022_v15 = vmul.f32 %v3020_v36, %v2944_v19  ;;  %v3026_v13 = vld [vmem:[#allocation14] sm:$0xff] }
 0xda3   : > { %3158 = vmatpush.msra.mxu1 %v3108_v28 }
 0xda4   : > { %v3017_v20 = vsub.f32 1.0, %v3015_v17  ;;  %v7595_v26 = vadd.f32 %v3022_v15, %v7515_v59  ;;  %v3028_v17 = vld [vmem:[#allocation16] sm:$0xff]  ;;  %v3027_v15 = vld [vmem:[#allocation14 + $0x8] sm:$0xff] }
 0xda5   : > { %3159 = vmatpush.msra.mxu1 %v3106_v63 }
 0xda6   : > { %v3019_v23 = vmul.f32 %v3017_v20, %v2951_v22  ;;  %v3030_v2 = vsel %vm2007_vm0, %v7595_v26, 0.0 }
 0xda7   : > { %3160 = vmatpush.msra.mxu1 %v3104_v58 }
 0xda8   : > { %v3021_v25 = vadd.f32 1.0, %v3019_v23 }
 0xda9   : > { %3161 = vmatpush.msra.mxu1 %v3102_v8 }
 0xdaa   : > { %v3023_v27 = vmul.f32 %v3021_v25, %v2945_v24  ;;  %v3029_v24 = vld [vmem:[#allocation16 + $0x8] sm:$0xff] }
 0xdab   : > { %3162 = vmatpush.msra.mxu1 %v3100_v10 }
 0xdac   : > { %v7598_v29 = vadd.f32 %v3023_v27, %v7518_v61 }
 0xdad   : > { %3163 = vmatpush.msra.mxu1 %v3098_v12 }
 0xdae   : > { %v3031_v56 = vsel %vm2007_vm0, %v7598_v29, 0.0 }
 0xdaf   : > { %v3032_v30 = vadd.f32 %v3031_v56, %v3030_v2 }
 0xdb1   : > { %3033 = vadd.xlane.f32.xlu1 %v3032_v30 }
 0xe24   : > { %v3034_v32 = vpop.xlane.xlu1 %3033 }
 0xe25   : > { %v3035_v33 = vrot.slane %v3034_v32, 4 }
 0xe27   : > { %v3036_v21 = vadd.f32 %v3035_v33, %v3034_v32 }
 0xe29   : > { %v3037_v35 = vrot.slane %v3036_v21, 2 }
 0xe2b   : > { %v3038_v37 = vadd.f32 %v3037_v35, %v3036_v21 }
 0xe2d   : > { %v3039_v59 = vrot.slane %v3038_v37, 1 }
 0xe2f   : > { %v3040_v38 = vadd.f32 %v3039_v59, %v3038_v37 }
 0xe31   : > { %4929 = vpush %v3040_v38 }
 0xe62   : > { %s4930_s16 = spop %4929 }
 0xe63   : > { %s3050_s7 = smul.f32 %s4930_s16, %s7387_s21 }
 0xe65   : > { %v3051_v61 = vstv %s3050_s7 }
 0xe66   : > { %v7606_v39 = vsub.f32 %v7595_v26, %v3051_v61  ;;  %v7609_v40 = vsub.f32 %v7598_v29, %v3051_v61 }
 0xe68   : > { %v3054_v41 = vmul.f32 %v7606_v39, %v7606_v39  ;;  %v3055_v42 = vmul.f32 %v7609_v40, %v7609_v40 }
 0xe6a   : > { %v3056_v43 = vsel %vm2007_vm0, %v3054_v41, 0.0  ;;  %v3057_v44 = vsel %vm2007_vm0, %v3055_v42, 0.0 }
 0xe6b   : > { %v3058_v45 = vadd.f32 %v3057_v44, %v3056_v43 }
 0xe6d   : > { %3059 = vadd.xlane.f32.xlu0 %v3058_v45 }
 0xee0   : > { %v3060_v46 = vpop.xlane.xlu0 %3059 }
 0xee1   : > { %v3061_v47 = vrot.slane %v3060_v46, 4 }
 0xee3   : > { %v3062_v48 = vadd.f32 %v3061_v47, %v3060_v46 }
 0xee5   : > { %v3063_v49 = vrot.slane %v3062_v48, 2 }
 0xee7   : > { %v3064_v50 = vadd.f32 %v3063_v49, %v3062_v48 }
 0xee9   : > { %v3065_v51 = vrot.slane %v3064_v50, 1 }
 0xeeb   : > { %v3066_v52 = vadd.f32 %v3065_v51, %v3064_v50 }
 0xeed   : > { %4931 = vpush %v3066_v52 }
 0xf1e   : > { %s4932_s16 = spop %4931 }
 0xf1f   : > { %s3076_s7 = smul.f32 %s4932_s16, %s7387_s21  ;;  %s8015_s16 = sld [smem:[#allocation89_spill]] }
 0xf21   : > { %s3077_s26 = sadd.f32 1e-05, %s3076_s7  ;;  %s8017_s7 = smov 16  }
 0xf23   : > { %v3078_v0 = vstv %s3077_s26 }
 0xf24   : > { %5367 = vrsqrt.f32 %v3078_v0  ;;  %vm3085_vm1 = vweird.f32 %v3078_v0 }
 0xf25   : > { %v3113_v56 = vld [vmem:[%s8015_s16] sm:$0x3]  ;;  %s8019_s16 = sld [smem:[#allocation90_spill]] }
 0xf26   : > { %v3116_v30 = vperm.slane %v3113_v56, 1  ;;  %v3115_v32 = vperm.slane %v3113_v56, 0 }
 0xf2a   : > { %v5368_v1 = vpop.eup %5367 }
 0xf2b   : > { %v3080_v34 = vmul.f32 %v5368_v1, %v3078_v0  ;;  %vm3086_vm15 = vweird.f32 %v5368_v1  ;;  %s8020_s2 = smov %s8019_s16  ;;  %v3262_v28 = vld [vmem:[%s8019_s16 + $0x8] sm:$0xff] }
 0xf2c   : > { %vm3087_vm2 = vmor %vm3085_vm1, %vm3086_vm15  ;;  %v3261_v62 = vld [vmem:[%s8020_s2] sm:$0xff] }
 0xf2d   : > { %v3081_v16 = vmul.f32 %v5368_v1, %v3080_v34 }
 0xf2f   : > { %v3082_v18 = vmul.f32 0.5, %v3081_v16 }
 0xf31   : > { %v3083_v3 = vsub.f32 1.5, %v3082_v18 }
 0xf33   : > { %v3084_v4 = vmul.f32 %v5368_v1, %v3083_v3 }
 0xf35   : > { %v3088_v5 = vsel %vm3087_vm2, %v5368_v1, %v3084_v4 }
 0xf36   : > { %4933 = vpush %v3088_v5 }
 0xf67   : > { %s4934_s26 = spop %4933 }
 0xf68   : > { %v3090_v14 = vstv %s4934_s26  ;;  %s8018_s26 = smov 96  }
 0xf69   : > { %v3091_v36 = vmul.f32 %v3090_v14, %v7606_v39  ;;  %v3092_v20 = vmul.f32 %v3090_v14, %v7609_v40 }
 0xf6b   : > { %v3093_v19 = vmul.f32 %v3091_v36, %v3026_v13  ;;  %v3094_v23 = vmul.f32 %v3092_v20, %v3027_v15 }
 0xf6d   : > { %v3095_v22 = vadd.f32 %v3093_v19, %v3028_v17  ;;  %v3096_v25 = vadd.f32 %v3094_v23, %v3029_v24 }
 0xf6f   : > { %4866 = vmatmul.msk.f32.vlgmr.msra.gmra.mxu0 %vm2007_vm0, %v3095_v22  ;;  %4868 = vmatmul.msk.f32.vlgmr.msra.gmra.mxu1 %vm2007_vm0, %v3095_v22 }
 0xf77   : > { %4867 = vmatmul.msk.f32.gmra.mxu0 %vm2007_vm0, %v3096_v25  ;;  %4869 = vmatmul.msk.f32.gmra.mxu1 %vm2007_vm0, %v3096_v25 }
 0xfec   : > { %v3142_v27 = vpop.f32.mrf.mxu0  ;;  %v3165_v2 = vpop.f32.mrf.mxu1 }
 0xfed   : > { %v3166_v35 = vadd.f32 %v3165_v2, %v3116_v30  ;;  %v3143_v61 = vadd.f32 %v3142_v27, %v3115_v32 }
 0xff4   : > { %v3145_v33 = vpop.f32.mrf.mxu0  ;;  %v3168_v21 = vpop.f32.mrf.mxu1 }
 0xff5   : > { %v3146_v37 = vadd.f32 %v3145_v33, %v3115_v32  ;;  %v3169_v59 = vadd.f32 %v3168_v21, %v3116_v30 }
 0xff7   : > { %3252 = vmatpush.msrb.mxu0 %v3169_v59  ;;  %3175 = vrot.lane.b32.xlu0 %v3146_v37, %s6575_s1  ;;  %v7642_v38 = vpack.i.bf16 %v3166_v35, %v3169_v59 }
 0xff9   : > { %3253 = vmatpush.msrb.mxu0 %v3166_v35 }
 0xffb   : > { %3414 = vmatpush.msra.mxu0 %v3262_v28 }
 0xffd   : > { %3415 = vmatpush.msra.mxu0 %v3261_v62 }
 0xfff   : > { %3173 = vrot.lane.b32.xlu0 %v3143_v61, %s6575_s1  ;;  %s8016_s1 = smov 32  }
0x1069   : > { %v3176_v39 = vpop.permute.xlu0 %3175 }
0x106a   : > { %4870 = vmatpush.xpose.msk.msrb.mxu2 %vm2192_vm5, %v3176_v39 }
0x1071   : > { %v3174_v40 = vpop.permute.xlu0 %3173 }
0x1072   : > { %4871 = vmatpush.xpose.msk.msrb.mxu2 %vm2192_vm5, %v3174_v40 }
0x1075   : > { %4872 = vmatmul.msk.f32.vlgmr.msrb.gmra.mxu2 %vm2192_vm5, %v3143_v61 }
0x107d   : > { %4873 = vmatmul.msk.f32.gmra.mxu2 %vm2192_vm5, %v3146_v37 }
0x10f8   : > { %v3202_v41 = vpop.f32.mrf.mxu2 }
0x10f9   : > { %v3208_v42 = vmul.f32 0.25, %v3202_v41 }
0x10fb   : > { %v3210_v43 = vsel %vm2192_vm5, %v3208_v42, -inf }
0x10fc   : > { %3211 = vmax.xlane.f32.xlu2 %v3210_v43 }
0x1100   : > { %v3205_v44 = vpop.f32.mrf.mxu2 }
0x1101   : > { %v3209_v45 = vmul.f32 0.25, %v3205_v44 }
0x1103   : > { %v3213_v46 = vsel %vm2192_vm5, %v3209_v45, -inf }
0x1104   : > { %3214 = vmax.xlane.f32.xlu1 %v3213_v46 }
0x111d   : > { %3269 = vrot.lane.b32.xlu1 %v3146_v37, %s6576_s18 }
0x1125   : > { %3263 = vrot.lane.b32.xlu1 %v3143_v61, %s7915_s0  ;;  %s8021_s0 = smov 80  }
0x112d   : > { %3429 = vrot.lane.b32.xlu1 %v3146_v37, %s8016_s1 }
0x1135   : > { %3560 = vrot.lane.b32.xlu1 %v3146_v37, %s8017_s7 }
0x113d   : > { %3425 = vrot.lane.b32.xlu1 %v3146_v37, %s8018_s26 }
0x116f   : > { %v3212_v47 = vpop.xlane.xlu2 %3211 }
0x1170   : > { %v3216_v48 = vsub.f32 %v3208_v42, %v3212_v47 }
0x1172   : > { %v3218_v49 = vmul.f32 1.442695, %v3216_v48 }
0x1174   : > { %5369 = vpow2.f32 %v3218_v49 }
0x1177   : > { %v3215_v50 = vpop.xlane.xlu1 %3214 }
0x1178   : > { %v3217_v51 = vsub.f32 %v3209_v45, %v3215_v50 }
0x117a   : > { %v5370_v52 = vpop.eup %5369  ;;  %v3220_v53 = vmul.f32 1.442695, %v3217_v51 }
0x117b   : > { %v3222_v54 = vsel %vm2192_vm5, %v5370_v52, 0.0 }
0x117c   : > { %5371 = vpow2.f32 %v3220_v53  ;;  %3223 = vadd.xlane.f32.xlu0 %v3222_v54 }
0x1182   : > { %v5372_v55 = vpop.eup %5371 }
0x1183   : > { %v3225_v57 = vsel %vm2192_vm5, %v5372_v55, 0.0 }
0x1184   : > { %3226 = vadd.xlane.f32.xlu2 %v3225_v57 }
0x118f   : > { %v3270_v60 = vpop.permute.xlu1 %3269 }
0x1190   : > { %3423 = vrot.lane.b32.xlu0 %v3143_v61, %s8018_s26  ;;  %4876 = vmatpush.xpose.msk.msrb.mxu1 %vm2192_vm5, %v3270_v60 }
0x1197   : > { %v3264_v63 = vpop.permute.xlu1 %3263 }
0x1198   : > { %3556 = vrot.lane.b32.xlu0 %v3146_v37, %s8021_s0 }
0x119c   : > { %3267 = vrot.lane.b32.xlu2 %v3143_v61, %s6576_s18 }
0x119f   : > { %v3430_v0 = vpop.permute.xlu1 %3429 }
0x11a4   : > { %3265 = vrot.lane.b32.xlu2 %v3146_v37, %s8022_s3 }
0x11a7   : > { %v3561_v3 = vpop.permute.xlu1 %3560 }
0x11ac   : > { %3427 = vrot.lane.b32.xlu2 %v3143_v61, %s8016_s1 }
0x11af   : > { %v3426_v10 = vpop.permute.xlu1 %3425 }
0x11b4   : > { %3558 = vrot.lane.b32.xlu2 %v3143_v61, %s8017_s7 }
0x11bc   : > { %3554 = vrot.lane.b32.xlu2 %v3143_v61, %s8021_s0 }
0x11ef   : > { %v3224_v1 = vpop.xlane.xlu0 %3223 }
0x11f0   : > { %5373 = vrcp.f32 %v3224_v1 }
0x11f6   : > { %v5374_v34 = vpop.eup %5373 }
0x11f7   : > { %v3230_v16 = vmul.f32 %v5374_v34, %v5370_v52  ;;  %v3227_v18 = vpop.xlane.xlu2 %3226 }
0x11f8   : > { %5375 = vrcp.f32 %v3227_v18 }
0x11f9   : > { %4874 = vmatmul.msk.f32.vlgmr.msrb.gmra.mxu0 %vm2192_vm5, %v3230_v16 }
0x11fa   : > { %4894 = vmatpush.xpose.msk.msrb.mxu0 %vm2192_vm5, %v3561_v3 }
0x11fe   : > { %v5376_v4 = vpop.eup %5375 }
0x11ff   : > { %v3268_v5 = vpop.permute.xlu2 %3267  ;;  %v3231_v6 = vmul.f32 %v5376_v4, %v5372_v55 }
0x1200   : > { %4877 = vmatpush.xpose.msk.msrb.mxu1 %vm2192_vm5, %v3268_v5 }
0x1201   : > { %4875 = vmatmul.msk.f32.gmra.mxu0 %vm2192_vm5, %v3231_v6 }
0x1202   : > { %v3424_v8 = vpop.permute.xlu0 %3423 }
0x1203   : > { %4878 = vmatmul.msk.f32.vlgmr.msrb.gmra.mxu1 %vm2192_vm5, %v3264_v63 }
0x1204   : > { %4886 = vmatpush.xpose.msk.msra.mxu1 %vm2192_vm5, %v3430_v0 }
0x1207   : > { %v3266_v58 = vpop.permute.xlu2 %3265 }
0x120a   : > { %v3557_v15 = vpop.permute.xlu0 %3556 }
0x120b   : > { %4879 = vmatmul.msk.f32.gmra.mxu1 %vm2192_vm5, %v3266_v58 }
0x120f   : > { %v3428_v7 = vpop.permute.xlu2 %3427 }
0x1210   : > { %4887 = vmatpush.xpose.msk.msra.mxu1 %vm2192_vm5, %v3428_v7 }
0x1213   : > { %4888 = vmatmul.msk.f32.vlgmr.msra.gmra.mxu1 %vm2192_vm5, %v3424_v8 }
0x1217   : > { %v3559_v9 = vpop.permute.xlu2 %3558 }
0x1218   : > { %4895 = vmatpush.xpose.msk.msrb.mxu0 %vm2192_vm5, %v3559_v9 }
0x121b   : > { %4889 = vmatmul.msk.f32.gmra.mxu1 %vm2192_vm5, %v3426_v10 }
0x121f   : > { %v3555_v17 = vpop.permute.xlu2 %3554 }
0x1276   : > { %v3255_v11 = vpop.f32.mrf.mxu0 }
0x1277   : > { %4884 = vmatmul.msk.f32.vlgmr.msra.gmra.mxu0 %vm2192_vm5, %v3255_v11 }
0x127e   : > { %v3258_v12 = vpop.f32.mrf.mxu0 }
0x127f   : > { %4885 = vmatmul.msk.f32.gmra.mxu0 %vm2192_vm5, %v3258_v12 }
0x1280   : > { %v3296_v13 = vpop.f32.mrf.mxu1 }
0x1281   : > { %v3302_v14 = vmul.f32 0.25, %v3296_v13 }
0x1283   : > { %v3304_v36 = vsel %vm2192_vm5, %v3302_v14, -inf }
0x1284   : > { %3305 = vmax.xlane.f32.xlu1 %v3304_v36 }
0x1287   : > { %4896 = vmatmul.msk.f32.vlgmr.msrb.gmra.mxu0 %vm2192_vm5, %v3555_v17 }
0x1288   : > { %v3299_v19 = vpop.f32.mrf.mxu1 }
0x1289   : > { %v3303_v20 = vmul.f32 0.25, %v3299_v19 }
0x128b   : > { %v3307_v22 = vsel %vm2192_vm5, %v3303_v20, -inf }
0x128c   : > { %3308 = vmax.xlane.f32.xlu2 %v3307_v22 }
0x128f   : > { %4897 = vmatmul.msk.f32.gmra.mxu0 %vm2192_vm5, %v3557_v15 }
0x1290   : > { %v3456_v23 = vpop.f32.mrf.mxu1 }
0x1291   : > { %v3462_v24 = vmul.f32 0.25, %v3456_v23 }
0x1293   : > { %v3464_v25 = vsel %vm2192_vm5, %v3462_v24, -inf }
0x1294   : > { %3465 = vmax.xlane.f32.xlu0 %v3464_v25 }
0x1298   : > { %v3459_v27 = vpop.f32.mrf.mxu1 }
0x1299   : > { %v3463_v2 = vmul.f32 0.25, %v3459_v27 }
0x129b   : > { %v3467_v56 = vsel %vm2192_vm5, %v3463_v2, -inf }
0x129c   : > { %3468 = vmax.xlane.f32.xlu1 %v3467_v56  ;;  %v3363_v56 = vld [vmem:[%s8020_s2 + $0x10] sm:$0xff] }
0x12f4   : > { %v7687_v30 = vpop.f32.mrf.mxu0 }
0x12f7   : > { %v3306_v32 = vpop.xlane.xlu1 %3305 }
0x12f8   : > { %v3310_v33 = vsub.f32 %v3302_v14, %v3306_v32  ;;  %v3522_v32 = vld [vmem:[%s8020_s2 + $0x28] sm:$0xff] }
0x12fa   : > { %v3312_v21 = vmul.f32 1.442695, %v3310_v33 }
0x12fc   : > { %5377 = vpow2.f32 %v3312_v21  ;;  %v7689_v35 = vpop.f32.mrf.mxu0 }
0x12ff   : > { %v3309_v59 = vpop.xlane.xlu2 %3308 }
0x1300   : > { %v3311_v41 = vsub.f32 %v3303_v20, %v3309_v59 }
0x1302   : > { %v5378_v37 = vpop.eup %5377  ;;  %v3314_v45 = vmul.f32 1.442695, %v3311_v41 }
0x1303   : > { %v3316_v61 = vsel %vm2192_vm5, %v5378_v37, 0.0 }
0x1304   : > { %v3587_v39 = vpop.f32.mrf.mxu0  ;;  %3317 = vadd.xlane.f32.xlu1 %v3316_v61  ;;  %v3521_v61 = vld [vmem:[%s8020_s2 + $0x20] sm:$0xff] }
0x1305   : > { %v3593_v40 = vmul.f32 0.25, %v3587_v39 }
0x1307   : > { %v3466_v42 = vpop.xlane.xlu0 %3465  ;;  %v3595_v43 = vsel %vm2192_vm5, %v3593_v40, -inf }
0x1308   : > { %v3470_v44 = vsub.f32 %v3462_v24, %v3466_v42  ;;  %3596 = vmax.xlane.f32.xlu2 %v3595_v43  ;;  %v3653_v42 = vld [vmem:[%s8020_s2 + $0x38] sm:$0xff]  ;;  %v3652_v43 = vld [vmem:[%s8020_s2 + $0x30] sm:$0xff] }
0x130a   : > { %v3472_v46 = vmul.f32 1.442695, %v3470_v44 }
0x130c   : > { %5379 = vpow2.f32 %v3472_v46  ;;  %v3590_v47 = vpop.f32.mrf.mxu0 }
0x130d   : > { %v3594_v48 = vmul.f32 0.25, %v3590_v47  ;;  %5381 = vpow2.f32 %v3314_v45 }
0x130f   : > { %v3469_v49 = vpop.xlane.xlu1 %3468  ;;  %v3598_v50 = vsel %vm2192_vm5, %v3594_v48, -inf }
0x1310   : > { %v3471_v51 = vsub.f32 %v3463_v2, %v3469_v49  ;;  %3599 = vmax.xlane.f32.xlu0 %v3598_v50  ;;  %v3364_v2 = vld [vmem:[%s8020_s2 + $0x18] sm:$0xff] }
0x1311   : > { %3385 = vmatpush.msrb.mxu3 %v3364_v2  ;;  %v3768_v2 = vld [vmem:[#allocation20 + $0x20] sm:$0xff] }
0x1312   : > { %v5380_v52 = vpop.eup %5379  ;;  %v3474_v53 = vmul.f32 1.442695, %v3471_v51 }
0x1313   : > { %v3476_v54 = vsel %vm2192_vm5, %v5380_v52, 0.0  ;;  %v5382_v55 = vpop.eup %5381  ;;  %3386 = vmatpush.msrb.mxu3 %v3363_v56 }
0x1314   : > { %5383 = vpow2.f32 %v3474_v53  ;;  %3477 = vadd.xlane.f32.xlu1 %v3476_v54  ;;  %v3319_v57 = vsel %vm2192_vm5, %v5382_v55, 0.0 }
0x1315   : > { %3543 = vmatpush.msra.mxu3 %v3522_v32 }
0x1317   : > { %3544 = vmatpush.msra.mxu3 %v3521_v61 }
0x1318   : > { %3320 = vadd.xlane.f32.xlu0 %v3319_v57 }
0x131a   : > { %v5384_v60 = vpop.eup %5383 }
0x131b   : > { %v3479_v28 = vsel %vm2192_vm5, %v5384_v60, 0.0 }
0x131c   : > { %3480 = vadd.xlane.f32.xlu1 %v3479_v28 }
0x1320   : > { %5290 = vrot.lane.b32.xlu2 %v7642_v38, %s8022_s3  ;;  %s8023_s3 = sld [smem:[#allocation91_spill]] }
0x1326   : > { %v5308_v57 = vld [vmem:[%s8023_s3] ss:$0 sm:$0xff]  ;;  %s8025_s3 = sld [smem:[#allocation98_spill]] }
0x1328   : > { %5300 = vrot.lane.b32.xlu2 %v7642_v38, %s8021_s0 }
0x132c   : > { %5295 = vrot.lane.b32.xlu0 %v7642_v38, %s8018_s26 }
0x1377   : > { %v3318_v62 = vpop.xlane.xlu1 %3317 }
0x1378   : > { %5385 = vrcp.f32 %v3318_v62 }
0x137b   : > { %v3597_v63 = vpop.xlane.xlu2 %3596 }
0x137c   : > { %v3601_v0 = vsub.f32 %v3593_v40, %v3597_v63 }
0x137e   : > { %v3603_v1 = vmul.f32 1.442695, %v3601_v0  ;;  %v5386_v18 = vpop.eup %5385 }
0x137f   : > { %v3324_v7 = vmul.f32 %v5386_v18, %v5378_v37 }
0x1380   : > { %5387 = vpow2.f32 %v3603_v1 }
0x1383   : > { %v5291_v34 = vpop.permute.xlu2 %5290  ;;  %v3600_v16 = vpop.xlane.xlu0 %3599 }
0x1384   : > { %v5292_v3 = vunpack.i.l.bf16 %v5291_v34  ;;  %v3602_v4 = vsub.f32 %v3594_v48, %v3600_v16  ;;  %v5293_v6 = vunpack.i.h.bf16 %v5291_v34 }
0x1386   : > { %v5388_v5 = vpop.eup %5387  ;;  %v3605_v58 = vmul.f32 1.442695, %v3602_v4  ;;  %3354 = vmatpush.msra.mxu2 %v5292_v3 }
0x1387   : > { %v3607_v8 = vsel %vm2192_vm5, %v5388_v5, 0.0  ;;  %v3478_v17 = vpop.xlane.xlu1 %3477 }
0x1388   : > { %5389 = vpow2.f32 %v3605_v58  ;;  %3355 = vmatpush.msra.mxu2 %v5293_v6  ;;  %3608 = vadd.xlane.f32.xlu1 %v3607_v8 }
0x1389   : > { %4880 = vmatmul.msk.f32.vlgmr.msra.gmra.mxu2 %vm2192_vm5, %v3324_v7 }
0x138b   : > { %v5301_v38 = vpop.permute.xlu2 %5300  ;;  %v3321_v9 = vpop.xlane.xlu0 %3320 }
0x138c   : > { %v5302_v10 = vunpack.i.l.bf16 %v5301_v38  ;;  %5391 = vrcp.f32 %v3321_v9  ;;  %v5303_v12 = vunpack.i.h.bf16 %v5301_v38 }
0x138d   : > { %5393 = vrcp.f32 %v3478_v17 }
0x138e   : > { %v5390_v11 = vpop.eup %5389  ;;  %3643 = vmatpush.msrb.mxu1 %v5302_v10 }
0x138f   : > { %v3610_v13 = vsel %vm2192_vm5, %v5390_v11, 0.0  ;;  %v3481_v19 = vpop.xlane.xlu1 %3480 }
0x1390   : > { %3644 = vmatpush.msrb.mxu1 %v5303_v12  ;;  %3611 = vadd.xlane.f32.xlu1 %v3610_v13  ;;  %5395 = vrcp.f32 %v3481_v19 }
0x1392   : > { %v5392_v14 = vpop.eup %5391 }
0x1393   : > { %v3325_v36 = vmul.f32 %v5392_v14, %v5382_v55  ;;  %v5394_v22 = vpop.eup %5393 }
0x1394   : > { %v3484_v24 = vmul.f32 %v5394_v22, %v5380_v52 }
0x1395   : > { %4881 = vmatmul.msk.f32.gmra.mxu2 %vm2192_vm5, %v3325_v36 }
0x1396   : > { %v5396_v25 = vpop.eup %5395 }
0x1397   : > { %v3485_v27 = vmul.f32 %v5396_v25, %v5384_v60  ;;  %v3770_v25 = vld [vmem:[#allocation20 + $0x30] sm:$0xff] }
0x139e   : > { %v5296_v20 = vpop.permute.xlu0 %5295 }
0x139f   : > { %v5297_v15 = vunpack.i.l.bf16 %v5296_v20  ;;  %v5298_v23 = vunpack.i.h.bf16 %v5296_v20 }
0x13a1   : > { %3512 = vmatpush.msrb.mxu2 %v5297_v15 }
0x13a3   : > { %3513 = vmatpush.msrb.mxu2 %v5298_v23 }
0x13a4   : > { %4890 = vmatmul.msk.f32.vlgmr.msrb.gmra.mxu2 %vm2192_vm5, %v3484_v24  ;;  %v3771_v24 = vld [vmem:[#allocation20 + $0x38] sm:$0xff] }
0x13a5   : > { %3674 = vmatpush.msra.mxu2 %v3653_v42  ;;  %v3765_v42 = vld [vmem:[#allocation20 + $0x8] sm:$0xff] }
0x13a7   : > { %3675 = vmatpush.msra.mxu2 %v3652_v43  ;;  %v3764_v43 = vld [vmem:[#allocation20] sm:$0xff] }
0x13ac   : > { %4891 = vmatmul.msk.f32.gmra.mxu2 %vm2192_vm5, %v3485_v27  ;;  %v3769_v27 = vld [vmem:[#allocation20 + $0x28] sm:$0xff] }
0x13fb   : > { %v3609_v33 = vpop.xlane.xlu1 %3608 }
0x13fc   : > { %5397 = vrcp.f32 %v3609_v33 }
0x1402   : > { %v5398_v21 = vpop.eup %5397 }
0x1403   : > { %v3615_v37 = vmul.f32 %v5398_v21, %v5388_v5  ;;  %v3612_v59 = vpop.xlane.xlu1 %3611 }
0x1404   : > { %5399 = vrcp.f32 %v3612_v59 }
0x1405   : > { %4898 = vmatmul.msk.f32.vlgmr.msrb.gmra.mxu1 %vm2192_vm5, %v3615_v37 }
0x140a   : > { %v5400_v39 = vpop.eup %5399 }
0x140b   : > { %v3616_v40 = vmul.f32 %v5400_v39, %v5390_v11 }
0x140c   : > { %v3357_v41 = vpop.f32.mrf.mxu2 }
0x140d   : > { %4882 = vmatmul.msk.f32.vlgmr.msrb.gmra.mxu3 %vm2192_vm5, %v3357_v41  ;;  %4899 = vmatmul.msk.f32.gmra.mxu1 %vm2192_vm5, %v3616_v40  ;;  %v3767_v40 = vld [vmem:[#allocation20 + $0x18] sm:$0xff]  ;;  %v3766_v41 = vld [vmem:[#allocation20 + $0x10] sm:$0xff] }
0x140e   : > { %3790 = vmatpush.msrb.mxu3 %v3771_v24 }
0x1410   : > { %3791 = vmatpush.msrb.mxu3 %v3770_v25 }
0x1412   : > { %3792 = vmatpush.msrb.mxu3 %v3769_v27 }
0x1414   : > { %3793 = vmatpush.msrb.mxu3 %v3768_v2 }
0x1416   : > { %3794 = vmatpush.msrb.mxu3 %v3767_v40 }
0x1418   : > { %v3360_v44 = vpop.f32.mrf.mxu2  ;;  %3795 = vmatpush.msrb.mxu3 %v3766_v41 }
0x1419   : > { %4883 = vmatmul.msk.f32.gmra.mxu3 %vm2192_vm5, %v3360_v44  ;;  %v3693_v44 = vld [vmem:[#allocation17] sm:$0xff] }
0x141a   : > { %3796 = vmatpush.msrb.mxu3 %v3765_v42 }
0x141c   : > { %3797 = vmatpush.msrb.mxu3 %v3764_v43 }
0x1427   : > { %v3515_v45 = vpop.f32.mrf.mxu2 }
0x1428   : > { %4892 = vmatmul.msk.f32.vlgmr.msra.gmra.mxu3 %vm2192_vm5, %v3515_v45 }
0x142f   : > { %v3518_v46 = vpop.f32.mrf.mxu2 }
0x1430   : > { %4893 = vmatmul.msk.f32.gmra.mxu3 %vm2192_vm5, %v3518_v46 }
0x1482   : > { %v3646_v47 = vpop.f32.mrf.mxu1 }
0x1483   : > { %4900 = vmatmul.msk.f32.vlgmr.msra.gmra.mxu2 %vm2192_vm5, %v3646_v47  ;;  %v3695_v47 = vld [vmem:[#allocation19] sm:$0xff] }
0x148a   : > { %v3649_v48 = vpop.f32.mrf.mxu1 }
0x148b   : > { %4901 = vmatmul.msk.f32.gmra.mxu2 %vm2192_vm5, %v3649_v48 }
0x1490   : > { %v3388_v49 = vpop.f32.mrf.mxu3 }
0x1491   : > { %v3418_v52 = vadd.f32 %v7687_v30, %v3388_v49 }
0x149c   : > { %v3391_v50 = vpop.f32.mrf.mxu3 }
0x149d   : > { %v3421_v28 = vadd.f32 %v7689_v35, %v3391_v50 }
0x14ab   : > { %v3546_v51 = vpop.f32.mrf.mxu3 }
0x14ac   : > { %v3552_v54 = vadd.f32 %v3546_v51, %v3418_v52  ;;  %v3694_v51 = vld [vmem:[#allocation17 + $0x8] sm:$0xff] }
0x14b3   : > { %v3549_v60 = vpop.f32.mrf.mxu3 }
0x14b4   : > { %v3553_v62 = vadd.f32 %v3549_v60, %v3421_v28  ;;  %v5309_v60 = vld [vmem:[#allocation22] ss:$0 sm:$0xff] }
0x1506   : > { %v3677_v53 = vpop.f32.mrf.mxu2 }
0x1507   : > { %v3683_v55 = vadd.f32 %v3677_v53, %v3552_v54  ;;  %v3696_v53 = vld [vmem:[#allocation19 + $0x8] sm:$0xff] }
0x1509   : > { %v3689_v63 = vadd.f32 %v5308_v57, %v3683_v55 }
0x150b   : > { %v3691_v16 = vadd.f32 %v3689_v63, %v7595_v26 }
0x150d   : > { %v3697_v30 = vsel %vm2007_vm0, %v3691_v16, 0.0 }
0x150e   : > { %v3680_v0 = vpop.f32.mrf.mxu2 }
0x150f   : > { %v3684_v1 = vadd.f32 %v3680_v0, %v3553_v62 }
0x1511   : > { %v3690_v34 = vadd.f32 %v5308_v57, %v3684_v1 }
0x1513   : > { %v7728_v18 = vadd.f32 %v3690_v34, %v7598_v29 }
0x1515   : > { %v3698_v3 = vsel %vm2007_vm0, %v7728_v18, 0.0 }
0x1516   : > { %v3699_v4 = vadd.f32 %v3698_v3, %v3697_v30 }
0x1518   : > { %3700 = vadd.xlane.f32.xlu2 %v3699_v4 }
0x158b   : > { %v3701_v5 = vpop.xlane.xlu2 %3700 }
0x158c   : > { %v3702_v35 = vrot.slane %v3701_v5, 4 }
0x158e   : > { %v3703_v6 = vadd.f32 %v3702_v35, %v3701_v5 }
0x1590   : > { %v3704_v58 = vrot.slane %v3703_v6, 2 }
0x1592   : > { %v3705_v7 = vadd.f32 %v3704_v58, %v3703_v6 }
0x1594   : > { %v3706_v8 = vrot.slane %v3705_v7, 1 }
0x1596   : > { %v3707_v38 = vadd.f32 %v3706_v8, %v3705_v7 }
0x1598   : > { %4935 = vpush %v3707_v38 }
0x15c9   : > { %s4936_s18 = spop %4935 }
0x15ca   : > { %s3717_s0 = smul.f32 %s4936_s18, %s7387_s21  ;;  %s8026_s18 = sld [smem:[#allocation107_spill]] }
0x15cc   : > { %v3718_v26 = vstv %s3717_s0  ;;  %s1986_s0 = sand.u32 1, %s6479_s15  }
0x15cd   : > { %v3719_v29 = vsub.f32 %v3691_v16, %v3718_v26  ;;  %v3720_v9 = vsub.f32 %v7728_v18, %v3718_v26  ;;  %s4321_s2 = scalar_lea.sflag [#allocation4], %s1986_s0 }
0x15cf   : > { %v3721_v10 = vmul.f32 %v3719_v29, %v3719_v29  ;;  %v3722_v11 = vmul.f32 %v3720_v9, %v3720_v9 }
0x15d1   : > { %v3723_v12 = vsel %vm2007_vm0, %v3721_v10, 0.0  ;;  %v3724_v13 = vsel %vm2007_vm0, %v3722_v11, 0.0 }
0x15d2   : > { %v3725_v14 = vadd.f32 %v3724_v13, %v3723_v12 }
0x15d4   : > { %3726 = vadd.xlane.f32.xlu0 %v3725_v14 }
0x1647   : > { %v3727_v36 = vpop.xlane.xlu0 %3726 }
0x1648   : > { %v3728_v17 = vrot.slane %v3727_v36, 4 }
0x164a   : > { %v3729_v19 = vadd.f32 %v3728_v17, %v3727_v36 }
0x164c   : > { %v3730_v20 = vrot.slane %v3729_v19, 2 }
0x164e   : > { %v3731_v22 = vadd.f32 %v3730_v20, %v3729_v19 }
0x1650   : > { %v3732_v15 = vrot.slane %v3731_v22, 1 }
0x1652   : > { %v3733_v23 = vadd.f32 %v3732_v15, %v3731_v22 }
0x1654   : > { %4937 = vpush %v3733_v23 }
0x1685   : > { %s4938_s1 = spop %4937 }
0x1686   : > { %s3743_s7 = smul.f32 %s4938_s1, %s7387_s21  ;;  %s8024_s21 = sld [smem:[#allocation95_spill]] }
0x1687   : > { %s8027_s1 = smov %s8026_s18 }
0x1688   : > { %s3744_s26 = sadd.f32 1e-05, %s3743_s7  ;;  %s4329_s7 = scalar_lea.hbm %s6843_s14, %s6866_s22 }
0x168a   : > { %v3745_v56 = vstv %s3744_s26 }
0x168b   : > { %5401 = vrsqrt.f32 %v3745_v56  ;;  %vm3752_vm3 = vweird.f32 %v3745_v56 }
0x168c   : > { %v3900_v55 = vld [vmem:[%s8024_s21 + $0x78] sm:$0xff]  ;;  %v3899_v57 = vld [vmem:[%s8024_s21 + $0x70] sm:$0xff]  ;;  %v3898_v28 = vld [vmem:[%s8024_s21 + $0x68] sm:$0xff] }
0x168d   : > { %3905 = vmatpush.msra.mxu0 %v3900_v55  ;;  %v3897_v62 = vld [vmem:[%s8024_s21 + $0x60] sm:$0xff]  ;;  %v3896_v1 = vld [vmem:[%s8024_s21 + $0x58] sm:$0xff]  ;;  %v3895_v16 = vld [vmem:[%s8024_s21 + $0x50] sm:$0xff] }
0x168e   : > { %v3894_v3 = vld [vmem:[%s8024_s21 + $0x48] sm:$0xff]  ;;  %v3893_v5 = vld [vmem:[%s8024_s21 + $0x40] sm:$0xff]  ;;  %v3892_v7 = vld [vmem:[%s8024_s21 + $0x38] sm:$0xff] }
0x168f   : > { %3906 = vmatpush.msra.mxu0 %v3899_v57  ;;  %v3891_v8 = vld [vmem:[%s8024_s21 + $0x30] sm:$0xff]  ;;  %v3890_v26 = vld [vmem:[%s8024_s21 + $0x28] sm:$0xff]  ;;  %v3888_v12 = vld [vmem:[%s8024_s21 + $0x18] sm:$0xff] }
0x1690   : > { %v3887_v36 = vld [vmem:[%s8024_s21 + $0x10] sm:$0xff]  ;;  %v3886_v20 = vld [vmem:[%s8024_s21 + $0x8] sm:$0xff]  ;;  %v3885_v23 = vld [vmem:[%s8024_s21] sm:$0xff] }
0x1691   : > { %v5402_v32 = vpop.eup %5401  ;;  %3907 = vmatpush.msra.mxu0 %v3898_v28 }
0x1692   : > { %v3747_v33 = vmul.f32 %v5402_v32, %v3745_v56  ;;  %vm3753_vm5 = vweird.f32 %v5402_v32 }
0x1693   : > { %vm3754_vm4 = vmor %vm3752_vm3, %vm3753_vm5  ;;  %3908 = vmatpush.msra.mxu0 %v3897_v62 }
0x1694   : > { %v3748_v21 = vmul.f32 %v5402_v32, %v3747_v33 }
0x1695   : > { %3909 = vmatpush.msra.mxu0 %v3896_v1 }
0x1696   : > { %v3749_v37 = vmul.f32 0.5, %v3748_v21 }
0x1697   : > { %3910 = vmatpush.msra.mxu0 %v3895_v16 }
0x1698   : > { %v3750_v59 = vsub.f32 1.5, %v3749_v37 }
0x1699   : > { %3911 = vmatpush.msra.mxu0 %v3894_v3 }
0x169a   : > { %v3751_v61 = vmul.f32 %v5402_v32, %v3750_v59 }
0x169b   : > { %3912 = vmatpush.msra.mxu0 %v3893_v5 }
0x169c   : > { %v3755_v39 = vsel %vm3754_vm4, %v5402_v32, %v3751_v61 }
0x169d   : > { %4939 = vpush %v3755_v39  ;;  %3913 = vmatpush.msra.mxu0 %v3892_v7 }
0x169f   : > { %3914 = vmatpush.msra.mxu0 %v3891_v8 }
0x16a1   : > { %3915 = vmatpush.msra.mxu0 %v3890_v26 }
0x16ce   : > { %s4940_s16 = spop %4939 }
0x16cf   : > { %v3757_v45 = vstv %s4940_s16  ;;  %s1987_s16 = scalar_lea.vmem [#allocation53], %s1986_s0 }
0x16d0   : > { %v3758_v46 = vmul.f32 %v3757_v45, %v3719_v29  ;;  %v3759_v49 = vmul.f32 %v3757_v45, %v3720_v9  ;;  %v3889_v9 = vld [vmem:[%s8024_s21 + $0x20] sm:$0xff] }
0x16d1   : > { %3916 = vmatpush.msra.mxu0 %v3889_v9 }
0x16d2   : > { %v3760_v48 = vmul.f32 %v3758_v46, %v3693_v44  ;;  %v3761_v52 = vmul.f32 %v3759_v49, %v3694_v51 }
0x16d3   : > { %3917 = vmatpush.msra.mxu0 %v3888_v12 }
0x16d4   : > { %v3762_v50 = vadd.f32 %v3760_v48, %v3695_v47  ;;  %v3763_v54 = vadd.f32 %v3761_v52, %v3696_v53 }
0x16d5   : > { %3918 = vmatpush.msra.mxu0 %v3887_v36 }
0x16d6   : > { %4902 = vmatmul.msk.f32.vlgmr.msrb.gmra.mxu3 %vm2007_vm0, %v3762_v50 }
0x16d7   : > { %3919 = vmatpush.msra.mxu0 %v3886_v20  ;;  %v5310_v20 = vld [vmem:[#allocation23] ss:$0 sm:$0xff] }
0x16d9   : > { %3920 = vmatpush.msra.mxu0 %v3885_v23 }
0x16de   : > { %4903 = vmatmul.msk.f32.gmra.mxu3 %vm2007_vm0, %v3763_v54 }
0x1759   : > { %v3799_v63 = vpop.f32.mrf.mxu3 }
0x175a   : > { %v7744_v0 = vadd.f32 %v5309_v60, %v3799_v63 }
0x175c   : > { %v7748_v34 = vmul.f32 0.70710677, %v7744_v0  ;;  %v3805_v8 = vmul.f32 0.5, %v7744_v0 }
0x175e   : > { %v3813_v30 = vand.u32 2147483647, %v7748_v34  ;;  %vm3809_vm14 = vcmp.ge.f32.partialorder %v7748_v34, 0.0 }
0x175f   : > { %v3811_v5 = vsel %vm3809_vm14, 1.0, %v6582_v31 }
0x1760   : > { %v3815_v4 = vmul.f32 0.3275911, %v3813_v30  ;;  %v3867_v32 = vsub.f32 0.0, %v3813_v30 }
0x1761   : > { %v3802_v35 = vpop.f32.mrf.mxu3 }
0x1762   : > { %v3817_v6 = vadd.f32 1.0, %v3815_v4  ;;  %v7754_v58 = vadd.f32 %v5309_v60, %v3802_v35  ;;  %v3869_v39 = vmul.f32 %v3867_v32, %v3813_v30 }
0x1764   : > { %5403 = vrcp.f32 %v3817_v6  ;;  %v7759_v38 = vmul.f32 0.70710677, %v7754_v58  ;;  %v3830_v19 = vand.u32 2147483648, %v3817_v6  ;;  %v3828_v15 = vand.u32 2147483647, %v3817_v6 }
0x1765   : > { %vm3824_vm7 = vweird.f32 %v3817_v6  ;;  %v3871_v46 = vmul.f32 1.442695, %v3869_v39 }
0x1766   : > { %v3814_v29 = vand.u32 2147483647, %v7759_v38  ;;  %v3831_v25 = vor.u32 1.1754944e-38, %v3830_v19  ;;  %vm3829_vm9 = vcmp.eq.f32.partialorder %v3828_v15, 8.507059e+37  ;;  %vm3810_vm15 = vcmp.ge.f32.partialorder %v7759_v38, 0.0 }
0x1767   : > { %v3812_v12 = vsel %vm3810_vm15, 1.0, %v6582_v31  ;;  %vm4080_vm15 = vcmask 261120  }
0x1768   : > { %v3816_v10 = vmul.f32 0.3275911, %v3814_v29  ;;  %v3868_v49 = vsub.f32 0.0, %v3814_v29 }
0x176a   : > { %v5404_v11 = vpop.eup %5403  ;;  %v3818_v14 = vadd.f32 1.0, %v3816_v10  ;;  %v3870_v55 = vmul.f32 %v3868_v49, %v3814_v29 }
0x176b   : > { %v3820_v13 = vmul.f32 %v5404_v11, %v3817_v6  ;;  %vm3825_vm6 = vweird.f32 %v5404_v11 }
0x176c   : > { %5405 = vrcp.f32 %v3818_v14  ;;  %vm3826_vm8 = vmor %vm3824_vm7, %vm3825_vm6  ;;  %v3845_v61 = vand.u32 2147483648, %v3818_v14  ;;  %v3843_v41 = vand.u32 2147483647, %v3818_v14  ;;  %vm3839_vm11 = vweird.f32 %v3818_v14 }
0x176d   : > { %v3821_v17 = vsub.f32 1.0, %v3820_v13  ;;  %5407 = vpow2.f32 %v3871_v46  ;;  %v3873_v63 = vmul.f32 1.442695, %v3870_v55  ;;  %vm3970_vm6 = vcmask 523271  }
0x176e   : > { %v3846_v45 = vor.u32 1.1754944e-38, %v3845_v61  ;;  %vm3844_vm13 = vcmp.eq.f32.partialorder %v3843_v41, 8.507059e+37 }
0x176f   : > { %v3822_v22 = vmul.f32 %v5404_v11, %v3821_v17  ;;  %5409 = vpow2.f32 %v3873_v63  ;;  %v6583_v63 = vmov 64.0  }
0x1771   : > { %v3823_v24 = vadd.f32 %v5404_v11, %v3822_v22 }
0x1772   : > { %v5406_v27 = vpop.eup %5405 }
0x1773   : > { %v3827_v2 = vsel %vm3826_vm8, %v5404_v11, %v3823_v24  ;;  %v3835_v33 = vmul.f32 %v5406_v27, %v3818_v14  ;;  %vm3840_vm10 = vweird.f32 %v5406_v27  ;;  %v5408_v1 = vpop.eup %5407  ;;  %v3806_v14 = vmul.f32 0.5, %v7754_v58 }
0x1774   : > { %v3832_v56 = vsel %vm3829_vm9, %v3831_v25, %v3827_v2  ;;  %vm3841_vm12 = vmor %vm3839_vm11, %vm3840_vm10  ;;  %vm4043_vm11 = vcmask 253952  }
0x1775   : > { %v3849_v21 = vmul.f32 1.0614054, %v3832_v56  ;;  %v3836_v37 = vsub.f32 1.0, %v3835_v33  ;;  %v5410_v9 = vpop.eup %5409 }
0x1777   : > { %v3851_v59 = vadd.f32 -1.4531521, %v3849_v21  ;;  %v3837_v40 = vmul.f32 %v5406_v27, %v3836_v37 }
0x1779   : > { %v3853_v42 = vmul.f32 %v3851_v59, %v3832_v56  ;;  %v3838_v43 = vadd.f32 %v5406_v27, %v3837_v40 }
0x177b   : > { %v3855_v44 = vadd.f32 1.4214138, %v3853_v42  ;;  %v3842_v47 = vsel %vm3841_vm12, %v5406_v27, %v3838_v43 }
0x177c   : > { %v3847_v50 = vsel %vm3844_vm13, %v3846_v45, %v3842_v47 }
0x177d   : > { %v3857_v48 = vmul.f32 %v3855_v44, %v3832_v56  ;;  %v3850_v51 = vmul.f32 1.0614054, %v3847_v50 }
0x177f   : > { %v3859_v52 = vadd.f32 -0.28449672, %v3857_v48  ;;  %v3852_v53 = vadd.f32 -1.4531521, %v3850_v51 }
0x1781   : > { %v3861_v54 = vmul.f32 %v3859_v52, %v3832_v56  ;;  %v3854_v57 = vmul.f32 %v3852_v53, %v3847_v50 }
0x1783   : > { %v3863_v60 = vadd.f32 0.2548296, %v3861_v54  ;;  %v3856_v28 = vadd.f32 1.4214138, %v3854_v57 }
0x1785   : > { %v3865_v62 = vmul.f32 %v3863_v60, %v3832_v56  ;;  %v3858_v16 = vmul.f32 %v3856_v28, %v3847_v50 }
0x1787   : > { %v3875_v30 = vmul.f32 %v5408_v1, %v3865_v62  ;;  %v3860_v3 = vadd.f32 -0.28449672, %v3858_v16 }
0x1789   : > { %v3877_v4 = vsub.f32 1.0, %v3875_v30  ;;  %v3862_v35 = vmul.f32 %v3860_v3, %v3847_v50 }
0x178b   : > { %v3879_v6 = vmul.f32 %v3877_v4, %v3811_v5  ;;  %v3864_v7 = vadd.f32 0.2548296, %v3862_v35 }
0x178d   : > { %v3881_v26 = vadd.f32 1.0, %v3879_v6  ;;  %v3866_v29 = vmul.f32 %v3864_v7, %v3847_v50 }
0x178f   : > { %v3883_v10 = vmul.f32 %v3881_v26, %v3805_v8  ;;  %v3876_v11 = vmul.f32 %v5410_v9, %v3866_v29  ;;  %v4015_v8 = vld [vmem:[%s8025_s3 + $0x38] sm:$0xff]  ;;  %v4014_v26 = vld [vmem:[%s8025_s3 + $0x30] sm:$0xff]  ;;  %v4013_v29 = vld [vmem:[%s8025_s3 + $0x28] sm:$0xff] }
0x1790   : > { %4029 = vmatpush.msra.mxu1 %v4015_v8  ;;  %v4012_v9 = vld [vmem:[%s8025_s3 + $0x20] sm:$0xff] }
0x1791   : > { %3921 = vmatmul.f32.vlgmr.msra.gmra.mxu0 %v3883_v10  ;;  %v3878_v34 = vsub.f32 1.0, %v3876_v11  ;;  %v4011_v10 = vld [vmem:[%s8025_s3 + $0x18] sm:$0xff]  ;;  %v4010_v11 = vld [vmem:[%s8025_s3 + $0x10] sm:$0xff] }
0x1792   : > { %4030 = vmatpush.msra.mxu1 %v4014_v26 }
0x1793   : > { %v3880_v13 = vmul.f32 %v3878_v34, %v3812_v12  ;;  %v4009_v34 = vld [vmem:[%s8025_s3 + $0x8] sm:$0xff]  ;;  %v4008_v12 = vld [vmem:[%s8025_s3] sm:$0xff] }
0x1794   : > { %4031 = vmatpush.msra.mxu1 %v4013_v29 }
0x1795   : > { %v3882_v36 = vadd.f32 1.0, %v3880_v13 }
0x1796   : > { %4032 = vmatpush.msra.mxu1 %v4012_v9 }
0x1797   : > { %v3884_v17 = vmul.f32 %v3882_v36, %v3806_v14 }
0x1798   : > { %4033 = vmatpush.msra.mxu1 %v4011_v10  ;;  %v4133_v10 = vld [vmem:[#allocation38 + $0x18] sm:$0xff] }
0x1799   : > { %3923 = vmatmul.f32.gmra.mxu0 %v3884_v17 }
0x179a   : > { %4034 = vmatpush.msra.mxu1 %v4010_v11  ;;  %v4132_v11 = vld [vmem:[#allocation38 + $0x10] sm:$0xff] }
0x179c   : > { %4035 = vmatpush.msra.mxu1 %v4009_v34  ;;  %v4131_v34 = vld [vmem:[#allocation38 + $0x8] sm:$0xff] }
0x179e   : > { %4036 = vmatpush.msra.mxu1 %v4008_v12  ;;  %v4130_v12 = vld [vmem:[#allocation38] sm:$0xff] }
0x17a0   : > { %4150 = vmatpush.msrb.mxu1 %v4133_v10 }
0x17a2   : > { %4151 = vmatpush.msrb.mxu1 %v4132_v11 }
0x17a4   : > { %4152 = vmatpush.msrb.mxu1 %v4131_v34 }
0x17a6   : > { %4153 = vmatpush.msrb.mxu1 %v4130_v12 }
0x180e   : > { %v3922_v19 = vpop.f32.mrf.mxu0 }
0x1816   : > { %v3924_v0 = vpop.f32.mrf.mxu0 }
0x1817   : > { %v3925_v22 = vadd.f32 %v5310_v20, %v3924_v0 }
0x1819   : > { %v3928_v15 = vmul.f32 0.70710677, %v3925_v22  ;;  %v3927_v55 = vmul.f32 0.5, %v3925_v22 }
0x181b   : > { %v3931_v23 = vand.u32 2147483647, %v3928_v15  ;;  %vm3929_vm4 = vcmp.ge.f32.partialorder %v3928_v15, 0.0 }
0x181c   : > { %v3930_v53 = vsel %vm3929_vm4, 1.0, %v6582_v31 }
0x181d   : > { %v3932_v24 = vmul.f32 0.3275911, %v3931_v23  ;;  %v3958_v61 = vsub.f32 0.0, %v3931_v23 }
0x181f   : > { %v3933_v25 = vadd.f32 1.0, %v3932_v24  ;;  %v3959_v41 = vmul.f32 %v3958_v61, %v3931_v23  ;;  %v5311_v23 = vld [vmem:[#allocation25] ss:$0 sm:$0xff] }
0x1821   : > { %5411 = vrcp.f32 %v3933_v25  ;;  %v3945_v56 = vand.u32 2147483648, %v3933_v25  ;;  %v3943_v33 = vand.u32 2147483647, %v3933_v25  ;;  %vm3939_vm2 = vweird.f32 %v3933_v25 }
0x1822   : > { %v3960_v44 = vmul.f32 1.442695, %v3959_v41 }
0x1823   : > { %v3946_v21 = vor.u32 1.1754944e-38, %v3945_v56  ;;  %vm3944_vm3 = vcmp.eq.f32.partialorder %v3943_v33, 8.507059e+37 }
0x1824   : > { %5413 = vpow2.f32 %v3960_v44 }
0x1825   : > { %5415 = vrcp.f32 %v6583_v63 }
0x1827   : > { %v5412_v38 = vpop.eup %5411 }
0x1828   : > { %v3935_v27 = vmul.f32 %v5412_v38, %v3933_v25  ;;  %vm3940_vm1 = vweird.f32 %v5412_v38 }
0x1829   : > { %vm3941_vm5 = vmor %vm3939_vm2, %vm3940_vm1 }
0x182a   : > { %v3936_v2 = vsub.f32 1.0, %v3935_v27  ;;  %v5414_v50 = vpop.eup %5413 }
0x182b   : > { %v5416_v1 = vpop.eup %5415 }
0x182c   : > { %v3937_v32 = vmul.f32 %v5412_v38, %v3936_v2  ;;  %v3975_v16 = vmul.f32 64.0, %v5416_v1  ;;  %vm3979_vm7 = vweird.f32 %v5416_v1 }
0x182e   : > { %v3938_v58 = vadd.f32 %v5412_v38, %v3937_v32  ;;  %v3976_v30 = vsub.f32 1.0, %v3975_v16  ;;  %v4016_v32 = vld [vmem:[#allocation28] sm:$0x1] }
0x1830   : > { %v3942_v37 = vsel %vm3941_vm5, %v5412_v38, %v3938_v58  ;;  %v3977_v3 = vmul.f32 %v5416_v1, %v3976_v30  ;;  %v5312_v38 = vld [vmem:[#allocation26] ss:$0 sm:$0xff] }
0x1831   : > { %v3947_v59 = vsel %vm3944_vm3, %v3946_v21, %v3942_v37  ;;  %v6584_v37 = vmov 32.0  }
0x1832   : > { %v3949_v39 = vmul.f32 1.0614054, %v3947_v59  ;;  %v3978_v31 = vadd.f32 %v5416_v1, %v3977_v3  ;;  %v4042_v3 = vld [vmem:[#allocation31] sm:$0x1] }
0x1834   : > { %v3950_v40 = vadd.f32 -1.4531521, %v3949_v39  ;;  %v3980_v4 = vsel %vm3979_vm7, %v5416_v1, %v3978_v31  ;;  %v4041_v1 = vld [vmem:[#allocation29] sm:$0x1] }
0x1836   : > { %v3951_v42 = vmul.f32 %v3950_v40, %v3947_v59 }
0x1838   : > { %v3952_v43 = vadd.f32 1.4214138, %v3951_v42 }
0x183a   : > { %v3953_v45 = vmul.f32 %v3952_v43, %v3947_v59 }
0x183c   : > { %v3954_v46 = vadd.f32 -0.28449672, %v3953_v45 }
0x183e   : > { %v3955_v47 = vmul.f32 %v3954_v46, %v3947_v59 }
0x1840   : > { %v3956_v48 = vadd.f32 0.2548296, %v3955_v47 }
0x1842   : > { %v3957_v49 = vmul.f32 %v3956_v48, %v3947_v59  ;;  %v4078_v48 = vld [vmem:[#allocation32 + $0x18] sm:$0xff] }
0x1843   : > { %4096 = vmatpush.msrb.mxu2 %v4078_v48 }
0x1844   : > { %v3962_v51 = vmul.f32 %v5414_v50, %v3957_v49  ;;  %v4077_v49 = vld [vmem:[#allocation32 + $0x10] sm:$0xff]  ;;  %v4076_v50 = vld [vmem:[#allocation32 + $0x8] sm:$0xff] }
0x1845   : > { %4097 = vmatpush.msrb.mxu2 %v4077_v49 }
0x1846   : > { %v3963_v52 = vsub.f32 1.0, %v3962_v51  ;;  %v4075_v51 = vld [vmem:[#allocation32] sm:$0xff] }
0x1847   : > { %4098 = vmatpush.msrb.mxu2 %v4076_v50 }
0x1848   : > { %v3964_v54 = vmul.f32 %v3963_v52, %v3930_v53 }
0x1849   : > { %4099 = vmatpush.msrb.mxu2 %v4075_v51 }
0x184a   : > { %v3965_v57 = vadd.f32 1.0, %v3964_v54 }
0x184c   : > { %v3966_v60 = vmul.f32 %v3965_v57, %v3927_v55 }
0x184e   : > { %v3967_v28 = vadd.f32 %v3966_v60, %v7728_v18 }
0x1850   : > { %v3971_v62 = vsel %vm3970_vm6, %v3967_v28, 0.0 }
0x1851   : > { %3972 = vadd.xlane.f32.xlu1 %v3971_v62 }
0x18c4   : > { %v3973_v5 = vpop.xlane.xlu1 %3972 }
0x18c5   : > { %v3981_v18 = vmul.f32 %v3980_v4, %v3973_v5  ;;  %v4079_v5 = vld [vmem:[#allocation34] sm:$0x1] }
0x18c7   : > { %v3982_v35 = vsub.f32 %v3967_v28, %v3981_v18 }
0x18c9   : > { %v3983_v6 = vmul.f32 %v3982_v35, %v3982_v35 }
0x18cb   : > { %v3984_v7 = vsel %vm3970_vm6, %v3983_v6, 0.0 }
0x18cc   : > { %3985 = vadd.xlane.f32.xlu1 %v3984_v7 }
0x193f   : > { %v3986_v13 = vpop.xlane.xlu1 %3985 }
0x1940   : > { %v3987_v14 = vmul.f32 %v3986_v13, %v3980_v4 }
0x1942   : > { %v3988_v36 = vadd.f32 1e-05, %v3987_v14 }
0x1944   : > { %5417 = vrsqrt.f32 %v3988_v36  ;;  %vm3995_vm9 = vweird.f32 %v3988_v36 }
0x1945   : > { %5419 = vrcp.f32 %v6584_v37 }
0x194a   : > { %v5418_v17 = vpop.eup %5417 }
0x194b   : > { %v3990_v19 = vmul.f32 %v5418_v17, %v3988_v36  ;;  %vm3996_vm8 = vweird.f32 %v5418_v17  ;;  %v5420_v59 = vpop.eup %5419 }
0x194c   : > { %vm3997_vm10 = vmor %vm3995_vm9, %vm3996_vm8  ;;  %v4048_v61 = vmul.f32 32.0, %v5420_v59  ;;  %vm4052_vm12 = vweird.f32 %v5420_v59 }
0x194d   : > { %v3991_v20 = vmul.f32 %v5418_v17, %v3990_v19 }
0x194e   : > { %v4049_v39 = vsub.f32 1.0, %v4048_v61 }
0x194f   : > { %v3992_v0 = vmul.f32 0.5, %v3991_v20 }
0x1950   : > { %v4050_v40 = vmul.f32 %v5420_v59, %v4049_v39 }
0x1951   : > { %v3993_v22 = vsub.f32 1.5, %v3992_v0 }
0x1952   : > { %v4051_v41 = vadd.f32 %v5420_v59, %v4050_v40  ;;  %v4187_v40 = vld [vmem:[%s8026_s18 + $0x18] sm:$0xff]  ;;  %s4331_s18 = sshll.u32 %s1987_s16, 4  ;;  %s4332_s18 = int_to_ptr.vmem [resolvable:$true] %s4331_s18 }
0x1953   : > { %v3994_v15 = vmul.f32 %v5418_v17, %v3993_v22  ;;  %4204 = vmatpush.msra.mxu2 %v4187_v40 }
0x1954   : > { %v7788_v42 = vsel %vm4052_vm12, %v5420_v59, %v4051_v41  ;;  %v4186_v41 = vld [vmem:[%s8027_s1 + $0x10] sm:$0xff] }
0x1955   : > { %v3998_v24 = vsel %vm3997_vm10, %v5418_v17, %v3994_v15  ;;  %4205 = vmatpush.msra.mxu2 %v4186_v41  ;;  %vm4294_vm10 = vcmask 57344  }
0x1956   : > { %v3999_v25 = vmul.f32 %v3998_v24, %v3982_v35 }
0x1958   : > { %v4003_v27 = vmul.f32 %v5311_v23, %v3999_v25  ;;  %v4104_v23 = vld [vmem:[#allocation35] sm:$0x1] }
0x195a   : > { %v4007_v2 = vadd.f32 %v5312_v38, %v4003_v27  ;;  %v4105_v38 = vld [vmem:[#allocation37] sm:$0x1] }
0x195c   : > { %v4018_v56 = vrot.slane %v4007_v2, 7 }
0x195e   : > { %4904 = vmatmul.msk.f32.vlgmr.msra.gmra.mxu1 %vm2007_vm0, %v4018_v56  ;;  %v4134_v56 = vld [vmem:[#allocation40] sm:$0x1] }
0x19db   : > { %v4038_v33 = vpop.f32.mrf.mxu1 }
0x19dc   : > { %v4039_v58 = vadd.f32 %v4038_v33, %v4016_v32 }
0x19de   : > { %v4044_v21 = vsel %vm4043_vm11, %v4039_v58, 0.0 }
0x19df   : > { %4045 = vadd.xlane.f32.xlu1 %v4044_v21 }
0x1a52   : > { %v4046_v43 = vpop.xlane.xlu1 %4045 }
0x1a53   : > { %v4054_v44 = vmul.f32 %v7788_v42, %v4046_v43  ;;  %v4185_v43 = vld [vmem:[%s8027_s1 + $0x8] sm:$0xff] }
0x1a54   : > { %4206 = vmatpush.msra.mxu2 %v4185_v43 }
0x1a55   : > { %v4055_v45 = vsub.f32 %v4039_v58, %v4054_v44  ;;  %v4184_v44 = vld [vmem:[%s8027_s1] sm:$0xff]  ;;  %s4333_s1 = sshll.u32 %s4329_s7, 4  ;;  %s4334_s1 = int_to_ptr.hbm [resolvable:$true] %s4333_s1 }
0x1a56   : > { %4207 = vmatpush.msra.mxu2 %v4184_v44  ;;  %s6371_s22 = sshra.s32 %s4334_s1, 4  ;;  %s6372_s22 = int_to_ptr.hbm [resolvable:$true] %s6371_s22 }
0x1a57   : > { %v4056_v46 = vmul.f32 %v4055_v45, %v4055_v45  ;;  %s6373_s3 = scalar_lea.hbm %s6372_s22, 1  ;;  %p6378_p1 = scmp.lt.s32.totalorder %s6372_s22, %s6843_s14 }
0x1a58   : > { %p6374_p10 = scmp.ne.s32.totalorder %s6372_s22, %s6373_s3  ;;  %p6379_p2 = scmp.lt.s32.totalorder %s6377_s4, %s6373_s3 }
0x1a59   : > { %v4057_v47 = vsel %vm4043_vm11, %v4056_v46, 0.0 }
0x1a5a   : > { %4058 = vadd.xlane.f32.xlu1 %v4057_v47  ;;  %p6375_p13 = pnand %p6374_p10, %p6883_p5  ;;  %p6380_p3 = por %p6379_p2, %p6378_p1 }
0x1a5c   : > { %p6376_p0 = pneg %p6375_p13 }
0x1a5e   : > { %p6381_p4 = pnand %p6380_p3, %p6376_p0 }
0x1acd   : > { %v4059_v52 = vpop.xlane.xlu1 %4058 }
0x1ace   : > { %v4060_v53 = vmul.f32 %v4059_v52, %v7788_v42 }
0x1ad0   : > { %v4061_v54 = vadd.f32 1e-05, %v4060_v53 }
0x1ad2   : > { %5421 = vrsqrt.f32 %v4061_v54  ;;  %vm4068_vm13 = vweird.f32 %v4061_v54 }
0x1ad8   : > { %v5422_v55 = vpop.eup %5421 }
0x1ad9   : > { %v4063_v57 = vmul.f32 %v5422_v55, %v4061_v54  ;;  %vm4069_vm0 = vweird.f32 %v5422_v55  ;;  %v4158_v54 = vld [vmem:[#allocation41] sm:$0x1] }
0x1ada   : > { %vm4070_vm14 = vmor %vm4068_vm13, %vm4069_vm0 }
0x1adb   : > { %v4064_v60 = vmul.f32 %v5422_v55, %v4063_v57 }
0x1add   : > { %v4065_v28 = vmul.f32 0.5, %v4064_v60  ;;  %v4159_v60 = vld [vmem:[#allocation43] sm:$0x1] }
0x1adf   : > { %v4066_v62 = vsub.f32 1.5, %v4065_v28 }
0x1ae1   : > { %v4067_v63 = vmul.f32 %v5422_v55, %v4066_v62 }
0x1ae3   : > { %v4071_v16 = vsel %vm4070_vm14, %v5422_v55, %v4067_v63  ;;  %v4188_v63 = vld [vmem:[#allocation44] sm:$0x1] }
0x1ae4   : > { %v4072_v30 = vmul.f32 %v4071_v16, %v4055_v45 }
0x1ae6   : > { %v4073_v31 = vmul.f32 %v4072_v30, %v4041_v1 }
0x1ae8   : > { %v4074_v4 = vadd.f32 %v4073_v31, %v4042_v3 }
0x1aea   : > { %4905 = vmatmul.msk.f32.vlgmr.msrb.gmra.mxu2 %vm4080_vm15, %v4074_v4 }
0x1b6d   : > { %v4101_v18 = vpop.f32.mrf.mxu2 }
0x1b6e   : > { %v4102_v35 = vadd.f32 %v4101_v18, %v4079_v5 }
0x1b70   : > { %v4106_v6 = vsel %vm4043_vm11, %v4102_v35, 0.0 }
0x1b71   : > { %4107 = vadd.xlane.f32.xlu1 %v4106_v6  ;;  %v4240_v6 = vld [vmem:[#allocation49 + $0x10] sm:$0xff] }
0x1be4   : > { %v4108_v7 = vpop.xlane.xlu1 %4107 }
0x1be5   : > { %v4109_v8 = vmul.f32 %v4108_v7, %v7788_v42  ;;  %v4239_v7 = vld [vmem:[#allocation49 + $0x8] sm:$0xff] }
0x1be7   : > { %v4110_v26 = vsub.f32 %v4102_v35, %v4109_v8  ;;  %v4241_v35 = vld [vmem:[#allocation49 + $0x18] sm:$0xff]  ;;  %v4238_v8 = vld [vmem:[#allocation49] sm:$0xff] }
0x1be8   : > { %4258 = vmatpush.msra.mxu3 %v4241_v35 }
0x1be9   : > { %v4111_v29 = vmul.f32 %v4110_v26, %v4110_v26 }
0x1bea   : > { %4259 = vmatpush.msra.mxu3 %v4240_v6 }
0x1beb   : > { %v4112_v9 = vsel %vm4043_vm11, %v4111_v29, 0.0  ;;  %v4268_v29 = vld [vmem:[%s6833_s25 + $0x10] sm:$0xff] }
0x1bec   : > { %4113 = vadd.xlane.f32.xlu2 %v4112_v9  ;;  %4260 = vmatpush.msra.mxu3 %v4239_v7 }
0x1bee   : > { %4261 = vmatpush.msra.mxu3 %v4238_v8 }
0x1c5f   : > { %v4114_v13 = vpop.xlane.xlu2 %4113 }
0x1c60   : > { %v4115_v14 = vmul.f32 %v4114_v13, %v7788_v42 }
0x1c62   : > { %v4116_v36 = vadd.f32 1e-05, %v4115_v14 }
0x1c64   : > { %5423 = vrsqrt.f32 %v4116_v36  ;;  %vm4123_vm2 = vweird.f32 %v4116_v36 }
0x1c6a   : > { %v5424_v17 = vpop.eup %5423 }
0x1c6b   : > { %v4118_v19 = vmul.f32 %v5424_v17, %v4116_v36  ;;  %vm4124_vm1 = vweird.f32 %v5424_v17 }
0x1c6c   : > { %vm4125_vm5 = vmor %vm4123_vm2, %vm4124_vm1 }
0x1c6d   : > { %v4119_v20 = vmul.f32 %v5424_v17, %v4118_v19  ;;  %v4212_v19 = vld [vmem:[#allocation46] sm:$0x1] }
0x1c6f   : > { %v4120_v0 = vmul.f32 0.5, %v4119_v20 }
0x1c71   : > { %v4121_v22 = vsub.f32 1.5, %v4120_v0 }
0x1c73   : > { %v4122_v15 = vmul.f32 %v5424_v17, %v4121_v22  ;;  %v4213_v22 = vld [vmem:[#allocation47] sm:$0x1] }
0x1c75   : > { %v4126_v24 = vsel %vm4125_vm5, %v5424_v17, %v4122_v15 }
0x1c76   : > { %v4127_v25 = vmul.f32 %v4126_v24, %v4110_v26  ;;  %v4269_v26 = vld [vmem:[%s6833_s25 + $0x18] sm:$0xff]  ;;  %v4266_v24 = vld [vmem:[%s6833_s25] sm:$0xff] }
0x1c77   : > { %4286 = vmatpush.msra.mxu1 %v4269_v26 }
0x1c78   : > { %v4128_v27 = vmul.f32 %v4127_v25, %v4104_v23  ;;  %v4242_v25 = vld [vmem:[#allocation50] sm:$0x1] }
0x1c79   : > { %4287 = vmatpush.msra.mxu1 %v4268_v29 }
0x1c7a   : > { %v4129_v2 = vadd.f32 %v4128_v27, %v4105_v38 }
0x1c7c   : > { %4906 = vmatmul.msk.f32.vlgmr.msrb.gmra.mxu1 %vm4080_vm15, %v4129_v2  ;;  %v4270_v2 = vld [vmem:[#allocation52] sm:$0x1] }
0x1cf9   : > { %v4155_v32 = vpop.f32.mrf.mxu1 }
0x1cfa   : > { %v4156_v33 = vadd.f32 %v4155_v32, %v4134_v56 }
0x1cfc   : > { %v4160_v58 = vsel %vm4043_vm11, %v4156_v33, 0.0 }
0x1cfd   : > { %4161 = vadd.xlane.f32.xlu0 %v4160_v58 }
0x1d70   : > { %v4162_v21 = vpop.xlane.xlu0 %4161 }
0x1d71   : > { %v4163_v37 = vmul.f32 %v4162_v21, %v7788_v42 }
0x1d73   : > { %v4164_v59 = vsub.f32 %v4156_v33, %v4163_v37 }
0x1d75   : > { %v4165_v61 = vmul.f32 %v4164_v59, %v4164_v59 }
0x1d77   : > { %v4166_v39 = vsel %vm4043_vm11, %v4165_v61, 0.0 }
0x1d78   : > { %4167 = vadd.xlane.f32.xlu1 %v4166_v39 }
0x1deb   : > { %v4168_v45 = vpop.xlane.xlu1 %4167 }
0x1dec   : > { %v4169_v46 = vmul.f32 %v4168_v45, %v7788_v42 }
0x1dee   : > { %v4170_v47 = vadd.f32 1e-05, %v4169_v46 }
0x1df0   : > { %5425 = vrsqrt.f32 %v4170_v47  ;;  %vm4177_vm4 = vweird.f32 %v4170_v47 }
0x1df6   : > { %v5426_v48 = vpop.eup %5425 }
0x1df7   : > { %v4172_v49 = vmul.f32 %v5426_v48, %v4170_v47  ;;  %vm4178_vm3 = vweird.f32 %v5426_v48 }
0x1df8   : > { %vm4179_vm6 = vmor %vm4177_vm4, %vm4178_vm3 }
0x1df9   : > { %v4173_v50 = vmul.f32 %v5426_v48, %v4172_v49 }
0x1dfb   : > { %v4174_v51 = vmul.f32 0.5, %v4173_v50 }
0x1dfd   : > { %v4175_v52 = vsub.f32 1.5, %v4174_v51 }
0x1dff   : > { %v4176_v53 = vmul.f32 %v5426_v48, %v4175_v52 }
0x1e01   : > { %v4180_v55 = vsel %vm4179_vm6, %v5426_v48, %v4176_v53 }
0x1e02   : > { %v4181_v57 = vmul.f32 %v4180_v55, %v4164_v59 }
0x1e04   : > { %v4182_v28 = vmul.f32 %v4181_v57, %v4158_v54 }
0x1e06   : > { %v4183_v62 = vadd.f32 %v4182_v28, %v4159_v60 }
0x1e08   : > { %4907 = vmatmul.msk.f32.vlgmr.msra.gmra.mxu2 %vm4080_vm15, %v4183_v62 }
0x1e8b   : > { %v4209_v1 = vpop.f32.mrf.mxu2 }
0x1e8c   : > { %v4210_v16 = vadd.f32 %v4209_v1, %v4188_v63 }
0x1e8e   : > { %v4214_v30 = vsel %vm4043_vm11, %v4210_v16, 0.0 }
0x1e8f   : > { %4215 = vadd.xlane.f32.xlu2 %v4214_v30 }
0x1f02   : > { %v4216_v3 = vpop.xlane.xlu2 %4215 }
0x1f03   : > { %v4217_v31 = vmul.f32 %v4216_v3, %v7788_v42 }
0x1f05   : > { %v4218_v4 = vsub.f32 %v4210_v16, %v4217_v31 }
0x1f07   : > { %v4219_v5 = vmul.f32 %v4218_v4, %v4218_v4 }
0x1f09   : > { %v4220_v18 = vsel %vm4043_vm11, %v4219_v5, 0.0 }
0x1f0a   : > { %4221 = vadd.xlane.f32.xlu0 %v4220_v18 }
0x1f7d   : > { %v4222_v9 = vpop.xlane.xlu0 %4221 }
0x1f7e   : > { %v4223_v10 = vmul.f32 %v4222_v9, %v7788_v42  ;;  %v4267_v42 = vld [vmem:[%s6833_s25 + $0x8] sm:$0xff] }
0x1f7f   : > { %4288 = vmatpush.msra.mxu1 %v4267_v42 }
0x1f80   : > { %v4224_v11 = vadd.f32 1e-05, %v4223_v10 }
0x1f81   : > { %4289 = vmatpush.msra.mxu1 %v4266_v24 }
0x1f82   : > { %5427 = vrsqrt.f32 %v4224_v11  ;;  %vm4231_vm8 = vweird.f32 %v4224_v11 }
0x1f88   : > { %v5428_v34 = vpop.eup %5427 }
0x1f89   : > { %v4226_v12 = vmul.f32 %v5428_v34, %v4224_v11  ;;  %vm4232_vm7 = vweird.f32 %v5428_v34 }
0x1f8a   : > { %vm4233_vm9 = vmor %vm4231_vm8, %vm4232_vm7 }
0x1f8b   : > { %v4227_v13 = vmul.f32 %v5428_v34, %v4226_v12 }
0x1f8d   : > { %v4228_v14 = vmul.f32 0.5, %v4227_v13 }
0x1f8f   : > { %v4229_v36 = vsub.f32 1.5, %v4228_v14 }
0x1f91   : > { %v4230_v17 = vmul.f32 %v5428_v34, %v4229_v36 }
0x1f93   : > { %v4234_v20 = vsel %vm4233_vm9, %v5428_v34, %v4230_v17 }
0x1f94   : > { %v4235_v0 = vmul.f32 %v4234_v20, %v4218_v4 }
0x1f96   : > { %v4236_v15 = vmul.f32 %v4235_v0, %v4212_v19 }
0x1f98   : > { %v4237_v23 = vadd.f32 %v4236_v15, %v4213_v22 }
0x1f9a   : > { %4908 = vmatmul.msk.f32.vlgmr.msra.gmra.mxu3 %vm4080_vm15, %v4237_v23 }
0x201d   : > { %v4263_v38 = vpop.f32.mrf.mxu3 }
0x201e   : > { %v4264_v27 = vadd.f32 %v4263_v38, %v4242_v25 }
0x2020   : > { %4909 = vmatmul.msk.f32.vlgmr.msra.gmra.mxu1 %vm4080_vm15, %v4264_v27 }
0x209d   : > { %v4291_v56 = vpop.f32.mrf.mxu1 }
0x209e   : > { %v4292_v32 = vadd.f32 %v4291_v56, %v4270_v2 }
0x20a0   : > { %v4295_v33 = vsel %vm4294_vm10, %v4292_v32, -inf }
0x20a1   : > { %4296 = vmax.xlane.f32.xlu1 %v4295_v33 }
0x2114   : > { %v4297_v58 = vpop.xlane.xlu1 %4296 }
0x2115   : > { %v4298_v21 = vsub.f32 %v4292_v32, %v4297_v58 }
0x2117   : > { %v4299_v37 = vmul.f32 1.442695, %v4298_v21 }
0x2119   : > { %5429 = vpow2.f32 %v4299_v37 }
0x211f   : > { %v5430_v59 = vpop.eup %5429 }
0x2120   : > { %v4301_v61 = vsel %vm4294_vm10, %v5430_v59, 0.0 }
0x2121   : > { %4302 = vadd.xlane.f32.xlu2 %v4301_v61 }
0x2194   : > { %v4303_v39 = vpop.xlane.xlu2 %4302 }
0x2195   : > { %5431 = vrcp.f32 %v4303_v39  ;;  %v4315_v44 = vand.u32 2147483648, %v4303_v39  ;;  %v4313_v46 = vand.u32 2147483647, %v4303_v39  ;;  %vm4309_vm12 = vweird.f32 %v4303_v39 }
0x2197   : > { %v4316_v48 = vor.u32 1.1754944e-38, %v4315_v44  ;;  %vm4314_vm13 = vcmp.eq.f32.partialorder %v4313_v46, 8.507059e+37 }
0x219b   : > { %v5432_v40 = vpop.eup %5431 }
0x219c   : > { %v4305_v41 = vmul.f32 %v5432_v40, %v4303_v39  ;;  %vm4310_vm11 = vweird.f32 %v5432_v40 }
0x219d   : > { %vm4311_vm0 = vmor %vm4309_vm12, %vm4310_vm11 }
0x219e   : > { %v4306_v43 = vsub.f32 1.0, %v4305_v41 }
0x21a0   : > { %v4307_v45 = vmul.f32 %v5432_v40, %v4306_v43 }
0x21a2   : > { %v4308_v47 = vadd.f32 %v5432_v40, %v4307_v45 }
0x21a4   : > { %v4312_v49 = vsel %vm4311_vm0, %v5432_v40, %v4308_v47 }
0x21a5   : > { %v4317_v50 = vsel %vm4314_vm13, %v4316_v48, %v4312_v49 }
0x21a6   : > { %v4318_v51 = vmul.f32 %v5430_v59, %v4317_v50 }
0x21a8   : > { %4319 = vst.msk [vmem:[%s1987_s16] sm:$0x1] %vm4294_vm10, %v4318_v51 }
0x21a9   : > { %6384 = shalt.err (!%p6381_p4)
}
0x21aa   : > { %5073 = dma.vmem_to_hbm [thread:$0]  (%p6883_p5), %s4332_s18, 16, %s4334_s1, %s4321_s2  }
0x21ab PF: > { %s8029_s7 = sld [smem:[#allocation113_spill]] }
0x21ac   : > { %s8030_s16 = sld [smem:[#allocation111_spill]] }
0x21b1   : > { %p5145_p7 = scmp.ge.s32.totalorder %s8029_s7, 2 }
0x21b2   : > { %s4345_s5 = sand.u32 1, %s8030_s16  }
0x21b3   : > { %p5076_p8 = pnand %p5145_p7, %p6887_p6  ;;  %s4346_s6 = scalar_lea.sflag [#allocation4], %s4345_s5 }
0x21b5   : > { %p5077_p11 = pneg %p5076_p8 }
0x21b7   : > { %6470 = dma.done.wait (%p5077_p11), %s4346_s6, 16  }
0x21b8   : > { %6472 = vsyncadd (%p5077_p11), %s4346_s6, 4294967280  ;;  %s8032_s18 = sld [smem:[#allocation114_spill]]  ;;  %s8035_s0 = smov %s6479_s15 }
0x21b9   : > { %s8033_s4 = sld [smem:[#allocation112_spill]] }
0x21ba   : > { %s8034_s16 = sld [smem:[#allocation115_spill]] }
0x21be   : > { %p128_p12 = scmp.ge.s32.totalorder %s8032_s18, 4  }
0x21bf   : > { %s8036_s15 = smov %s8033_s4 }
0x21c0   :  { %130 = sbr.rel (!%p128_p12) target bundleno = 114 (0x72), region = 438 }
0x21c5   :  { %4351 = vsyncpa [#allocation3], 1 }
0x21c6   :  { %4353 = vsyncpa [#allocation3 + $0x1], 1 }
0x21c7   :  { %4354 = vsyncpa [#allocation6], 1 }
0x21c8   :  { %4355 = vsyncpa [#allocation9], 1 }
0x21c9   :  { %4356 = vsyncpa [#allocation12], 1 }
0x21ca   :  { %4357 = vsyncpa [#allocation15], 1 }
0x21cb   :  { %4358 = vsyncpa [#allocation18], 1 }
0x21cc   :  { %4359 = vsyncpa [#allocation21], 1 }
0x21cd   :  { %4360 = vsyncpa [#allocation24], 1 }
0x21ce   :  { %4361 = vsyncpa [#allocation27], 1 }
0x21cf   :  { %4362 = vsyncpa [#allocation30], 1 }
0x21d0   :  { %4363 = vsyncpa [#allocation33], 1 }
0x21d1   :  { %4364 = vsyncpa [#allocation36], 1 }
0x21d2   :  { %4365 = vsyncpa [#allocation39], 1 }
0x21d3   :  { %4366 = vsyncpa [#allocation42], 1 }
0x21d4   :  { %4367 = vsyncpa [#allocation45], 1 }
0x21d5   :  { %4368 = vsyncpa [#allocation48], 1 }
0x21d6   :  { %4369 = vsyncpa [#allocation51], 1 }
0x21d7   :  { %4370 = vsyncpa [#allocation4], 1 }
0x21d8   :  { %4372 = vsyncpa [#allocation4 + $0x1], 1 }

</bundles_post_ra>
